<compile_context>
chip_gen: v5e
topology: v5e:2x2
jax: 0.10.0
libtpu: 0.0.40
codegen_flags: <defaults>
</compile_context>

<pallas_src>
import math

import jax
import jax.numpy as jnp
from jax.experimental import pallas as pl
from jax.experimental.pallas import tpu as pltpu


def _gelu(v):
    # tanh-approximate GELU, used identically in kernel and reference.
    # TODO(synk): PyTorch nn.GELU() defaults to the exact erf form; erf lowering
    # in Mosaic is not guaranteed, so the tanh approximation (<~1e-3 abs dev) is used.
    c = 0.7978845608028654  # sqrt(2/pi)
    return 0.5 * v * (1.0 + jnp.tanh(c * (v + 0.044715 * v * v * v)))


# --------------------------------- kernel ---------------------------------

def _process_degree(x_ref, o_ref, params, m, d, e, eps):
    """Fused prenorm -> project_in -> norm -> project_out -> residual for one
    degree on a (tR, d*m) row tile, kept in the PyTorch-native interleaved
    lane layout (channel-major, m minor)."""
    if m > 1:
        w_in_ref, w_out_ref, s_pre_ref, s_hid_ref, g_red_ref, g_bc_ref = params
    else:
        w_in_ref, w_out_ref, s_pre_ref, s_hid_ref = params

    eps2 = eps * eps
    x = x_ref[...].astype(jnp.float32)                       # (tR, d*m)
    x2 = x * x

    # ---- prenorm (NormSE3): sum of squares over the m interleaved lanes per
    # channel.  Reduce / broadcast are 0/1 matmuls (one MXU pass each) so no
    # cross-lane shuffles are needed; for m == 1 they degenerate to identity.
    if m > 1:
        ss0 = jnp.dot(x2.astype(jnp.bfloat16), g_red_ref[...],
                      preferred_element_type=jnp.float32)    # (tR, d)
    else:
        ss0 = x2
    inv0 = jax.lax.rsqrt(jnp.maximum(ss0, eps2))             # 1 / clamp(norm, eps)
    gate0 = _gelu((ss0 * inv0) * s_pre_ref[...]) * inv0      # gelu(norm*scale)/norm
    if m > 1:
        gexp = jnp.dot(gate0.astype(jnp.bfloat16), g_bc_ref[...],
                       preferred_element_type=jnp.float32)   # (tR, d*m)
    else:
        gexp = gate0
    y = (x * gexp).astype(jnp.bfloat16)

    # ---- project_in (LinearSE3): one block-diagonal bf16 matmul for all m
    # components.  Output layout is component-major: m slabs of e = 4*d lanes,
    # each fully lane-dense (e = 128).
    h = jnp.dot(y, w_in_ref[...], preferred_element_type=jnp.float32)    # (tR, m*e)

    # ---- hidden NormSE3: purely elementwise across the m slabs ----
    slabs = [h[:, i * e:(i + 1) * e] for i in range(m)]
    ss1 = slabs[0] * slabs[0]
    for i in range(1, m):
        ss1 = ss1 + slabs[i] * slabs[i]
    inv1 = jax.lax.rsqrt(jnp.maximum(ss1, eps2))
    gate1 = _gelu((ss1 * inv1) * s_hid_ref[...]) * inv1                  # (tR, e)

    # ---- project_out (LinearSE3, block-diagonal bf16) + residual ----
    zs = [(slabs[i] * gate1).astype(jnp.bfloat16) for i in range(m)]
    z = zs[0] if m == 1 else jnp.concatenate(zs, axis=-1)                # (tR, m*e)
    o = jnp.dot(z, w_out_ref[...], preferred_element_type=jnp.float32)   # (tR, d*m)
    o_ref[...] = (o + x).astype(o_ref.dtype)


def _make_kernel(metas, eps):
    """Kernel over all degrees at once.  Ref order: [x_k]*D, [params_k]*D, [o_k]*D."""
    n_deg = len(metas)

    def kernel(*refs):
        x_refs = refs[:n_deg]
        pos = n_deg
        groups = []
        for (m, _, _) in metas:
            k = 6 if m > 1 else 4
            groups.append(refs[pos:pos + k])
            pos += k
        o_refs = refs[pos:pos + n_deg]
        for (m, d, e), x_ref, grp, o_ref in zip(metas, x_refs, groups, o_refs):
            _process_degree(x_ref, o_ref, grp, m, d, e, eps)

    return kernel


# ------------------------- host-side weight prep -------------------------

def _expand_w_in(w, m):
    """(d, e) -> block-diagonal (d*m, m*e); rows interleaved (c,i), cols
    component-major (i, f).  Built once; tiny."""
    d, e = w.shape
    if m == 1:
        return w
    eye = jnp.eye(m, dtype=w.dtype)
    return jnp.einsum("cf,ij->cijf", w, eye).reshape(d * m, m * e)


def _expand_w_out(w, m):
    """(e, d) -> block-diagonal (m*e, d*m); rows component-major (i, f), cols
    interleaved (c, j) matching the external output layout."""
    e, d = w.shape
    if m == 1:
        return w
    eye = jnp.eye(m, dtype=w.dtype)
    return jnp.einsum("fc,ij->ifcj", w, eye).reshape(m * e, d * m)


def _group_reduce_mat(d, m):
    """(d*m, d) 0/1 matrix summing the m interleaved lanes of each channel."""
    eye = jnp.eye(d, dtype=jnp.float32)
    return jnp.broadcast_to(eye[:, None, :], (d, m, d)).reshape(d * m, d)


def _choose_row_tile(R, metas, budget_bytes=8 << 20):
    """Row tile: multiple of 8 sublanes, sized so the per-step working set
    (double-buffered in/out blocks, hidden f32 slabs, bf16 operands) stays well
    inside every generation's scoped VMEM (v5e 16 MiB default, v7x 32 MiB scoped
    of 64 MiB physical), while still giving >= 8 grid steps (>= 4 per v7x
    TensorCore) when R allows."""
    per_row = 0
    for (m, d, e) in metas:
        F, H = d * m, e * m
        per_row += 4 * (4 * F) + 4 * (3 * F) + 2 * F + 6 * H + 16 * e
    cap = max(8, min(int(budget_bytes) // max(per_row, 1), 512))
    cap = (cap // 8) * 8
    target = ((-(-R // 8)) + 7) // 8 * 8      # ceil(R/8) rounded up to a multiple of 8
    tR = max(8, min(cap, target))
    # Prefer a nearby multiple-of-8 divisor of R so no padding copy is needed.
    t = tR
    while t >= 8 and t >= tR - 248:
        if R % t == 0:
            return t
        t -= 8
    return tR


# --------------------------------- wrapper ---------------------------------

def feedforward_block_se3(features, params, *, eps=1e-12):
    """Full FeedForwardBlockSE3 forward over a dict of degrees, one pallas_call."""
    names = list(features.keys())
    b, n = features[names[0]].shape[:2]
    R = b * n

    metas = []
    for k in names:
        bb, nn_, d, m = features[k].shape
        assert (bb, nn_) == (b, n)
        e = params[k]["w_in"].shape[1]
        metas.append((m, d, e))

    tR = _choose_row_tile(R, metas)
    steps = pl.cdiv(R, tR)
    Rp = steps * tR

    inputs, in_specs = [], []
    # Feature inputs: free reshape to (R, d*m); m stays interleaved on lanes.
    for k, (m, d, e) in zip(names, metas):
        xf = features[k].reshape(R, d * m)
        if Rp != R:
            # TODO(synk): padding (and the matching output slice) costs one extra
            # copy of this degree; pick R divisible by the tile upstream to avoid it.
            xf = jnp.pad(xf, ((0, Rp - R), (0, 0)))
        inputs.append(xf)
        in_specs.append(pl.BlockSpec((tR, d * m), lambda i: (i, 0)))

    # Per-degree parameters (block-diagonal bf16 weights built once; tiny arrays).
    for k, (m, d, e) in zip(names, metas):
        p = params[k]
        grp = [
            _expand_w_in(p["w_in"].astype(jnp.float32), m).astype(jnp.bfloat16),
            _expand_w_out(p["w_out"].astype(jnp.float32), m).astype(jnp.bfloat16),
            p["scale_pre"].reshape(1, d).astype(jnp.float32),
            p["scale_hidden"].reshape(1, e).astype(jnp.float32),
        ]
        if m > 1:
            g_red = _group_reduce_mat(d, m)
            grp += [g_red.astype(jnp.bfloat16), g_red.T.astype(jnp.bfloat16)]
        inputs += grp
        in_specs += [pl.BlockSpec(a.shape, lambda i: (0, 0)) for a in grp]

    out_shape = tuple(
        jax.ShapeDtypeStruct((Rp, d * m), features[k].dtype)
        for k, (m, d, e) in zip(names, metas)
    )
    out_specs = [pl.BlockSpec((tR, d * m), lambda i: (i, 0)) for (m, d, e) in metas]

    outs = pl.pallas_call(
        _make_kernel(metas, eps),
        out_shape=out_shape,
        grid_spec=pltpu.PrefetchScalarGridSpec(
            num_scalar_prefetch=0,
            grid=(steps,),
            in_specs=in_specs,
            out_specs=out_specs,
        ),
        compiler_params=pltpu.CompilerParams(
            dimension_semantics=("parallel",),
            vmem_limit_bytes=32 * 1024 * 1024,   # safe on v5e/v6e/v7x
        ),
    )(*inputs)

    result = {}
    for k, (m, d, e), o in zip(names, metas, outs):
        of = o[:R] if Rp != R else o
        result[k] = of.reshape(b, n, d, m)
    return result


# ----------------------------- pure-JAX reference -----------------------------

def _norm_se3_ref(t, scale, eps):
    norm = jnp.sqrt(jnp.sum(t * t, axis=-1, keepdims=True))
    norm = jnp.maximum(norm, eps)
    phase = t / norm
    transformed = _gelu(norm[..., 0] * scale[None, None, :])
    return transformed[..., None] * phase


def feedforward_block_se3_ref(features, params, *, eps=1e-12):
    out = {}
    hi = jax.lax.Precision.HIGHEST
    for degree, x in features.items():
        p = params[degree]
        y = _norm_se3_ref(x, p["scale_pre"], eps)
        h = jnp.einsum("bndm,de->bnem", y, p["w_in"], precision=hi)
        z = _norm_se3_ref(h, p["scale_hidden"], eps)
        o = jnp.einsum("bnem,ed->bndm", z, p["w_out"], precision=hi)
        out[degree] = o + x
    return out


if __name__ == "__main__":
    # Small fiber: degrees 0 and 1 with 32 channels each (m = 1 and 3), mult=4.
    fiber = [(0, 32), (1, 32)]
    mult = 4
    b, n = 2, 512
    eps = 1e-12  # NormSE3 default

    key = jax.random.PRNGKey(0)
    features = {}
    params = {}
    for degree, dim in fiber:
        m = 2 * degree + 1
        e = dim * mult
        key, kx, kin, kout = jax.random.split(key, 4)
        features[str(degree)] = jax.random.normal(kx, (b, n, dim, m), dtype=jnp.float32)
        params[str(degree)] = {
            # LinearSE3 init: randn(d_in, d_out) / sqrt(d_in)
            "w_in": jax.random.normal(kin, (dim, e), dtype=jnp.float32) / math.sqrt(dim),
            "w_out": jax.random.normal(kout, (e, dim), dtype=jnp.float32) / math.sqrt(e),
            # NormSE3 scale init: ones
            "scale_pre": jnp.ones((dim,), jnp.float32),
            "scale_hidden": jnp.ones((e,), jnp.float32),
        }

    out = feedforward_block_se3(features, params, eps=eps)
    out = jax.block_until_ready(out)

    ref = feedforward_block_se3_ref(features, params, eps=eps)
    for degree in features:
        a, r = out[degree], ref[degree]
        assert a.shape == features[degree].shape
        # Tolerance covers bf16 MXU matmuls (with f32 accumulation) in the kernel
        # vs a HIGHEST-precision f32 XLA reference; norms/gates/residual are f32.
        assert jnp.allclose(a, r, atol=2e-2, rtol=2e-2), (
            degree,
            float(jnp.max(jnp.abs(a - r))),
        )

    print("KERNEL_OK")
</pallas_src>

<mosaic_0001>
module attributes {stable_mosaic.version = 11 : i64} {
  func.func @kernel(%arg0: i32, %arg1: memref<128x32xf32, #tpu.memory_space<vmem>>, %arg2: memref<128x96xf32, #tpu.memory_space<vmem>>, %arg3: memref<32x128xbf16, #tpu.memory_space<vmem>>, %arg4: memref<128x32xbf16, #tpu.memory_space<vmem>>, %arg5: memref<1x32xf32, #tpu.memory_space<vmem>>, %arg6: memref<1x128xf32, #tpu.memory_space<vmem>>, %arg7: memref<96x384xbf16, #tpu.memory_space<vmem>>, %arg8: memref<384x96xbf16, #tpu.memory_space<vmem>>, %arg9: memref<1x32xf32, #tpu.memory_space<vmem>>, %arg10: memref<1x128xf32, #tpu.memory_space<vmem>>, %arg11: memref<96x32xbf16, #tpu.memory_space<vmem>>, %arg12: memref<32x96xbf16, #tpu.memory_space<vmem>>, %arg13: memref<128x32xf32, #tpu.memory_space<vmem>>, %arg14: memref<128x96xf32, #tpu.memory_space<vmem>>) attributes {dimension_semantics = [#tpu.dimension_semantics<parallel>], iteration_bounds = array<i64: 8>, scalar_prefetch = 0 : i64, scratch_operands = 0 : i64, tpu.core_type = #tpu.core_type<tc>, window_params = [{transform_indices = @transform_0, window_bounds = array<i64: 128, 32>}, {transform_indices = @transform_1, window_bounds = array<i64: 128, 96>}, {pipeline_mode = #tpu.pipeline_mode<synchronous>, transform_indices = @transform_2, window_bounds = array<i64: 32, 128>}, {pipeline_mode = #tpu.pipeline_mode<synchronous>, transform_indices = @transform_3, window_bounds = array<i64: 128, 32>}, {pipeline_mode = #tpu.pipeline_mode<synchronous>, transform_indices = @transform_4, window_bounds = array<i64: 1, 32>}, {pipeline_mode = #tpu.pipeline_mode<synchronous>, transform_indices = @transform_5, window_bounds = array<i64: 1, 128>}, {pipeline_mode = #tpu.pipeline_mode<synchronous>, transform_indices = @transform_6, window_bounds = array<i64: 96, 384>}, {pipeline_mode = #tpu.pipeline_mode<synchronous>, transform_indices = @transform_7, window_bounds = array<i64: 384, 96>}, {pipeline_mode = #tpu.pipeline_mode<synchronous>, transform_indices = @transform_8, window_bounds = array<i64: 1, 32>}, {pipeline_mode = #tpu.pipeline_mode<synchronous>, transform_indices = @transform_9, window_bounds = array<i64: 1, 128>}, {pipeline_mode = #tpu.pipeline_mode<synchronous>, transform_indices = @transform_10, window_bounds = array<i64: 96, 32>}, {pipeline_mode = #tpu.pipeline_mode<synchronous>, transform_indices = @transform_11, window_bounds = array<i64: 32, 96>}, {transform_indices = @transform_12, window_bounds = array<i64: 128, 32>}, {transform_indices = @transform_13, window_bounds = array<i64: 128, 96>}]} {
    %c0 = arith.constant 0 : index
    %c0_0 = arith.constant 0 : index
    %0 = vector.load %arg1[%c0, %c0_0] : memref<128x32xf32, #tpu.memory_space<vmem>>, vector<128x32xf32>
    %1 = arith.mulf %0, %0 : vector<128x32xf32>
    %cst = arith.constant 1.000000e-24 : f32
    %2 = vector.broadcast %cst : f32 to vector<128x32xf32>
    %3 = arith.maximumf %1, %2 : vector<128x32xf32>
    %4 = math.rsqrt %3 : vector<128x32xf32>
    %5 = arith.mulf %1, %4 : vector<128x32xf32>
    %c0_1 = arith.constant 0 : index
    %c0_2 = arith.constant 0 : index
    %6 = vector.load %arg5[%c0_1, %c0_2] : memref<1x32xf32, #tpu.memory_space<vmem>>, vector<1x32xf32>
    %7 = vector.broadcast %6 : vector<1x32xf32> to vector<128x32xf32>
    %8 = arith.mulf %5, %7 : vector<128x32xf32>
    %cst_3 = arith.constant 5.000000e-01 : f32
    %9 = vector.broadcast %cst_3 : f32 to vector<128x32xf32>
    %10 = arith.mulf %9, %8 : vector<128x32xf32>
    %cst_4 = arith.constant 4.471500e-02 : f32
    %11 = vector.broadcast %cst_4 : f32 to vector<128x32xf32>
    %12 = arith.mulf %11, %8 : vector<128x32xf32>
    %13 = arith.mulf %12, %8 : vector<128x32xf32>
    %14 = arith.mulf %13, %8 : vector<128x32xf32>
    %15 = arith.addf %8, %14 : vector<128x32xf32>
    %cst_5 = arith.constant 0.797884583 : f32
    %16 = vector.broadcast %cst_5 : f32 to vector<128x32xf32>
    %17 = arith.mulf %16, %15 : vector<128x32xf32>
    %18 = math.tanh %17 : vector<128x32xf32>
    %cst_6 = arith.constant 1.000000e+00 : f32
    %19 = vector.broadcast %cst_6 : f32 to vector<128x32xf32>
    %20 = arith.addf %19, %18 : vector<128x32xf32>
    %21 = arith.mulf %10, %20 : vector<128x32xf32>
    %22 = arith.mulf %21, %4 : vector<128x32xf32>
    %23 = arith.mulf %0, %22 : vector<128x32xf32>
    %24 = arith.truncf %23 : vector<128x32xf32> to vector<128x32xbf16>
    %c0_7 = arith.constant 0 : index
    %c0_8 = arith.constant 0 : index
    %25 = vector.load %arg3[%c0_7, %c0_8] : memref<32x128xbf16, #tpu.memory_space<vmem>>, vector<32x128xbf16>
    %cst_9 = arith.constant dense<0.000000e+00> : vector<128x128xf32>
    %26 = tpu.matmul %24, %25, %cst_9 {dimension_numbers = #tpu.dot_dimension_numbers<[1], [0], [0], [1], [0, 0, 1, 1], [], []>} : vector<128x32xbf16>, vector<32x128xbf16>, vector<128x128xf32> -> vector<128x128xf32>
    %27 = arith.mulf %26, %26 : vector<128x128xf32>
    %cst_10 = arith.constant 1.000000e-24 : f32
    %28 = vector.broadcast %cst_10 : f32 to vector<128x128xf32>
    %29 = arith.maximumf %27, %28 : vector<128x128xf32>
    %30 = math.rsqrt %29 : vector<128x128xf32>
    %31 = arith.mulf %27, %30 : vector<128x128xf32>
    %c0_11 = arith.constant 0 : index
    %c0_12 = arith.constant 0 : index
    %32 = vector.load %arg6[%c0_11, %c0_12] : memref<1x128xf32, #tpu.memory_space<vmem>>, vector<1x128xf32>
    %33 = vector.broadcast %32 : vector<1x128xf32> to vector<128x128xf32>
    %34 = arith.mulf %31, %33 : vector<128x128xf32>
    %cst_13 = arith.constant 5.000000e-01 : f32
    %35 = vector.broadcast %cst_13 : f32 to vector<128x128xf32>
    %36 = arith.mulf %35, %34 : vector<128x128xf32>
    %cst_14 = arith.constant 4.471500e-02 : f32
    %37 = vector.broadcast %cst_14 : f32 to vector<128x128xf32>
    %38 = arith.mulf %37, %34 : vector<128x128xf32>
    %39 = arith.mulf %38, %34 : vector<128x128xf32>
    %40 = arith.mulf %39, %34 : vector<128x128xf32>
    %41 = arith.addf %34, %40 : vector<128x128xf32>
    %cst_15 = arith.constant 0.797884583 : f32
    %42 = vector.broadcast %cst_15 : f32 to vector<128x128xf32>
    %43 = arith.mulf %42, %41 : vector<128x128xf32>
    %44 = math.tanh %43 : vector<128x128xf32>
    %cst_16 = arith.constant 1.000000e+00 : f32
    %45 = vector.broadcast %cst_16 : f32 to vector<128x128xf32>
    %46 = arith.addf %45, %44 : vector<128x128xf32>
    %47 = arith.mulf %36, %46 : vector<128x128xf32>
    %48 = arith.mulf %47, %30 : vector<128x128xf32>
    %49 = arith.mulf %26, %48 : vector<128x128xf32>
    %50 = arith.truncf %49 : vector<128x128xf32> to vector<128x128xbf16>
    %c0_17 = arith.constant 0 : index
    %c0_18 = arith.constant 0 : index
    %51 = vector.load %arg4[%c0_17, %c0_18] : memref<128x32xbf16, #tpu.memory_space<vmem>>, vector<128x32xbf16>
    %cst_19 = arith.constant dense<0.000000e+00> : vector<128x32xf32>
    %52 = tpu.matmul %50, %51, %cst_19 {dimension_numbers = #tpu.dot_dimension_numbers<[1], [0], [0], [1], [0, 0, 1, 1], [], []>} : vector<128x128xbf16>, vector<128x32xbf16>, vector<128x32xf32> -> vector<128x32xf32>
    %53 = arith.addf %52, %0 : vector<128x32xf32>
    %c0_20 = arith.constant 0 : index
    %c0_21 = arith.constant 0 : index
    %54 = vector.load %arg13[%c0_20, %c0_21] : memref<128x32xf32, #tpu.memory_space<vmem>>, vector<128x32xf32>
    tpu.vector_store %arg13[%c0_20, %c0_21], %53 {strides = array<i32>} : memref<128x32xf32, #tpu.memory_space<vmem>>, vector<128x32xf32>,
    %c0_22 = arith.constant 0 : index
    %c0_23 = arith.constant 0 : index
    %55 = vector.load %arg2[%c0_22, %c0_23] : memref<128x96xf32, #tpu.memory_space<vmem>>, vector<128x96xf32>
    %56 = arith.mulf %55, %55 : vector<128x96xf32>
    %57 = arith.truncf %56 : vector<128x96xf32> to vector<128x96xbf16>
    %c0_24 = arith.constant 0 : index
    %c0_25 = arith.constant 0 : index
    %58 = vector.load %arg11[%c0_24, %c0_25] : memref<96x32xbf16, #tpu.memory_space<vmem>>, vector<96x32xbf16>
    %cst_26 = arith.constant dense<0.000000e+00> : vector<128x32xf32>
    %59 = tpu.matmul %57, %58, %cst_26 {dimension_numbers = #tpu.dot_dimension_numbers<[1], [0], [0], [1], [0, 0, 1, 1], [], []>} : vector<128x96xbf16>, vector<96x32xbf16>, vector<128x32xf32> -> vector<128x32xf32>
    %cst_27 = arith.constant 1.000000e-24 : f32
    %60 = vector.broadcast %cst_27 : f32 to vector<128x32xf32>
    %61 = arith.maximumf %59, %60 : vector<128x32xf32>
    %62 = math.rsqrt %61 : vector<128x32xf32>
    %63 = arith.mulf %59, %62 : vector<128x32xf32>
    %c0_28 = arith.constant 0 : index
    %c0_29 = arith.constant 0 : index
    %64 = vector.load %arg9[%c0_28, %c0_29] : memref<1x32xf32, #tpu.memory_space<vmem>>, vector<1x32xf32>
    %65 = vector.broadcast %64 : vector<1x32xf32> to vector<128x32xf32>
    %66 = arith.mulf %63, %65 : vector<128x32xf32>
    %cst_30 = arith.constant 5.000000e-01 : f32
    %67 = vector.broadcast %cst_30 : f32 to vector<128x32xf32>
    %68 = arith.mulf %67, %66 : vector<128x32xf32>
    %cst_31 = arith.constant 4.471500e-02 : f32
    %69 = vector.broadcast %cst_31 : f32 to vector<128x32xf32>
    %70 = arith.mulf %69, %66 : vector<128x32xf32>
    %71 = arith.mulf %70, %66 : vector<128x32xf32>
    %72 = arith.mulf %71, %66 : vector<128x32xf32>
    %73 = arith.addf %66, %72 : vector<128x32xf32>
    %cst_32 = arith.constant 0.797884583 : f32
    %74 = vector.broadcast %cst_32 : f32 to vector<128x32xf32>
    %75 = arith.mulf %74, %73 : vector<128x32xf32>
    %76 = math.tanh %75 : vector<128x32xf32>
    %cst_33 = arith.constant 1.000000e+00 : f32
    %77 = vector.broadcast %cst_33 : f32 to vector<128x32xf32>
    %78 = arith.addf %77, %76 : vector<128x32xf32>
    %79 = arith.mulf %68, %78 : vector<128x32xf32>
    %80 = arith.mulf %79, %62 : vector<128x32xf32>
    %81 = arith.truncf %80 : vector<128x32xf32> to vector<128x32xbf16>
    %c0_34 = arith.constant 0 : index
    %c0_35 = arith.constant 0 : index
    %82 = vector.load %arg12[%c0_34, %c0_35] : memref<32x96xbf16, #tpu.memory_space<vmem>>, vector<32x96xbf16>
    %cst_36 = arith.constant dense<0.000000e+00> : vector<128x96xf32>
    %83 = tpu.matmul %81, %82, %cst_36 {dimension_numbers = #tpu.dot_dimension_numbers<[1], [0], [0], [1], [0, 0, 1, 1], [], []>} : vector<128x32xbf16>, vector<32x96xbf16>, vector<128x96xf32> -> vector<128x96xf32>
    %84 = arith.mulf %55, %83 : vector<128x96xf32>
    %85 = arith.truncf %84 : vector<128x96xf32> to vector<128x96xbf16>
    %c0_37 = arith.constant 0 : index
    %c0_38 = arith.constant 0 : index
    %86 = vector.load %arg7[%c0_37, %c0_38] : memref<96x384xbf16, #tpu.memory_space<vmem>>, vector<96x384xbf16>
    %cst_39 = arith.constant dense<0.000000e+00> : vector<128x384xf32>
    %87 = tpu.matmul %85, %86, %cst_39 {dimension_numbers = #tpu.dot_dimension_numbers<[1], [0], [0], [1], [0, 0, 1, 1], [], []>} : vector<128x96xbf16>, vector<96x384xbf16>, vector<128x384xf32> -> vector<128x384xf32>
    %88 = vector.extract_strided_slice %87 {offsets = [0, 0], sizes = [128, 128], strides = [1, 1]} : vector<128x384xf32> to vector<128x128xf32>
    %89 = vector.extract_strided_slice %87 {offsets = [0, 128], sizes = [128, 128], strides = [1, 1]} : vector<128x384xf32> to vector<128x128xf32>
    %90 = vector.extract_strided_slice %87 {offsets = [0, 256], sizes = [128, 128], strides = [1, 1]} : vector<128x384xf32> to vector<128x128xf32>
    %91 = arith.mulf %88, %88 : vector<128x128xf32>
    %92 = arith.mulf %89, %89 : vector<128x128xf32>
    %93 = arith.addf %91, %92 : vector<128x128xf32>
    %94 = arith.mulf %90, %90 : vector<128x128xf32>
    %95 = arith.addf %93, %94 : vector<128x128xf32>
    %cst_40 = arith.constant 1.000000e-24 : f32
    %96 = vector.broadcast %cst_40 : f32 to vector<128x128xf32>
    %97 = arith.maximumf %95, %96 : vector<128x128xf32>
    %98 = math.rsqrt %97 : vector<128x128xf32>
    %99 = arith.mulf %95, %98 : vector<128x128xf32>
    %c0_41 = arith.constant 0 : index
    %c0_42 = arith.constant 0 : index
    %100 = vector.load %arg10[%c0_41, %c0_42] : memref<1x128xf32, #tpu.memory_space<vmem>>, vector<1x128xf32>
    %101 = vector.broadcast %100 : vector<1x128xf32> to vector<128x128xf32>
    %102 = arith.mulf %99, %101 : vector<128x128xf32>
    %cst_43 = arith.constant 5.000000e-01 : f32
    %103 = vector.broadcast %cst_43 : f32 to vector<128x128xf32>
    %104 = arith.mulf %103, %102 : vector<128x128xf32>
    %cst_44 = arith.constant 4.471500e-02 : f32
    %105 = vector.broadcast %cst_44 : f32 to vector<128x128xf32>
    %106 = arith.mulf %105, %102 : vector<128x128xf32>
    %107 = arith.mulf %106, %102 : vector<128x128xf32>
    %108 = arith.mulf %107, %102 : vector<128x128xf32>
    %109 = arith.addf %102, %108 : vector<128x128xf32>
    %cst_45 = arith.constant 0.797884583 : f32
    %110 = vector.broadcast %cst_45 : f32 to vector<128x128xf32>
    %111 = arith.mulf %110, %109 : vector<128x128xf32>
    %112 = math.tanh %111 : vector<128x128xf32>
    %cst_46 = arith.constant 1.000000e+00 : f32
    %113 = vector.broadcast %cst_46 : f32 to vector<128x128xf32>
    %114 = arith.addf %113, %112 : vector<128x128xf32>
    %115 = arith.mulf %104, %114 : vector<128x128xf32>
    %116 = arith.mulf %115, %98 : vector<128x128xf32>
    %117 = arith.mulf %88, %116 : vector<128x128xf32>
    %118 = arith.truncf %117 : vector<128x128xf32> to vector<128x128xbf16>
    %119 = arith.mulf %89, %116 : vector<128x128xf32>
    %120 = arith.truncf %119 : vector<128x128xf32> to vector<128x128xbf16>
    %121 = arith.mulf %90, %116 : vector<128x128xf32>
    %122 = arith.truncf %121 : vector<128x128xf32> to vector<128x128xbf16>
    %123 = tpu.concatenate %118, %120, %122 in 1 : vector<128x128xbf16>, vector<128x128xbf16>, vector<128x128xbf16> -> vector<128x384xbf16>
    %c0_47 = arith.constant 0 : index
    %c0_48 = arith.constant 0 : index
    %124 = vector.load %arg8[%c0_47, %c0_48] : memref<384x96xbf16, #tpu.memory_space<vmem>>, vector<384x96xbf16>
    %cst_49 = arith.constant dense<0.000000e+00> : vector<128x96xf32>
    %125 = tpu.matmul %123, %124, %cst_49 {dimension_numbers = #tpu.dot_dimension_numbers<[1], [0], [0], [1], [0, 0, 1, 1], [], []>} : vector<128x384xbf16>, vector<384x96xbf16>, vector<128x96xf32> -> vector<128x96xf32>
    %126 = arith.addf %125, %55 : vector<128x96xf32>
    %c0_50 = arith.constant 0 : index
    %c0_51 = arith.constant 0 : index
    %127 = vector.load %arg14[%c0_50, %c0_51] : memref<128x96xf32, #tpu.memory_space<vmem>>, vector<128x96xf32>
    tpu.vector_store %arg14[%c0_50, %c0_51], %126 {strides = array<i32>} : memref<128x96xf32, #tpu.memory_space<vmem>>, vector<128x96xf32>,
    return
  }
  func.func @transform_0(%arg0: i32) -> (i32, i32) {
    %c0_i32 = arith.constant 0 : i32
    %c0_i32_0 = arith.constant 0 : i32
    return %arg0, %c0_i32 : i32, i32
  }
  func.func @transform_1(%arg0: i32) -> (i32, i32) {
    %c0_i32 = arith.constant 0 : i32
    %c0_i32_0 = arith.constant 0 : i32
    return %arg0, %c0_i32 : i32, i32
  }
  func.func @transform_2(%arg0: i32) -> (i32, i32) {
    %c0_i32 = arith.constant 0 : i32
    %c0_i32_0 = arith.constant 0 : i32
    %c0_i32_1 = arith.constant 0 : i32
    return %c0_i32, %c0_i32_0 : i32, i32
  }
  func.func @transform_3(%arg0: i32) -> (i32, i32) {
    %c0_i32 = arith.constant 0 : i32
    %c0_i32_0 = arith.constant 0 : i32
    %c0_i32_1 = arith.constant 0 : i32
    return %c0_i32, %c0_i32_0 : i32, i32
  }
  func.func @transform_4(%arg0: i32) -> (i32, i32) {
    %c0_i32 = arith.constant 0 : i32
    %c0_i32_0 = arith.constant 0 : i32
    %c0_i32_1 = arith.constant 0 : i32
    return %c0_i32, %c0_i32_0 : i32, i32
  }
  func.func @transform_5(%arg0: i32) -> (i32, i32) {
    %c0_i32 = arith.constant 0 : i32
    %c0_i32_0 = arith.constant 0 : i32
    %c0_i32_1 = arith.constant 0 : i32
    return %c0_i32, %c0_i32_0 : i32, i32
  }
  func.func @transform_6(%arg0: i32) -> (i32, i32) {
    %c0_i32 = arith.constant 0 : i32
    %c0_i32_0 = arith.constant 0 : i32
    %c0_i32_1 = arith.constant 0 : i32
    return %c0_i32, %c0_i32_0 : i32, i32
  }
  func.func @transform_7(%arg0: i32) -> (i32, i32) {
    %c0_i32 = arith.constant 0 : i32
    %c0_i32_0 = arith.constant 0 : i32
    %c0_i32_1 = arith.constant 0 : i32
    return %c0_i32, %c0_i32_0 : i32, i32
  }
  func.func @transform_8(%arg0: i32) -> (i32, i32) {
    %c0_i32 = arith.constant 0 : i32
    %c0_i32_0 = arith.constant 0 : i32
    %c0_i32_1 = arith.constant 0 : i32
    return %c0_i32, %c0_i32_0 : i32, i32
  }
  func.func @transform_9(%arg0: i32) -> (i32, i32) {
    %c0_i32 = arith.constant 0 : i32
    %c0_i32_0 = arith.constant 0 : i32
    %c0_i32_1 = arith.constant 0 : i32
    return %c0_i32, %c0_i32_0 : i32, i32
  }
  func.func @transform_10(%arg0: i32) -> (i32, i32) {
    %c0_i32 = arith.constant 0 : i32
    %c0_i32_0 = arith.constant 0 : i32
    %c0_i32_1 = arith.constant 0 : i32
    return %c0_i32, %c0_i32_0 : i32, i32
  }
  func.func @transform_11(%arg0: i32) -> (i32, i32) {
    %c0_i32 = arith.constant 0 : i32
    %c0_i32_0 = arith.constant 0 : i32
    %c0_i32_1 = arith.constant 0 : i32
    return %c0_i32, %c0_i32_0 : i32, i32
  }
  func.func @transform_12(%arg0: i32) -> (i32, i32) {
    %c0_i32 = arith.constant 0 : i32
    %c0_i32_0 = arith.constant 0 : i32
    return %arg0, %c0_i32 : i32, i32
  }
  func.func @transform_13(%arg0: i32) -> (i32, i32) {
    %c0_i32 = arith.constant 0 : i32
    %c0_i32_0 = arith.constant 0 : i32
    return %arg0, %c0_i32 : i32, i32
  }
}

</mosaic_0001>

<bundles_post_ra>
// kernel: tpu_custom_call.1
= control target key start
LH: loop header
LB: loop body
LE: loop exit
PB: predicated region body
PF: predicated region fallthrough
CT: control target
= control target key end

     0   :  { %s4397_s25 = smov 0   ;;  %s6854_s0 = inlined_call_operand.vmem [shape: f32[1024,32], index: 0, kind: input, shape index: {}]   ;;  %s6855_s1 = inlined_call_operand.vmem [shape: f32[1024,96], index: 1, kind: input, shape index: {}]   ;;  %s6856_s2 = inlined_call_operand.vmem [shape: bf16[32,128], index: 2, kind: input, shape index: {}]   ;;  %s6857_s3 = inlined_call_operand.vmem [shape: bf16[128,32], index: 3, kind: input, shape index: {}]   ;;  %s6858_s4 = inlined_call_operand.vmem [shape: f32[1,32], index: 4, kind: input, shape index: {}]   ;;  %s6859_s5 = inlined_call_operand.vmem [shape: f32[1,128], index: 5, kind: input, shape index: {}]   ;;  %s6860_s6 = inlined_call_operand.vmem [shape: bf16[96,384], index: 6, kind: input, shape index: {}]   ;;  %s6861_s7 = inlined_call_operand.vmem [shape: bf16[384,96], index: 7, kind: input, shape index: {}]   ;;  %s6862_s8 = inlined_call_operand.vmem [shape: f32[1,32], index: 8, kind: input, shape index: {}]   ;;  %s6863_s9 = inlined_call_operand.vmem [shape: f32[1,128], index: 9, kind: input, shape index: {}]   ;;  %s6864_s10 = inlined_call_operand.vmem [shape: bf16[96,32], index: 10, kind: input, shape index: {}]   ;;  %s6865_s11 = inlined_call_operand.vmem [shape: bf16[32,96], index: 11, kind: input, shape index: {}]   ;;  %s6866_s12 = inlined_call_operand.vmem [shape: f32[1024,32], index: 12, kind: output, shape index: {0}]   ;;  %s6867_s13 = inlined_call_operand.vmem [shape: f32[1024,96], index: 13, kind: output, shape index: {1}]  }
   0x1 LB: > { %s3635_s26 = sadd.s32 4294967295, %s4325_s25   ;;  %p3639_p0 = scmp.ge.s32.totalorder %s4325_s25, 1  ;;  %s4325_s25 = sphi %s4397_s25, %s24_s25  }
   0x2   : > { %p402_p1 = scmp.lt.s32.totalorder %s4325_s25, 9 }
   0x4   : > { %p403_p2 = pnand %p3639_p0, %p402_p1 }
   0x5   : > { %s3640_s29 = sshll.u32 (!%p403_p2), %s3635_s26, 4 }
   0x6   : > { %406 = sbr.rel (%p403_p2) target bundleno = 1016 (0x3f8), region = 68  ;;  %p457_p3 = scmp.lt.s32.totalorder (!%p403_p2), %s3640_s29, 127 }
   0xb   : > { %v3939_v0 = vld [vmem:[%s6856_s2 + $0x8] sm:$0xff]  ;;  %v3938_v1 = vld [vmem:[%s6856_s2] sm:$0xff]  ;;  %s6881_s29 = smov (!%p457_p3, %s3640_s29), 127 }
   0xc   : > { %956 = vmatpush.bf16.msra.mxu0 %v3939_v0  ;;  %3998 = vmatpush.bf16.msra.mxu2 %v3939_v0  ;;  %s4411_s15 = sshll.u32 %s6881_s29, 3 }
   0xd   : > { %s4417_s18 = scalar_lea.vmem %s6854_s0, %s4411_s15  ;;  %s4924_s21 = scalar_lea.vmem %s6855_s1, %s4411_s15 }
   0xe   : > { %v4420_v2 = vld [vmem:[%s4417_s18] sm:$0xff]  ;;  %v4423_v3 = vld [vmem:[%s4417_s18 + $0x8] sm:$0xff]  ;;  %v4426_v4 = vld [vmem:[%s4417_s18 + $0x50] sm:$0xff]  ;;  %s5835_s22 = scalar_lea.vmem %s6866_s12, %s4411_s15  ;;  %s6802_s19 = scalar_lea.vmem %s6867_s13, %s4411_s15 }
   0xf   : > { %v4430_v5 = vmul.f32 %v4420_v2, %v4420_v2  ;;  %v4434_v6 = vmul.f32 %v4423_v3, %v4423_v3  ;;  %v4437_v7 = vld [vmem:[%s4417_s18 + $0x58] sm:$0xff]  ;;  %v4441_v8 = vmul.f32 %v4426_v4, %v4426_v4  ;;  %v4444_v9 = vld [vmem:[%s4417_s18 + $0x10] sm:$0xff]  ;;  %v4462_v14 = vld [vmem:[%s4417_s18 + $0x60] sm:$0xff] }
  0x10   : > { %957 = vmatpush.bf16.msra.mxu0 %v3938_v1  ;;  %3999 = vmatpush.bf16.msra.mxu2 %v3938_v1  ;;  %v4447_v10 = vld [vmem:[%s4417_s18 + $0x18] sm:$0xff]  ;;  %v4451_v11 = vmul.f32 %v4437_v7, %v4437_v7  ;;  %v4455_v12 = vmul.f32 %v4444_v9, %v4444_v9  ;;  %v4465_v15 = vld [vmem:[%s4417_s18 + $0x68] sm:$0xff]  ;;  %v4476_v19 = vmul.f32 %v4462_v14, %v4462_v14  ;;  %v4482_v21 = vld [vmem:[%s4417_s18 + $0x20] sm:$0xff] }
  0x11   : > { %v4459_v13 = vmul.f32 %v4447_v10, %v4447_v10  ;;  %v513_v16 = vmax.f32 %v4430_v5, 1e-24  ;;  %v4469_v17 = vmax.f32 %v4434_v6, 1e-24  ;;  %v4472_v18 = vmax.f32 %v4441_v8, 1e-24 }
  0x12   : > { %v4479_v20 = vmax.f32 %v4451_v11, 1e-24  ;;  %v4485_v22 = vmax.f32 %v4455_v12, 1e-24  ;;  %v4493_v24 = vmul.f32 %v4465_v15, %v4465_v15  ;;  %v4496_v25 = vld [vmem:[%s4417_s18 + $0x28] sm:$0xff]  ;;  %v4504_v27 = vmul.f32 %v4482_v21, %v4482_v21 }
  0x13   : > { %4014 = vrsqrt.f32 %v513_v16  ;;  %v4489_v23 = vmax.f32 %v4459_v13, 1e-24  ;;  %v4500_v26 = vmax.f32 %v4476_v19, 1e-24  ;;  %v4510_v28 = vmul.f32 %v4496_v25, %v4496_v25 }
  0x14   : > { %4016 = vrsqrt.f32 %v4469_v17  ;;  %v4514_v29 = vmax.f32 %v4493_v24, 1e-24  ;;  %vm535_vm0 = vweird.f32 %v513_v16  ;;  %v4518_v31 = vmax.f32 %v4504_v27, 1e-24 }
  0x15   : > { %4018 = vrsqrt.f32 %v4472_v18  ;;  %vm545_vm1 = vweird.f32 %v4469_v17  ;;  %vm635_vm2 = vweird.f32 %v4472_v18  ;;  %vm645_vm3 = vweird.f32 %v4479_v20 }
  0x16   : > { %4020 = vrsqrt.f32 %v4479_v20  ;;  %vm555_vm4 = vweird.f32 %v4485_v22  ;;  %vm565_vm5 = vweird.f32 %v4489_v23  ;;  %v4527_v36 = vmax.f32 %v4510_v28, 1e-24 }
  0x17   : > { %4022 = vrsqrt.f32 %v4485_v22 }
  0x18   : > { %4024 = vrsqrt.f32 %v4489_v23 }
  0x19   : > { %v4015_v30 = vpop.eup %4014  ;;  %4026 = vrsqrt.f32 %v4500_v26 }
  0x1a   : > { %v4017_v32 = vpop.eup %4016  ;;  %v530_v33 = vmul.f32 %v4015_v30, %v513_v16  ;;  %vm536_vm6 = vweird.f32 %v4015_v30  ;;  %4028 = vrsqrt.f32 %v4514_v29 }
  0x1b   : > { %v4019_v34 = vpop.eup %4018  ;;  %v540_v35 = vmul.f32 %v4017_v32, %v4469_v17  ;;  %vm546_vm7 = vweird.f32 %v4017_v32  ;;  %4030 = vrsqrt.f32 %v4518_v31  ;;  %vm4541_vm10 = vmor %vm535_vm0, %vm536_vm6 }
  0x1c   : > { %v4021_v37 = vpop.eup %4020  ;;  %v531_v38 = vmul.f32 %v4015_v30, %v530_v33  ;;  %v630_v39 = vmul.f32 %v4019_v34, %v4472_v18  ;;  %vm636_vm8 = vweird.f32 %v4019_v34  ;;  %vm4550_vm12 = vmor %vm545_vm1, %vm546_vm7  ;;  %v4560_v33 = vld [vmem:[%s6858_s4] ss:$0 sm:$0xff]  ;;  %4032 = vrsqrt.f32 %v4527_v36 }
  0x1d   : > { %v4023_v40 = vpop.eup %4022  ;;  %v541_v41 = vmul.f32 %v4017_v32, %v540_v35  ;;  %v640_v42 = vmul.f32 %v4021_v37, %v4479_v20  ;;  %vm646_vm9 = vweird.f32 %v4021_v37  ;;  %vm637_vm13 = vmor %vm635_vm2, %vm636_vm8  ;;  %vm655_vm2 = vweird.f32 %v4500_v26 }
  0x1e   : > { %v4025_v43 = vpop.eup %4024  ;;  %v532_v44 = vmul.f32 0.5, %v531_v38  ;;  %v631_v45 = vmul.f32 %v4019_v34, %v630_v39  ;;  %v550_v46 = vmul.f32 %v4023_v40, %v4485_v22  ;;  %vm556_vm11 = vweird.f32 %v4023_v40  ;;  %vm647_vm15 = vmor %vm645_vm3, %vm646_vm9 }
  0x1f   : > { %v4534_v47 = vpop.eup %4026  ;;  %v542_v48 = vmul.f32 0.5, %v541_v41  ;;  %v641_v49 = vmul.f32 %v4021_v37, %v640_v42  ;;  %v560_v50 = vmul.f32 %v4025_v43, %v4489_v23  ;;  %vm566_vm14 = vweird.f32 %v4025_v43  ;;  %vm557_vm0 = vmor %vm555_vm4, %vm556_vm11 }
  0x20   : > { %v533_v51 = vsub.f32 1.5, %v532_v44  ;;  %v632_v52 = vmul.f32 0.5, %v631_v45  ;;  %v551_v53 = vmul.f32 %v4023_v40, %v550_v46  ;;  %v650_v54 = vmul.f32 %v4534_v47, %v4500_v26  ;;  %v4545_v59 = vpop.eup %4028  ;;  %vm567_vm1 = vmor %vm565_vm5, %vm566_vm14 }
  0x21   : > { %v543_v56 = vsub.f32 1.5, %v542_v48  ;;  %v642_v57 = vmul.f32 0.5, %v641_v49  ;;  %v561_v58 = vmul.f32 %v4025_v43, %v560_v50  ;;  %v4555_v1 = vpop.eup %4030  ;;  %vm656_vm3 = vweird.f32 %v4534_v47 }
  0x22   : > { %v534_v60 = vmul.f32 %v4015_v30, %v533_v51  ;;  %v633_v62 = vsub.f32 1.5, %v632_v52  ;;  %v552_v63 = vmul.f32 0.5, %v551_v53  ;;  %v651_v0 = vmul.f32 %v4534_v47, %v650_v54  ;;  %vm657_vm4 = vmor %vm655_vm2, %vm656_vm3 }
  0x23   : > { %v544_v16 = vmul.f32 %v4017_v32, %v543_v56  ;;  %v643_v17 = vsub.f32 1.5, %v642_v57  ;;  %v562_v35 = vmul.f32 0.5, %v561_v58  ;;  %vm665_vm5 = vweird.f32 %v4514_v29 }
  0x24   : > { %v4567_v38 = vsel %vm4541_vm10, %v4015_v30, %v534_v60  ;;  %v634_v39 = vmul.f32 %v4019_v34, %v633_v62  ;;  %v553_v41 = vsub.f32 1.5, %v552_v63  ;;  %v652_v42 = vmul.f32 0.5, %v651_v0 }
  0x25   : > { %v4574_v44 = vsel %vm4550_vm12, %v4017_v32, %v544_v16  ;;  %v689_v18 = vmul.f32 %v4567_v38, %v4430_v5  ;;  %v644_v45 = vmul.f32 %v4021_v37, %v643_v17  ;;  %v563_v30 = vsub.f32 1.5, %v562_v35  ;;  %v4617_v17 = vpop.eup %4032 }
  0x26   : > { %v690_v46 = vmul.f32 %v4574_v44, %v4434_v6  ;;  %v4583_v20 = vsel %vm637_vm13, %v4019_v34, %v634_v39  ;;  %v554_v48 = vmul.f32 %v4023_v40, %v553_v41  ;;  %v653_v32 = vsub.f32 1.5, %v652_v42 }
  0x27   : > { %v709_v49 = vmul.f32 %v4560_v33, %v689_v18  ;;  %v4588_v50 = vsel %vm647_vm15, %v4021_v37, %v644_v45  ;;  %v699_v5 = vmul.f32 %v4583_v20, %v4441_v8  ;;  %v564_v22 = vmul.f32 %v4025_v43, %v563_v30 }
  0x28   : > { %v710_v51 = vmul.f32 %v4560_v33, %v690_v46  ;;  %v700_v6 = vmul.f32 %v4588_v50, %v4451_v11  ;;  %v4595_v34 = vsel %vm557_vm0, %v4023_v40, %v554_v48  ;;  %v660_v37 = vmul.f32 %v4545_v59, %v4514_v29 }
  0x29   : > { %v741_v23 = vmul.f32 0.044715, %v709_v49  ;;  %v719_v52 = vmul.f32 %v4560_v33, %v699_v5  ;;  %v4599_v53 = vsel %vm567_vm1, %v4025_v43, %v564_v22  ;;  %v691_v55 = vmul.f32 %v4595_v34, %v4455_v12 }
  0x2a   : > { %v742_v54 = vmul.f32 0.044715, %v710_v51  ;;  %v720_v8 = vmul.f32 %v4560_v33, %v700_v6  ;;  %v654_v11 = vmul.f32 %v4534_v47, %v653_v32  ;;  %v4607_v40 = vmul.f32 0.5, %v709_v49 }
  0x2b   : > { %v757_v56 = vmul.f32 %v741_v23, %v709_v49  ;;  %v751_v57 = vmul.f32 0.044715, %v719_v52  ;;  %v692_v58 = vmul.f32 %v4599_v53, %v4459_v13  ;;  %v4611_v43 = vmul.f32 0.5, %v710_v51 }
  0x2c   : > { %v758_v60 = vmul.f32 %v742_v54, %v710_v51  ;;  %v752_v61 = vmul.f32 0.044715, %v720_v8  ;;  %v711_v62 = vmul.f32 %v4560_v33, %v691_v55  ;;  %v4614_v0 = vmul.f32 0.5, %v719_v52 }
  0x2d   : > { %v773_v63 = vmul.f32 %v757_v56, %v709_v49  ;;  %v767_v16 = vmul.f32 %v751_v57, %v719_v52  ;;  %v712_v12 = vmul.f32 %v4560_v33, %v692_v58  ;;  %v4620_v42 = vmul.f32 0.5, %v720_v8 }
  0x2e   : > { %v774_v35 = vmul.f32 %v758_v60, %v710_v51  ;;  %v768_v39 = vmul.f32 %v752_v61, %v720_v8  ;;  %v743_v41 = vmul.f32 0.044715, %v711_v62  ;;  %v661_v6 = vmul.f32 %v4545_v59, %v660_v37 }
  0x2f   : > { %v789_v13 = vadd.f32 %v773_v63, %v709_v49  ;;  %v783_v18 = vmul.f32 %v767_v16, %v719_v52  ;;  %v744_v45 = vmul.f32 0.044715, %v712_v12  ;;  %v4625_v26 = vsel %vm657_vm4, %v4534_v47, %v654_v11 }
  0x30   : > { %v790_v30 = vadd.f32 %v774_v35, %v710_v51  ;;  %v784_v46 = vmul.f32 %v768_v39, %v720_v8  ;;  %v759_v48 = vmul.f32 %v743_v41, %v711_v62  ;;  %v662_v51 = vmul.f32 0.5, %v661_v6 }
  0x31   : > { %v805_v32 = vmul.f32 0.7978846, %v789_v13  ;;  %v799_v5 = vadd.f32 %v783_v18, %v719_v52  ;;  %v760_v22 = vmul.f32 %v744_v45, %v712_v12  ;;  %vm666_vm6 = vweird.f32 %v4545_v59  ;;  %v4650_v45 = vld [vmem:[%s4417_s18 + $0x70] sm:$0xff] }
  0x32   : > { %v806_v23 = vmul.f32 0.7978846, %v790_v30  ;;  %v800_v54 = vadd.f32 %v784_v46, %v720_v8  ;;  %v775_v55 = vmul.f32 %v759_v48, %v711_v62  ;;  %v663_v60 = vsub.f32 1.5, %v662_v51  ;;  %vm667_vm7 = vmor %vm665_vm5, %vm666_vm6 }
  0x33   : > { %4034 = vtanh.f32 %v805_v32  ;;  %v815_v49 = vmul.f32 0.7978846, %v799_v5  ;;  %v776_v56 = vmul.f32 %v760_v22, %v712_v12  ;;  %v701_v47 = vmul.f32 %v4625_v26, %v4476_v19 }
  0x34   : > { %4036 = vtanh.f32 %v806_v23  ;;  %v816_v57 = vmul.f32 0.7978846, %v800_v54  ;;  %v791_v58 = vadd.f32 %v775_v55, %v711_v62  ;;  %v570_v8 = vmul.f32 %v4555_v1, %v4518_v31 }
  0x35   : > { %4038 = vtanh.f32 %v815_v49  ;;  %v792_v52 = vadd.f32 %v776_v56, %v712_v12  ;;  %v727_v11 = vmul.f32 0.5, %v711_v62  ;;  %v728_v61 = vmul.f32 0.5, %v712_v12 }
  0x36   : > { %4040 = vtanh.f32 %v816_v57  ;;  %v807_v37 = vmul.f32 0.7978846, %v791_v58  ;;  %v664_v16 = vmul.f32 %v4545_v59, %v663_v60  ;;  %v4635_v29 = vmul.f32 %v4560_v33, %v701_v47 }
  0x37   : > { %v808_v63 = vmul.f32 0.7978846, %v792_v52  ;;  %v571_v35 = vmul.f32 %v4555_v1, %v570_v8  ;;  %v580_v39 = vmul.f32 %v4617_v17, %v4527_v36  ;;  %vm575_vm8 = vweird.f32 %v4518_v31 }
  0x38   : > { %4042 = vtanh.f32 %v807_v37  ;;  %v4641_v19 = vsel %vm667_vm7, %v4545_v59, %v664_v16  ;;  %vm576_vm9 = vweird.f32 %v4555_v1  ;;  %vm925_vm10 = vcmask 261120  }
  0x39   : > { %v4035_v41 = vpop.eup %4034  ;;  %4044 = vtanh.f32 %v808_v63  ;;  %v702_v13 = vmul.f32 %v4641_v19, %v4493_v24  ;;  %v753_v18 = vmul.f32 0.044715, %v4635_v29  ;;  %vm585_vm11 = vweird.f32 %v4527_v36  ;;  %vm577_vm13 = vmor %vm575_vm8, %vm576_vm9 }
  0x3a   : > { %v4037_v62 = vpop.eup %4036  ;;  %v837_v12 = vadd.f32 1.0, %v4035_v41  ;;  %v572_v59 = vmul.f32 0.5, %v571_v35  ;;  %v581_v48 = vmul.f32 %v4617_v17, %v580_v39  ;;  %vm586_vm12 = vweird.f32 %v4617_v17 }
  0x3b   : > { %v4039_v30 = vpop.eup %4038  ;;  %v838_v46 = vadd.f32 1.0, %v4037_v62  ;;  %v4656_v6 = vmul.f32 %v4560_v33, %v702_v13  ;;  %v769_v24 = vmul.f32 %v753_v18, %v4635_v29  ;;  %v4662_v49 = vmul.f32 %v4650_v45, %v4650_v45  ;;  %vm587_vm14 = vmor %vm585_vm11, %vm586_vm12 }
  0x3c   : > { %v4041_v32 = vpop.eup %4040  ;;  %v853_v5 = vmul.f32 %v837_v12, %v4607_v40  ;;  %v847_v22 = vadd.f32 1.0, %v4039_v30  ;;  %v573_v55 = vsub.f32 1.5, %v572_v59  ;;  %v582_v58 = vmul.f32 0.5, %v581_v48  ;;  %v4686_v12 = vld [vmem:[%s4417_s18 + $0x78] sm:$0xff] }
  0x3d   : > { %v854_v23 = vmul.f32 %v838_v46, %v4611_v43  ;;  %v848_v54 = vadd.f32 1.0, %v4041_v32  ;;  %v754_v40 = vmul.f32 0.044715, %v4656_v6  ;;  %v785_v47 = vmul.f32 %v769_v24, %v4635_v29  ;;  %v4697_v30 = vld [vmem:[%s4417_s18 + $0x38] sm:$0xff] }
  0x3e   : > { %v4043_v56 = vpop.eup %4042  ;;  %v869_v51 = vmul.f32 %v853_v5, %v4567_v38  ;;  %v863_v57 = vmul.f32 %v847_v22, %v4614_v0  ;;  %v574_v41 = vmul.f32 %v4555_v1, %v573_v55  ;;  %v4712_v59 = vmul.f32 %v4686_v12, %v4686_v12  ;;  %v3953_v22 = vld [vmem:[%s6864_s10 + $0x28] sm:$0xff] }
  0x3f   : > { %v4045_v52 = vpop.eup %4044  ;;  %v870_v60 = vmul.f32 %v854_v23, %v4574_v44  ;;  %v864_v37 = vmul.f32 %v848_v54, %v4620_v42  ;;  %v839_v43 = vadd.f32 1.0, %v4043_v56  ;;  %v770_v38 = vmul.f32 %v754_v40, %v4656_v6  ;;  %v4740_v23 = vld [vmem:[%s4417_s18 + $0x40] sm:$0xff]  ;;  %1655 = vmatpush.bf16.msrb.mxu2 %v3953_v22 }
  0x40   : > { %v885_v8 = vmul.f32 %v869_v51, %v4420_v2  ;;  %v879_v63 = vmul.f32 %v863_v57, %v4583_v20  ;;  %v840_v16 = vadd.f32 1.0, %v4045_v52  ;;  %v801_v44 = vadd.f32 %v785_v47, %v4635_v29 }
  0x41   : > { %v886_v0 = vmul.f32 %v870_v60, %v4423_v3  ;;  %v880_v35 = vmul.f32 %v864_v37, %v4588_v50  ;;  %v855_v39 = vmul.f32 %v839_v43, %v727_v11  ;;  %v786_v42 = vmul.f32 %v770_v38, %v4656_v6 }
  0x42   : > { %v895_v2 = vmul.f32 %v879_v63, %v4426_v4  ;;  %v856_v20 = vmul.f32 %v840_v16, %v728_v61  ;;  %v817_v62 = vmul.f32 0.7978846, %v801_v44  ;;  %v4691_v18 = vsel %vm577_vm13, %v4555_v1, %v574_v41  ;;  %v4694_v61 = vld [vmem:[%s4417_s18 + $0x30] sm:$0xff] }
  0x43   : > { %v901_v3 = vpack.c.bf16 %v886_v0, %v885_v8  ;;  %v896_v50 = vmul.f32 %v880_v35, %v4437_v7  ;;  %v871_v11 = vmul.f32 %v855_v39, %v4595_v34  ;;  %v802_v31 = vadd.f32 %v786_v42, %v4656_v6 }
  0x44   : > { %v872_v13 = vmul.f32 %v856_v20, %v4599_v53  ;;  %v583_v4 = vsub.f32 1.5, %v582_v58  ;;  %4046 = vtanh.f32 %v817_v62  ;;  %v693_v34 = vmul.f32 %v4691_v18, %v4504_v27  ;;  %v4758_v58 = vld [vmem:[%s4417_s18 + $0x48] sm:$0xff] }
  0x45   : > { %3656 = vmatmul.msk.bf16.vlgmr.msra.gmra.mxu0 %vm925_vm10, %v901_v3  ;;  %v906_v7 = vpack.c.bf16 %v896_v50, %v895_v2  ;;  %v4707_v1 = vmul.f32 %v871_v11, %v4444_v9  ;;  %v818_v53 = vmul.f32 0.7978846, %v802_v31  ;;  %v4717_v36 = vmax.f32 %v4662_v49, 1e-24 }
  0x46   : > { %v584_v46 = vmul.f32 %v4617_v17, %v583_v4  ;;  %v713_v48 = vmul.f32 %v4560_v33, %v693_v34  ;;  %v4721_v27 = vmul.f32 %v4694_v61, %v4694_v61  ;;  %v4725_v9 = vmul.f32 %v4697_v30, %v4697_v30 }
  0x47   : > { %3661 = vmatmul.msk.bf16.vlgmr.msra.gmra.mxu2 %vm925_vm10, %v906_v7  ;;  %v4728_v32 = vmul.f32 %v872_v13, %v4447_v10  ;;  %4048 = vtanh.f32 %v818_v53  ;;  %v4737_v24 = vmax.f32 %v4712_v59, 1e-24  ;;  %v737_v10 = vmul.f32 0.5, %v4635_v29 }
  0x48   : > { %v4731_v5 = vsel %vm587_vm14, %v4617_v17, %v584_v46  ;;  %v745_v55 = vmul.f32 0.044715, %v713_v48  ;;  %4050 = vrsqrt.f32 %v4717_v36  ;;  %v3952_v17 = vld [vmem:[%s6864_s10 + $0x20] sm:$0xff]  ;;  %v4751_v56 = vmax.f32 %v4721_v27, 1e-24 }
  0x49   : > { %v694_v54 = vmul.f32 %v4731_v5, %v4510_v28  ;;  %4052 = vrsqrt.f32 %v4737_v24  ;;  %v4755_v28 = vmax.f32 %v4725_v9, 1e-24  ;;  %v4762_v29 = vmul.f32 %v4740_v23, %v4740_v23  ;;  %1656 = vmatpush.bf16.msrb.mxu2 %v3952_v17 }
  0x4a   : > { %v4047_v51 = vpop.eup %4046  ;;  %v761_v40 = vmul.f32 %v745_v55, %v713_v48  ;;  %v902_v52 = vpack.c.bf16 %v4728_v32, %v4707_v1  ;;  %v738_v60 = vmul.f32 0.5, %v4656_v6  ;;  %4054 = vrsqrt.f32 %v4751_v56 }
  0x4b   : > { %v714_v57 = vmul.f32 %v4560_v33, %v694_v54  ;;  %v849_v37 = vadd.f32 1.0, %v4047_v51  ;;  %v4768_v43 = vmul.f32 0.5, %v713_v48  ;;  %4056 = vrsqrt.f32 %v4755_v28 }
  0x4c   : > { %v777_v8 = vmul.f32 %v761_v40, %v713_v48  ;;  %vm675_vm15 = vweird.f32 %v4717_v36  ;;  %v4774_v38 = vmul.f32 %v4758_v58, %v4758_v58  ;;  %v4777_v6 = vmax.f32 %v4762_v29, 1e-24 }
  0x4d   : > { %v746_v47 = vmul.f32 0.044715, %v714_v57  ;;  %v4049_v63 = vpop.eup %4048  ;;  %v865_v16 = vmul.f32 %v849_v37, %v737_v10  ;;  %vm685_vm0 = vweird.f32 %v4737_v24  ;;  %vm595_vm1 = vweird.f32 %v4751_v56 }
  0x4e   : > { %v4051_v0 = vpop.eup %4050  ;;  %v850_v35 = vadd.f32 1.0, %v4049_v63  ;;  %v793_v44 = vadd.f32 %v777_v8, %v713_v48  ;;  %4058 = vrsqrt.f32 %v4777_v6  ;;  %v4788_v31 = vmul.f32 0.5, %v714_v57 }
  0x4f   : > { %v762_v39 = vmul.f32 %v746_v47, %v714_v57  ;;  %v4053_v2 = vpop.eup %4052  ;;  %v881_v20 = vmul.f32 %v865_v16, %v4625_v26  ;;  %v670_v42 = vmul.f32 %v4051_v0, %v4717_v36  ;;  %v4791_v26 = vmax.f32 %v4774_v38, 1e-24 }
  0x50   : > { %v866_v41 = vmul.f32 %v850_v35, %v738_v60  ;;  %v809_v50 = vmul.f32 0.7978846, %v793_v44  ;;  %v680_v11 = vmul.f32 %v4053_v2, %v4737_v24  ;;  %v4785_v62 = vpop.eup %4054  ;;  %vm676_vm2 = vweird.f32 %v4051_v0 }
  0x51   : > { %v778_v3 = vmul.f32 %v762_v39, %v714_v57  ;;  %v897_v13 = vmul.f32 %v881_v20, %v4462_v14  ;;  %v671_v4 = vmul.f32 %v4051_v0, %v670_v42  ;;  %v4057_v7 = vpop.eup %4056  ;;  %v590_v48 = vmul.f32 %v4785_v62, %v4751_v56  ;;  %vm677_vm4 = vmor %vm675_vm15, %vm676_vm2 }
  0x52   : > { %v882_v34 = vmul.f32 %v866_v41, %v4641_v19  ;;  %4060 = vtanh.f32 %v809_v50  ;;  %v681_v53 = vmul.f32 %v4053_v2, %v680_v11  ;;  %v600_v32 = vmul.f32 %v4057_v7, %v4755_v28 }
  0x53   : > { %v794_v1 = vadd.f32 %v778_v3, %v714_v57  ;;  %v672_v46 = vmul.f32 0.5, %v671_v4  ;;  %vm686_vm3 = vweird.f32 %v4053_v2  ;;  %v591_v10 = vmul.f32 %v4785_v62, %v590_v48 }
  0x54   : > { %v898_v14 = vmul.f32 %v882_v34, %v4465_v15  ;;  %v682_v54 = vmul.f32 0.5, %v681_v53  ;;  %v4799_v55 = vpop.eup %4058  ;;  %v601_v17 = vmul.f32 %v4057_v7, %v600_v32  ;;  %4062 = vrsqrt.f32 %v4791_v26  ;;  %vm687_vm5 = vmor %vm685_vm0, %vm686_vm3  ;;  %v3951_v53 = vld [vmem:[%s6864_s10 + $0x18] sm:$0xff] }
  0x55   : > { %3657 = vmatmul.msk.bf16.gmra.mxu0 %vm925_vm10, %v902_v52  ;;  %v810_v22 = vmul.f32 0.7978846, %v794_v1  ;;  %v673_v19 = vsub.f32 1.5, %v672_v46  ;;  %v610_v15 = vmul.f32 %v4799_v55, %v4777_v6  ;;  %v592_v52 = vmul.f32 0.5, %v591_v10  ;;  %1657 = vmatpush.bf16.msrb.mxu2 %v3951_v53 }
  0x56   : > { %v907_v51 = vpack.c.bf16 %v898_v14, %v897_v13  ;;  %v683_v57 = vsub.f32 1.5, %v682_v54  ;;  %vm596_vm6 = vweird.f32 %v4785_v62  ;;  %v602_v60 = vmul.f32 0.5, %v601_v17 }
  0x57   : > { %4064 = vtanh.f32 %v810_v22  ;;  %v674_v40 = vmul.f32 %v4051_v0, %v673_v19  ;;  %vm605_vm7 = vweird.f32 %v4755_v28  ;;  %vm606_vm8 = vweird.f32 %v4057_v7  ;;  %vm4822_vm9 = vmor %vm595_vm1, %vm596_vm6 }
  0x58   : > { %v4061_v37 = vpop.eup %4060  ;;  %3662 = vmatmul.msk.bf16.gmra.mxu2 %vm925_vm10, %v907_v51  ;;  %v684_v47 = vmul.f32 %v4053_v2, %v683_v57  ;;  %v611_v36 = vmul.f32 %v4799_v55, %v610_v15  ;;  %v593_v16 = vsub.f32 1.5, %v592_v52  ;;  %v603_v35 = vsub.f32 1.5, %v602_v60  ;;  %vm607_vm12 = vmor %vm605_vm7, %vm606_vm8 }
  0x59   : > { %v841_v8 = vadd.f32 1.0, %v4061_v37  ;;  %v4814_v63 = vsel %vm677_vm4, %v4051_v0, %v674_v40  ;;  %vm615_vm11 = vweird.f32 %v4777_v6  ;;  %vm616_vm13 = vweird.f32 %v4799_v55  ;;  %v3949_v40 = vld [vmem:[%s6864_s10 + $0x8] sm:$0xff] }
  0x5a   : > { %v4816_v24 = vsel %vm687_vm5, %v4053_v2, %v684_v47  ;;  %v703_v39 = vmul.f32 %v4814_v63, %v4662_v49  ;;  %v612_v20 = vmul.f32 0.5, %v611_v36  ;;  %v4827_v42 = vpop.eup %4062  ;;  %v594_v41 = vmul.f32 %v4785_v62, %v593_v16  ;;  %vm617_vm15 = vmor %vm615_vm11, %vm616_vm13 }
  0x5b   : > { %v857_v0 = vmul.f32 %v841_v8, %v4768_v43  ;;  %v704_v2 = vmul.f32 %v4816_v24, %v4712_v59  ;;  %v604_v3 = vmul.f32 %v4057_v7, %v603_v35  ;;  %v620_v43 = vmul.f32 %v4827_v42, %v4791_v26 }
  0x5c   : > { %v4837_v56 = vmul.f32 %v4560_v33, %v703_v39  ;;  %v613_v50 = vsub.f32 1.5, %v612_v20  ;;  %v4849_v28 = vsel %vm4822_vm9, %v4785_v62, %v594_v41  ;;  %vm625_vm14 = vweird.f32 %v4791_v26 }
  0x5d   : > { %v4065_v49 = vpop.eup %4064  ;;  %v873_v59 = vmul.f32 %v857_v0, %v4691_v18  ;;  %v4844_v13 = vmul.f32 %v4560_v33, %v704_v2  ;;  %v4852_v34 = vsel %vm607_vm12, %v4057_v7, %v604_v3  ;;  %v695_v1 = vmul.f32 %v4849_v28, %v4721_v27  ;;  %v3950_v27 = vld [vmem:[%s6864_s10 + $0x10] sm:$0xff] }
  0x5e   : > { %v842_v11 = vadd.f32 1.0, %v4065_v49  ;;  %v755_v4 = vmul.f32 0.044715, %v4837_v56  ;;  %v696_v48 = vmul.f32 %v4852_v34, %v4725_v9  ;;  %v614_v32 = vmul.f32 %v4799_v55, %v613_v50  ;;  %1658 = vmatpush.bf16.msrb.mxu2 %v3950_v27 }
  0x5f   : > { %v756_v46 = vmul.f32 0.044715, %v4844_v13  ;;  %v715_v7 = vmul.f32 %v4560_v33, %v695_v1  ;;  %v889_v14 = vmul.f32 %v873_v59, %v4482_v21  ;;  %v621_v22 = vmul.f32 %v4827_v42, %v620_v43 }
  0x60   : > { %v858_v18 = vmul.f32 %v842_v11, %v4788_v31  ;;  %v771_v62 = vmul.f32 %v755_v4, %v4837_v56  ;;  %v716_v19 = vmul.f32 %v4560_v33, %v696_v48  ;;  %vm626_vm0 = vweird.f32 %v4827_v42 }
  0x61   : > { %v772_v9 = vmul.f32 %v756_v46, %v4844_v13  ;;  %v747_v10 = vmul.f32 0.044715, %v715_v7  ;;  %v4884_v51 = vsel %vm617_vm15, %v4799_v55, %v614_v32  ;;  %vm627_vm1 = vmor %vm625_vm14, %vm626_vm0  ;;  %v739_v43 = vmul.f32 0.5, %v4837_v56 }
  0x62   : > { %v874_v31 = vmul.f32 %v858_v18, %v4731_v5  ;;  %v787_v54 = vmul.f32 %v771_v62, %v4837_v56  ;;  %v622_v5 = vmul.f32 0.5, %v621_v22  ;;  %v748_v57 = vmul.f32 0.044715, %v716_v19  ;;  %1659 = vmatpush.bf16.msrb.mxu2 %v3949_v40 }
  0x63   : > { %v788_v6 = vmul.f32 %v772_v9, %v4844_v13  ;;  %v763_v15 = vmul.f32 %v747_v10, %v715_v7  ;;  %v740_v4 = vmul.f32 0.5, %v4844_v13  ;;  %v731_v48 = vmul.f32 0.5, %v715_v7 }
  0x64   : > { %v890_v17 = vmul.f32 %v874_v31, %v4496_v25  ;;  %v803_v21 = vadd.f32 %v787_v54, %v4837_v56  ;;  %v623_v37 = vsub.f32 1.5, %v622_v5  ;;  %v697_v25 = vmul.f32 %v4884_v51, %v4762_v29  ;;  %v3948_v29 = vld [vmem:[%s6864_s10] sm:$0xff] }
  0x65   : > { %v804_v60 = vadd.f32 %v788_v6, %v4844_v13  ;;  %v764_v55 = vmul.f32 %v748_v57, %v716_v19  ;;  %v779_v36 = vmul.f32 %v763_v15, %v715_v7  ;;  %v732_v56 = vmul.f32 0.5, %v716_v19 }
  0x66   : > { %v903_v52 = vpack.c.bf16 %v890_v17, %v889_v14  ;;  %v819_v47 = vmul.f32 0.7978846, %v803_v21  ;;  %v624_v16 = vmul.f32 %v4827_v42, %v623_v37  ;;  %v717_v35 = vmul.f32 %v4560_v33, %v697_v25  ;;  %1660 = vmatpush.bf16.msrb.mxu2 %v3948_v29  ;;  %v1540_v37 = vld [vmem:[%s4924_s21] sm:$0xff]  ;;  %v1542_v29 = vld [vmem:[%s4924_s21 + $0x10] sm:$0xff] }
  0x67   : > { %v820_v8 = vmul.f32 0.7978846, %v804_v60  ;;  %v780_v39 = vmul.f32 %v764_v55, %v716_v19  ;;  %v795_v44 = vadd.f32 %v779_v36, %v715_v7  ;;  %vm1628_vm2 = vcmask 785408  }
  0x68   : > { %3658 = vmatmul.msk.bf16.gmra.mxu0 %vm925_vm10, %v903_v52  ;;  %4066 = vtanh.f32 %v819_v47  ;;  %v4904_v20 = vsel %vm627_vm1, %v4827_v42, %v624_v16  ;;  %v749_v26 = vmul.f32 0.044715, %v717_v35  ;;  %v1556_v47 = vmul.f32 %v1540_v37, %v1540_v37  ;;  %v3943_v37 = vld [vmem:[%s6857_s3 + $0x18] sm:$0xff] }
  0x69   : > { %4068 = vtanh.f32 %v820_v8  ;;  %v796_v0 = vadd.f32 %v780_v39, %v716_v19  ;;  %v811_v2 = vmul.f32 0.7978846, %v795_v44  ;;  %v698_v41 = vmul.f32 %v4904_v20, %v4774_v38 }
  0x6a   : > { %v765_v3 = vmul.f32 %v749_v26, %v717_v35  ;;  %v1543_v26 = vld [vmem:[%s4924_s21 + $0x18] sm:$0xff] }
  0x6b   : > { %v812_v49 = vmul.f32 0.7978846, %v796_v0  ;;  %4070 = vtanh.f32 %v811_v2  ;;  %v718_v50 = vmul.f32 %v4560_v33, %v698_v41  ;;  %v1558_v0 = vmul.f32 %v1542_v29, %v1542_v29  ;;  %v1545_v2 = vld [vmem:[%s4924_s21 + $0x28] sm:$0xff]  ;;  %v1552_v29 = vld [vmem:[%s4924_s21 + $0x60] sm:$0xff] }
  0x6c   : > { %v781_v11 = vmul.f32 %v765_v3, %v717_v35  ;;  %v1561_v41 = vmul.f32 %v1545_v2, %v1545_v2 }
  0x6d   : > { %4072 = vtanh.f32 %v812_v49  ;;  %v750_v42 = vmul.f32 0.044715, %v718_v50  ;;  %v1546_v49 = vld [vmem:[%s4924_s21 + $0x30] sm:$0xff] }
  0x6e   : > { %v4067_v59 = vpop.eup %4066  ;;  %v797_v18 = vadd.f32 %v781_v11, %v717_v35 }
  0x6f   : > { %v4069_v1 = vpop.eup %4068  ;;  %v851_v53 = vadd.f32 1.0, %v4067_v59  ;;  %v766_v62 = vmul.f32 %v750_v42, %v718_v50  ;;  %v1549_v42 = vld [vmem:[%s4924_s21 + $0x48] sm:$0xff] }
  0x70   : > { %v852_v46 = vadd.f32 1.0, %v4069_v1  ;;  %v813_v27 = vmul.f32 0.7978846, %v797_v18 }
  0x71   : > { %v867_v38 = vmul.f32 %v851_v53, %v739_v43  ;;  %v4071_v32 = vpop.eup %4070  ;;  %v782_v14 = vmul.f32 %v766_v62, %v718_v50  ;;  %v1562_v43 = vmul.f32 %v1546_v49, %v1546_v49 }
  0x72   : > { %v868_v31 = vmul.f32 %v852_v46, %v740_v4  ;;  %v843_v9 = vadd.f32 1.0, %v4071_v32  ;;  %4074 = vtanh.f32 %v813_v27  ;;  %v1548_v4 = vld [vmem:[%s4924_s21 + $0x40] sm:$0xff]  ;;  %v1565_v46 = vmul.f32 %v1549_v42, %v1549_v42  ;;  %v3947_v27 = vld [vmem:[%s6857_s3 + $0x38] sm:$0xff] }
  0x73   : > { %v883_v33 = vmul.f32 %v867_v38, %v4814_v63  ;;  %v4073_v22 = vpop.eup %4072  ;;  %v798_v54 = vadd.f32 %v782_v14, %v718_v50  ;;  %v1564_v18 = vmul.f32 %v1548_v4, %v1548_v4  ;;  %1475 = vmatpush.bf16.msra.mxu1 %v3947_v27 }
  0x74   : > { %v884_v13 = vmul.f32 %v868_v31, %v4816_v24  ;;  %v844_v17 = vadd.f32 1.0, %v4073_v22  ;;  %v859_v6 = vmul.f32 %v843_v9, %v731_v48  ;;  %v733_v24 = vmul.f32 0.5, %v717_v35  ;;  %v1550_v22 = vld [vmem:[%s4924_s21 + $0x50] sm:$0xff] }
  0x75   : > { %v899_v10 = vmul.f32 %v883_v33, %v4650_v45  ;;  %v814_v5 = vmul.f32 0.7978846, %v798_v54  ;;  %v1576_v38 = vpack.c.bf16 %v1565_v46, %v1564_v18 }
  0x76   : > { %v900_v7 = vmul.f32 %v884_v13, %v4686_v12  ;;  %v860_v21 = vmul.f32 %v844_v17, %v732_v56  ;;  %v875_v57 = vmul.f32 %v859_v6, %v4849_v28  ;;  %v734_v28 = vmul.f32 0.5, %v718_v50  ;;  %v1547_v50 = vld [vmem:[%s4924_s21 + $0x38] sm:$0xff]  ;;  %v3946_v56 = vld [vmem:[%s6857_s3 + $0x30] sm:$0xff]  ;;  %v3945_v17 = vld [vmem:[%s6857_s3 + $0x28] sm:$0xff] }
  0x77   : > { %4076 = vtanh.f32 %v814_v5  ;;  %v1563_v11 = vmul.f32 %v1547_v50, %v1547_v50  ;;  %v1551_v13 = vld [vmem:[%s4924_s21 + $0x58] sm:$0xff]  ;;  %1476 = vmatpush.bf16.msra.mxu1 %v3946_v56 }
  0x78   : > { %v908_v15 = vpack.c.bf16 %v900_v7, %v899_v10  ;;  %v4075_v63 = vpop.eup %4074  ;;  %v876_v19 = vmul.f32 %v860_v21, %v4852_v34  ;;  %v891_v40 = vmul.f32 %v875_v57, %v4694_v61  ;;  %v1566_v7 = vmul.f32 %v1550_v22, %v1550_v22 }
  0x79   : > { %v845_v52 = vadd.f32 1.0, %v4075_v63  ;;  %v1575_v59 = vpack.c.bf16 %v1563_v11, %v1562_v43  ;;  %v1567_v5 = vmul.f32 %v1551_v13, %v1551_v13 }
  0x7a   : > { %3663 = vmatmul.msk.bf16.gmra.mxu2 %vm925_vm10, %v908_v15  ;;  %v892_v45 = vmul.f32 %v876_v19, %v4697_v30  ;;  %v1541_v30 = vld [vmem:[%s4924_s21 + $0x8] sm:$0xff] }
  0x7b   : > { %v861_v61 = vmul.f32 %v845_v52, %v733_v24  ;;  %v1557_v55 = vmul.f32 %v1541_v30, %v1541_v30  ;;  %1477 = vmatpush.bf16.msra.mxu1 %v3945_v17  ;;  %v1577_v24 = vpack.c.bf16 %v1567_v5, %v1566_v7  ;;  %v1554_v5 = vld [vmem:[%s4924_s21 + $0x70] sm:$0xff] }
  0x7c   : > { %v904_v12 = vpack.c.bf16 %v892_v45, %v891_v40  ;;  %v3944_v45 = vld [vmem:[%s6857_s3 + $0x20] sm:$0xff] }
  0x7d   : > { %v4077_v60 = vpop.eup %4076  ;;  %v877_v36 = vmul.f32 %v861_v61, %v4884_v51  ;;  %v1572_v16 = vpack.c.bf16 %v1557_v55, %v1556_v47  ;;  %v1559_v51 = vmul.f32 %v1543_v26, %v1543_v26  ;;  %v1553_v26 = vld [vmem:[%s4924_s21 + $0x68] sm:$0xff] }
  0x7e   : > { %3659 = vmatmul.msk.bf16.gmra.mxu0 %vm925_vm10, %v904_v12  ;;  %v846_v34 = vadd.f32 1.0, %v4077_v60  ;;  %v4987_v60 = vld [vmem:[%s6859_s5] ss:$0 sm:$0xff]  ;;  %v1569_v2 = vmul.f32 %v1553_v26, %v1553_v26 }
  0x7f   : > { %v893_v35 = vmul.f32 %v877_v36, %v4740_v23  ;;  %v1544_v23 = vld [vmem:[%s4924_s21 + $0x20] sm:$0xff]  ;;  %1478 = vmatpush.bf16.msra.mxu1 %v3944_v45 }
  0x80   : > { %v862_v25 = vmul.f32 %v846_v34, %v734_v28 }
  0x82   : > { %v878_v8 = vmul.f32 %v862_v25, %v4904_v20  ;;  %v1573_v20 = vpack.c.bf16 %v1559_v51, %v1558_v0 }
  0x83   : > { %1479 = vmatpush.bf16.msra.mxu1 %v3943_v37 }
  0x84   : > { %v894_v39 = vmul.f32 %v878_v8, %v4758_v58  ;;  %v1560_v58 = vmul.f32 %v1544_v23, %v1544_v23  ;;  %v1568_v23 = vmul.f32 %v1552_v29, %v1552_v29 }
  0x86   : > { %v905_v44 = vpack.c.bf16 %v894_v39, %v893_v35  ;;  %v1574_v3 = vpack.c.bf16 %v1561_v41, %v1560_v58  ;;  %v3942_v35 = vld [vmem:[%s6857_s3 + $0x10] sm:$0xff]  ;;  %v3941_v58 = vld [vmem:[%s6857_s3 + $0x8] sm:$0xff]  ;;  %v1578_v42 = vpack.c.bf16 %v1569_v2, %v1568_v23 }
  0x87   : > { %1480 = vmatpush.bf16.msra.mxu1 %v3942_v35 }
  0x8a   : > { %3720 = vmatmul.msk.bf16.vlgmr.msrb.gmra.mxu2 %vm1628_vm2, %v1572_v16 }
  0x8b   : > { %1481 = vmatpush.bf16.msra.mxu1 %v3941_v58 }
  0x8e   : > { %3660 = vmatmul.msk.bf16.gmra.mxu0 %vm925_vm10, %v905_v44 }
  0x9a   : > { %3721 = vmatmul.msk.bf16.gmra.mxu2 %vm1628_vm2, %v1573_v20 }
  0xaa   : > { %3722 = vmatmul.msk.bf16.gmra.mxu2 %vm1628_vm2, %v1574_v3 }
  0xba   : > { %3723 = vmatmul.msk.bf16.gmra.mxu2 %vm1628_vm2, %v1575_v59 }
  0xc2   : > { %v4946_v1 = vpop.f32.mrf.mxu0 }
  0xc3   : > { %v999_v53 = vmul.f32 %v4946_v1, %v4946_v1 }
  0xc5   : > { %v1015_v62 = vmax.f32 %v999_v53, 1e-24 }
  0xc7   : > { %4078 = vrsqrt.f32 %v1015_v62  ;;  %vm1037_vm4 = vweird.f32 %v1015_v62 }
  0xca   : > { %v4950_v48 = vpop.f32.mrf.mxu0  ;;  %3724 = vmatmul.msk.bf16.gmra.mxu2 %vm1628_vm2, %v1576_v38  ;;  %v4976_v40 = vpop.f32.mrf.mxu2 }
  0xcb   : > { %v4958_v32 = vmul.f32 %v4950_v48, %v4950_v48 }
  0xcd   : > { %v4079_v31 = vpop.eup %4078  ;;  %v1016_v14 = vmax.f32 %v4958_v32, 1e-24 }
  0xce   : > { %v1032_v33 = vmul.f32 %v4079_v31, %v1015_v62  ;;  %vm1038_vm3 = vweird.f32 %v4079_v31 }
  0xcf   : > { %4080 = vrsqrt.f32 %v1016_v14  ;;  %vm1039_vm5 = vmor %vm1037_vm4, %vm1038_vm3  ;;  %vm1047_vm7 = vweird.f32 %v1016_v14 }
  0xd0   : > { %v1033_v9 = vmul.f32 %v4079_v31, %v1032_v33 }
  0xd2   : > { %v1034_v54 = vmul.f32 0.5, %v1033_v9  ;;  %v4966_v10 = vpop.f32.mrf.mxu0  ;;  %v5006_v44 = vpop.f32.mrf.mxu2 }
  0xd3   : > { %v4973_v6 = vmul.f32 %v4966_v10, %v4966_v10 }
  0xd4   : > { %v1035_v21 = vsub.f32 1.5, %v1034_v54 }
  0xd5   : > { %v4081_v57 = vpop.eup %4080  ;;  %v1017_v15 = vmax.f32 %v4973_v6, 1e-24 }
  0xd6   : > { %v1036_v63 = vmul.f32 %v4079_v31, %v1035_v21  ;;  %v1042_v19 = vmul.f32 %v4081_v57, %v1016_v14  ;;  %vm1048_vm6 = vweird.f32 %v4081_v57  ;;  %v1555_v21 = vld [vmem:[%s4924_s21 + $0x78] sm:$0xff] }
  0xd7   : > { %4082 = vrsqrt.f32 %v1017_v15  ;;  %vm1049_vm8 = vmor %vm1047_vm7, %vm1048_vm6  ;;  %vm1057_vm11 = vweird.f32 %v1017_v15 }
  0xd8   : > { %v4981_v52 = vsel %vm1039_vm5, %v4079_v31, %v1036_v63  ;;  %v1043_v12 = vmul.f32 %v4081_v57, %v1042_v19 }
  0xd9   : > { %v1191_v28 = vmul.f32 %v4981_v52, %v999_v53  ;;  %v3940_v53 = vld [vmem:[%s6857_s3] sm:$0xff] }
  0xda   : > { %v1044_v34 = vmul.f32 0.5, %v1043_v12  ;;  %v4989_v61 = vpop.f32.mrf.mxu0  ;;  %3725 = vmatmul.msk.bf16.gmra.mxu2 %vm1628_vm2, %v1577_v24  ;;  %1482 = vmatpush.bf16.msra.mxu1 %v3940_v53 }
  0xdb   : > { %v4997_v30 = vmul.f32 %v4989_v61, %v4989_v61  ;;  %v5001_v36 = vmul.f32 %v4987_v60, %v1191_v28  ;;  %v5037_v14 = vpop.f32.mrf.mxu2  ;;  %v1570_v28 = vmul.f32 %v1554_v5, %v1554_v5 }
  0xdc   : > { %v1045_v25 = vsub.f32 1.5, %v1044_v34  ;;  %v1571_v34 = vmul.f32 %v1555_v21, %v1555_v21  ;;  %v5110_v21 = vmul.f32 %v5006_v44, %v5006_v44 }
  0xdd   : > { %v4083_v47 = vpop.eup %4082  ;;  %v1018_v55 = vmax.f32 %v4997_v30, 1e-24  ;;  %v1243_v0 = vmul.f32 0.044715, %v5001_v36 }
  0xde   : > { %v1052_v8 = vmul.f32 %v4083_v47, %v1017_v15  ;;  %v1046_v16 = vmul.f32 %v4081_v57, %v1045_v25  ;;  %vm1058_vm9 = vweird.f32 %v4083_v47 }
  0xdf   : > { %4084 = vrsqrt.f32 %v1018_v55  ;;  %v1259_v50 = vmul.f32 %v1243_v0, %v5001_v36  ;;  %vm1059_vm12 = vmor %vm1057_vm11, %vm1058_vm9  ;;  %vm1067_vm14 = vweird.f32 %v1018_v55  ;;  %v5076_v0 = vmul.f32 %v4976_v40, %v4976_v40 }
  0xe0   : > { %v1053_v39 = vmul.f32 %v4083_v47, %v1052_v8  ;;  %v5011_v20 = vsel %vm1049_vm8, %v4081_v57, %v1046_v16  ;;  %v1579_v16 = vpack.c.bf16 %v1571_v34, %v1570_v28 }
  0xe1   : > { %v1192_v43 = vmul.f32 %v5011_v20, %v4958_v32  ;;  %v1275_v27 = vmul.f32 %v1259_v50, %v5001_v36 }
  0xe2   : > { %v1054_v51 = vmul.f32 0.5, %v1053_v39 }
  0xe3   : > { %v5035_v32 = vmul.f32 %v4987_v60, %v1192_v43  ;;  %v1291_v22 = vadd.f32 %v1275_v27, %v5001_v36 }
  0xe4   : > { %v1055_v41 = vsub.f32 1.5, %v1054_v51 }
  0xe5   : > { %v4085_v3 = vpop.eup %4084  ;;  %v5016_v49 = vpop.f32.mrf.mxu0  ;;  %v1244_v54 = vmul.f32 0.044715, %v5035_v32  ;;  %v1307_v63 = vmul.f32 0.7978846, %v1291_v22  ;;  %v1227_v22 = vmul.f32 0.5, %v5001_v36 }
  0xe6   : > { %v1056_v11 = vmul.f32 %v4083_v47, %v1055_v41  ;;  %v1062_v59 = vmul.f32 %v4085_v3, %v1018_v55  ;;  %v5023_v4 = vmul.f32 %v5016_v49, %v5016_v49  ;;  %vm1068_vm13 = vweird.f32 %v4085_v3 }
  0xe7   : > { %vm1069_vm15 = vmor %vm1067_vm14, %vm1068_vm13  ;;  %v1260_v24 = vmul.f32 %v1244_v54, %v5035_v32 }
  0xe8   : > { %v5028_v18 = vsel %vm1059_vm12, %v4083_v47, %v1056_v11  ;;  %v1063_v46 = vmul.f32 %v4085_v3, %v1062_v59  ;;  %v1019_v38 = vmax.f32 %v5023_v4, 1e-24  ;;  %v5067_v47 = vpop.f32.mrf.mxu2  ;;  %v5087_v11 = vmax.f32 %v5076_v0, 1e-24 }
  0xe9   : > { %v1193_v62 = vmul.f32 %v5028_v18, %v4973_v6  ;;  %v1276_v55 = vmul.f32 %v1260_v24, %v5035_v32 }
  0xea   : > { %v1064_v31 = vmul.f32 0.5, %v1063_v46  ;;  %4086 = vrsqrt.f32 %v1019_v38  ;;  %3726 = vmatmul.msk.bf16.gmra.mxu2 %vm1628_vm2, %v1578_v42  ;;  %vm1077_vm1 = vweird.f32 %v1019_v38  ;;  %vm1137_vm11 = vweird.f32 %v5087_v11 }
  0xeb   : > { %v5041_v33 = vmul.f32 %v4987_v60, %v1193_v62  ;;  %v1292_v29 = vadd.f32 %v1276_v55, %v5035_v32 }
  0xec   : > { %v1065_v56 = vsub.f32 1.5, %v1064_v31 }
  0xed   : > { %v5043_v9 = vpop.f32.mrf.mxu0  ;;  %v1245_v17 = vmul.f32 0.044715, %v5041_v33  ;;  %v1308_v23 = vmul.f32 0.7978846, %v1292_v29 }
  0xee   : > { %v1066_v13 = vmul.f32 %v4085_v3, %v1065_v56  ;;  %v5052_v7 = vmul.f32 %v5043_v9, %v5043_v9 }
  0xef   : > { %v1261_v37 = vmul.f32 %v1245_v17, %v5041_v33 }
  0xf0   : > { %v5048_v6 = vsel %vm1069_vm15, %v4085_v3, %v1066_v13  ;;  %v4087_v57 = vpop.eup %4086  ;;  %v5059_v45 = vmax.f32 %v5052_v7, 1e-24 }
  0xf1   : > { %v1194_v15 = vmul.f32 %v5048_v6, %v4997_v30  ;;  %v1072_v19 = vmul.f32 %v4087_v57, %v1019_v38  ;;  %v1277_v35 = vmul.f32 %v1261_v37, %v5041_v33  ;;  %vm1078_vm0 = vweird.f32 %v4087_v57 }
  0xf2   : > { %4088 = vrsqrt.f32 %v5059_v45  ;;  %vm1079_vm3 = vmor %vm1077_vm1, %vm1078_vm0  ;;  %v5129_v37 = vmul.f32 %v5037_v14, %v5037_v14  ;;  %vm1087_vm5 = vweird.f32 %v5059_v45 }
  0xf3   : > { %v5063_v12 = vmul.f32 %v4987_v60, %v1194_v15  ;;  %v1073_v25 = vmul.f32 %v4087_v57, %v1072_v19  ;;  %4090 = vtanh.f32 %v1307_v63  ;;  %v1293_v3 = vadd.f32 %v1277_v35, %v5041_v33 }
  0xf4   : > { %4092 = vtanh.f32 %v1308_v23 }
  0xf5   : > { %v1074_v30 = vmul.f32 0.5, %v1073_v25  ;;  %v1246_v8 = vmul.f32 0.044715, %v5063_v12  ;;  %v1309_v27 = vmul.f32 0.7978846, %v1293_v3  ;;  %4094 = vrsqrt.f32 %v5087_v11 }
  0xf7   : > { %v1075_v39 = vsub.f32 1.5, %v1074_v30  ;;  %v1262_v26 = vmul.f32 %v1246_v8, %v5063_v12  ;;  %v5135_v8 = vmax.f32 %v5110_v21, 1e-24 }
  0xf8   : > { %v5078_v51 = vpop.eup %4088 }
  0xf9   : > { %v1278_v2 = vmul.f32 %v1262_v26, %v5063_v12  ;;  %v1082_v58 = vmul.f32 %v5078_v51, %v5059_v45  ;;  %v4091_v41 = vpop.eup %4090  ;;  %v1076_v50 = vmul.f32 %v4087_v57, %v1075_v39  ;;  %vm1088_vm4 = vweird.f32 %v5078_v51 }
  0xfa   : > { %3727 = vmatmul.msk.bf16.gmra.mxu2 %vm1628_vm2, %v1579_v16  ;;  %v1339_v46 = vadd.f32 1.0, %v4091_v41  ;;  %v4093_v13 = vpop.eup %4092  ;;  %vm1089_vm6 = vmor %vm1087_vm5, %vm1088_vm4 }
  0xfb   : > { %v1294_v43 = vadd.f32 %v1278_v2, %v5063_v12  ;;  %v5089_v59 = vpop.f32.mrf.mxu0  ;;  %v1083_v42 = vmul.f32 %v5078_v51, %v1082_v58  ;;  %v5098_v31 = vsel %vm1079_vm3, %v4087_v57, %v1076_v50  ;;  %v1228_v57 = vmul.f32 0.5, %v5035_v32 }
  0xfc   : > { %v5096_v62 = vmul.f32 %v5089_v59, %v5089_v59  ;;  %v1355_v17 = vmul.f32 %v1339_v46, %v1227_v22  ;;  %v1195_v5 = vmul.f32 %v5098_v31, %v5023_v4  ;;  %v1340_v15 = vadd.f32 1.0, %v4093_v13  ;;  %v5121_v4 = vpop.eup %4094 }
  0xfd   : > { %v5092_v53 = vpop.f32.mrf.mxu2  ;;  %v1310_v56 = vmul.f32 0.7978846, %v1294_v43  ;;  %v1084_v54 = vmul.f32 0.5, %v1083_v42  ;;  %v1132_v26 = vmul.f32 %v5121_v4, %v5087_v11  ;;  %v5147_v2 = vmax.f32 %v5129_v37, 1e-24 }
  0xfe   : > { %v5103_v38 = vmax.f32 %v5096_v62, 1e-24  ;;  %v1371_v28 = vmul.f32 %v1355_v17, %v4981_v52  ;;  %v5125_v34 = vmul.f32 %v4987_v60, %v1195_v5  ;;  %v1356_v32 = vmul.f32 %v1340_v15, %v1228_v57  ;;  %v3955_v57 = vld [vmem:[%s6865_s11 + $0x8] sm:$0xff] }
  0xff   : > { %4096 = vtanh.f32 %v1310_v56  ;;  %v1085_v63 = vsub.f32 1.5, %v1084_v54  ;;  %v1133_v56 = vmul.f32 %v5121_v4, %v1132_v26  ;;  %2128 = vmatpush.bf16.msrb.mxu1 %v3955_v57  ;;  %4000 = vmatpush.bf16.msra.mxu3 %v3955_v57  ;;  %vm1138_vm12 = vweird.f32 %v5121_v4 }
 0x100   : > { %4098 = vrsqrt.f32 %v5103_v38  ;;  %v1372_v16 = vmul.f32 %v1356_v32, %v5011_v20  ;;  %v1387_v29 = vmul.f32 %v1371_v28, %v4946_v1  ;;  %v1247_v23 = vmul.f32 0.044715, %v5125_v34  ;;  %vm5230_vm14 = vmor %vm1137_vm11, %vm1138_vm12 }
 0x101   : > { %4100 = vtanh.f32 %v1309_v27  ;;  %v1086_v52 = vmul.f32 %v5078_v51, %v1085_v63  ;;  %v1230_v1 = vmul.f32 0.5, %v5063_v12  ;;  %vm1097_vm8 = vweird.f32 %v5103_v38 }
 0x102   : > { %v1388_v58 = vmul.f32 %v1372_v16, %v4950_v48  ;;  %v1229_v48 = vmul.f32 0.5, %v5041_v33  ;;  %v1263_v22 = vmul.f32 %v1247_v23, %v5125_v34  ;;  %v1134_v28 = vmul.f32 0.5, %v1133_v56 }
 0x103   : > { %v5112_v36 = vpop.f32.mrf.mxu0  ;;  %v5156_v43 = vsel %vm1089_vm6, %v5078_v51, %v1086_v52  ;;  %vm1157_vm5 = vweird.f32 %v5147_v2 }
 0x104   : > { %v5117_v19 = vmul.f32 %v5112_v36, %v5112_v36  ;;  %v1403_v46 = vpack.c.bf16 %v1388_v58, %v1387_v29  ;;  %v1196_v5 = vmul.f32 %v5156_v43, %v5052_v7 }
 0x105   : > { %v5119_v24 = vpop.f32.mrf.mxu2  ;;  %v4097_v25 = vpop.eup %4096 }
 0x106   : > { %v5132_v30 = vmax.f32 %v5117_v19, 1e-24  ;;  %v4099_v55 = vpop.eup %4098  ;;  %v1342_v41 = vadd.f32 1.0, %v4097_v25  ;;  %1483 = vmatmul.bf16.vlgmr.msra.gmra.mxu1 %v1403_v46  ;;  %v1279_v25 = vmul.f32 %v1263_v22, %v5125_v34 }
 0x107   : > { %v4101_v35 = vpop.eup %4100  ;;  %v1092_v39 = vmul.f32 %v4099_v55, %v5103_v38  ;;  %vm1098_vm7 = vweird.f32 %v4099_v55  ;;  %v5189_v38 = vmul.f32 %v4987_v60, %v1196_v5 }
 0x108   : > { %4102 = vrsqrt.f32 %v5132_v30  ;;  %v1341_v3 = vadd.f32 1.0, %v4101_v35  ;;  %v1358_v54 = vmul.f32 %v1342_v41, %v1230_v1  ;;  %vm1099_vm9 = vmor %vm1097_vm8, %vm1098_vm7  ;;  %vm1107_vm15 = vweird.f32 %v5132_v30 }
 0x109   : > { %v1093_v20 = vmul.f32 %v4099_v55, %v1092_v39  ;;  %4104 = vrsqrt.f32 %v5135_v8  ;;  %v5193_v39 = vmul.f32 %v5067_v47, %v5067_v47  ;;  %v1248_v56 = vmul.f32 0.044715, %v5189_v38 }
 0x10a   : > { %4106 = vrsqrt.f32 %v5147_v2  ;;  %v1357_v17 = vmul.f32 %v1341_v3, %v1229_v48  ;;  %v1374_v16 = vmul.f32 %v1358_v54, %v5048_v6  ;;  %v1295_v3 = vadd.f32 %v1279_v25, %v5125_v34 }
 0x10b   : > { %v5152_v50 = vpop.f32.mrf.mxu0  ;;  %v1094_v42 = vmul.f32 0.5, %v1093_v20  ;;  %v5215_v46 = vmax.f32 %v5193_v39, 1e-24  ;;  %vm1147_vm7 = vweird.f32 %v5135_v8 }
 0x10c   : > { %v5160_v45 = vmul.f32 %v5152_v50, %v5152_v50  ;;  %v1373_v52 = vmul.f32 %v1357_v17, %v5028_v18  ;;  %v1135_v18 = vsub.f32 1.5, %v1134_v28  ;;  %v1390_v1 = vmul.f32 %v1374_v16, %v4989_v61 }
 0x10d   : > { %v5162_v27 = vpop.f32.mrf.mxu2  ;;  %v1095_v13 = vsub.f32 1.5, %v1094_v42  ;;  %v1311_v5 = vmul.f32 0.7978846, %v1295_v3  ;;  %v1264_v16 = vmul.f32 %v1248_v56, %v5189_v38 }
 0x10e   : > { %v4103_v12 = vpop.eup %4102  ;;  %v5169_v51 = vmax.f32 %v5160_v45, 1e-24  ;;  %v1389_v42 = vmul.f32 %v1373_v52, %v4966_v10  ;;  %v1136_v17 = vmul.f32 %v5121_v4, %v1135_v18 }
 0x10f   : > { %v1102_v33 = vmul.f32 %v4103_v12, %v5132_v30  ;;  %v1096_v15 = vmul.f32 %v4099_v55, %v1095_v13  ;;  %v5179_v63 = vpop.eup %4104  ;;  %vm1108_vm13 = vweird.f32 %v4103_v12  ;;  %v5247_v30 = vmul.f32 %v5092_v53, %v5092_v53 }
 0x110   : > { %4108 = vrsqrt.f32 %v5169_v51  ;;  %v5185_v35 = vpop.eup %4106  ;;  %v1142_v41 = vmul.f32 %v5179_v63, %v5135_v8  ;;  %v1404_v57 = vpack.c.bf16 %v1390_v1, %v1389_v42  ;;  %vm1109_vm0 = vmor %vm1107_vm15, %vm1108_vm13  ;;  %vm1117_vm3 = vweird.f32 %v5169_v51 }
 0x111   : > { %v1103_v32 = vmul.f32 %v4103_v12, %v1102_v33  ;;  %v5182_v7 = vsel %vm1099_vm9, %v4099_v55, %v1096_v15  ;;  %4110 = vrsqrt.f32 %v5215_v46  ;;  %v1280_v3 = vmul.f32 %v1264_v16, %v5189_v38 }
 0x112   : > { %v1197_v55 = vmul.f32 %v5182_v7, %v5096_v62  ;;  %v1152_v62 = vmul.f32 %v5185_v35, %v5147_v2  ;;  %v1143_v15 = vmul.f32 %v5179_v63, %v1142_v41  ;;  %vm1158_vm6 = vweird.f32 %v5185_v35 }
 0x113   : > { %v1104_v29 = vmul.f32 0.5, %v1103_v32  ;;  %v5195_v26 = vpop.f32.mrf.mxu0  ;;  %v1296_v56 = vadd.f32 %v1280_v3, %v5189_v38  ;;  %vm1148_vm8 = vweird.f32 %v5179_v63  ;;  %vm1159_vm9 = vmor %vm1157_vm5, %vm1158_vm6  ;;  %v1231_v2 = vmul.f32 0.5, %v5125_v34 }
 0x114   : > { %v5201_v6 = vmul.f32 %v5195_v26, %v5195_v26  ;;  %v5220_v22 = vmul.f32 %v4987_v60, %v1197_v55  ;;  %v1153_v33 = vmul.f32 %v5185_v35, %v1152_v62  ;;  %v1144_v55 = vmul.f32 0.5, %v1143_v15  ;;  %vm1149_vm11 = vmor %vm1147_vm7, %vm1148_vm8 }
 0x115   : > { %v5203_v23 = vpop.f32.mrf.mxu2  ;;  %v1105_v20 = vsub.f32 1.5, %v1104_v29  ;;  %v5252_v29 = vsel %vm5230_vm14, %v5121_v4, %v1136_v17  ;;  %v5262_v4 = vmax.f32 %v5247_v30, 1e-24  ;;  %v5288_v15 = vmul.f32 %v5119_v24, %v5119_v24 }
 0x116   : > { %v4109_v58 = vpop.eup %4108  ;;  %v5223_v54 = vmax.f32 %v5201_v6, 1e-24  ;;  %v1249_v32 = vmul.f32 0.044715, %v5220_v22  ;;  %1488 = vmatmul.bf16.gmra.mxu1 %v1404_v57  ;;  %vm1167_vm15 = vweird.f32 %v5215_v46 }
 0x117   : > { %v1112_v48 = vmul.f32 %v4109_v58, %v5169_v51  ;;  %v1106_v13 = vmul.f32 %v4103_v12, %v1105_v20  ;;  %vm1118_vm1 = vweird.f32 %v4109_v58  ;;  %v5259_v62 = vpop.eup %4110 }
 0x118   : > { %4112 = vrsqrt.f32 %v5223_v54  ;;  %v1265_v41 = vmul.f32 %v1249_v32, %v5220_v22  ;;  %vm1119_vm4 = vmor %vm1117_vm3, %vm1118_vm1  ;;  %vm1127_vm13 = vweird.f32 %v5223_v54  ;;  %vm1177_vm3 = vweird.f32 %v5262_v4 }
 0x119   : > { %v1113_v61 = vmul.f32 %v4109_v58, %v1112_v48  ;;  %v5239_v25 = vsel %vm1109_vm0, %v4103_v12, %v1106_v13  ;;  %4114 = vtanh.f32 %v1311_v5  ;;  %v1154_v12 = vmul.f32 0.5, %v1153_v33 }
 0x11a   : > { %v1198_v18 = vmul.f32 %v5239_v25, %v5117_v19  ;;  %v1201_v48 = vmul.f32 %v5252_v29, %v5076_v0  ;;  %v1145_v13 = vsub.f32 1.5, %v1144_v55  ;;  %v1162_v0 = vmul.f32 %v5259_v62, %v5215_v46 }
 0x11b   : > { %v1114_v28 = vmul.f32 0.5, %v1113_v61  ;;  %v1155_v19 = vsub.f32 1.5, %v1154_v12  ;;  %v1281_v10 = vmul.f32 %v1265_v41, %v5220_v22  ;;  %v1312_v5 = vmul.f32 0.7978846, %v1296_v56 }
 0x11c   : > { %v5273_v17 = vmul.f32 %v4987_v60, %v1198_v18  ;;  %4116 = vrsqrt.f32 %v5262_v4  ;;  %v5297_v12 = vmul.f32 %v4987_v60, %v1201_v48  ;;  %v1146_v55 = vmul.f32 %v5179_v63, %v1145_v13 }
 0x11d   : > { %v5242_v11 = vpop.f32.mrf.mxu2  ;;  %v1115_v52 = vsub.f32 1.5, %v1114_v28  ;;  %v1156_v57 = vmul.f32 %v5185_v35, %v1155_v19  ;;  %4118 = vtanh.f32 %v1312_v5  ;;  %v1163_v18 = vmul.f32 %v5259_v62, %v1162_v0 }
 0x11e   : > { %v4113_v42 = vpop.eup %4112  ;;  %v5311_v48 = vmax.f32 %v5288_v15, 1e-24  ;;  %v1253_v34 = vmul.f32 0.044715, %v5297_v12  ;;  %vm1168_vm0 = vweird.f32 %v5259_v62 }
 0x11f   : > { %v1116_v20 = vmul.f32 %v4109_v58, %v1115_v52  ;;  %v1122_v61 = vmul.f32 %v4113_v42, %v5223_v54  ;;  %v1250_v52 = vmul.f32 0.044715, %v5273_v17  ;;  %vm1128_vm12 = vweird.f32 %v4113_v42  ;;  %vm1169_vm1 = vmor %vm1167_vm15, %vm1168_vm0 }
 0x120   : > { %v5308_v3 = vsel %vm1159_vm9, %v5185_v35, %v1156_v57  ;;  %v1164_v35 = vmul.f32 0.5, %v1163_v18  ;;  %vm1129_vm14 = vmor %vm1127_vm13, %vm1128_vm12  ;;  %v1232_v54 = vmul.f32 0.5, %v5189_v38  ;;  %4120 = vrsqrt.f32 %v5311_v48 }
 0x121   : > { %v5264_v1 = vsel %vm1119_vm4, %v4109_v58, %v1116_v20  ;;  %v4115_v58 = vpop.eup %4114  ;;  %v1123_v33 = vmul.f32 %v4113_v42, %v1122_v61  ;;  %v1297_v20 = vadd.f32 %v1281_v10, %v5220_v22  ;;  %v1266_v8 = vmul.f32 %v1250_v52, %v5273_v17 }
 0x122   : > { %v1199_v51 = vmul.f32 %v5264_v1, %v5160_v45  ;;  %v1343_v32 = vadd.f32 1.0, %v4115_v58  ;;  %v5320_v58 = vsel %vm1149_vm11, %v5179_v63, %v1146_v55  ;;  %v1203_v5 = vmul.f32 %v5308_v3, %v5129_v37 }
 0x123   : > { %v1124_v16 = vmul.f32 0.5, %v1123_v33  ;;  %v1313_v0 = vmul.f32 0.7978846, %v1297_v20  ;;  %v1282_v55 = vmul.f32 %v1266_v8, %v5273_v17  ;;  %v1202_v38 = vmul.f32 %v5320_v58, %v5110_v21 }
 0x124   : > { %v5291_v28 = vmul.f32 %v4987_v60, %v1199_v51  ;;  %v5314_v51 = vpop.eup %4116  ;;  %v1359_v56 = vmul.f32 %v1343_v32, %v1231_v2  ;;  %v1269_v18 = vmul.f32 %v1253_v34, %v5297_v12  ;;  %v1165_v20 = vsub.f32 1.5, %v1164_v35 }
 0x125   : > { %v5280_v45 = vpop.f32.mrf.mxu2  ;;  %v1125_v41 = vsub.f32 1.5, %v1124_v16  ;;  %v4119_v61 = vpop.eup %4118  ;;  %v1172_v32 = vmul.f32 %v5314_v51, %v5262_v4  ;;  %v5334_v16 = vmax.f32 %v5162_v27, 1e-24  ;;  %4122 = vtanh.f32 %v1313_v0 }
 0x126   : > { %v1251_v19 = vmul.f32 0.044715, %v5291_v28  ;;  %v1344_v57 = vadd.f32 1.0, %v4119_v61  ;;  %v1375_v52 = vmul.f32 %v1359_v56, %v5098_v31  ;;  %v5356_v8 = vpop.eup %4120  ;;  %v1285_v35 = vmul.f32 %v1269_v18, %v5297_v12 }
 0x127   : > { %v1126_v13 = vmul.f32 %v4113_v42, %v1125_v41  ;;  %v5345_v41 = vmul.f32 %v4987_v60, %v1203_v5  ;;  %v1173_v31 = vmul.f32 %v5314_v51, %v1172_v32  ;;  %4124 = vrsqrt.f32 %v5334_v16 }
 0x128   : > { %v1267_v63 = vmul.f32 %v1251_v19, %v5291_v28  ;;  %vm1178_vm4 = vweird.f32 %v5314_v51  ;;  %vm1187_vm6 = vweird.f32 %v5311_v48  ;;  %vm1188_vm7 = vweird.f32 %v5356_v8 }
 0x129   : > { %v5326_v33 = vsel %vm1129_vm14, %v4113_v42, %v1126_v13  ;;  %v1360_v42 = vmul.f32 %v1344_v57, %v1232_v54  ;;  %v1298_v13 = vadd.f32 %v1282_v55, %v5273_v17  ;;  %v1255_v5 = vmul.f32 0.044715, %v5345_v41  ;;  %vm1179_vm5 = vmor %vm1177_vm3, %vm1178_vm4 }
 0x12a   : > { %v1200_v37 = vmul.f32 %v5326_v33, %v5201_v6  ;;  %v1283_v19 = vmul.f32 %v1267_v63, %v5291_v28  ;;  %v1391_v6 = vmul.f32 %v1375_v52, %v5016_v49  ;;  %v1166_v54 = vmul.f32 %v5259_v62, %v1165_v20  ;;  %vm5450_vm8 = vmor %vm1187_vm6, %vm1188_vm7 }
 0x12b   : > { %v1376_v2 = vmul.f32 %v1360_v42, %v5156_v43  ;;  %v5359_v43 = vmul.f32 %v4987_v60, %v1202_v38  ;;  %v4123_v49 = vpop.eup %4122  ;;  %v1174_v57 = vmul.f32 0.5, %v1173_v31  ;;  %v5376_v42 = vmax.f32 %v5203_v23, 1e-24 }
 0x12c   : > { %v5352_v56 = vmul.f32 %v4987_v60, %v1200_v37  ;;  %v1299_v0 = vadd.f32 %v1283_v19, %v5291_v28  ;;  %v1345_v52 = vadd.f32 1.0, %v4123_v49  ;;  %v1182_v37 = vmul.f32 %v5356_v8, %v5311_v48 }
 0x12d   : > { %v5322_v10 = vpop.f32.mrf.mxu2  ;;  %v1392_v21 = vmul.f32 %v1376_v2, %v5043_v9  ;;  %v1314_v9 = vmul.f32 0.7978846, %v1298_v13  ;;  %v5370_v63 = vpop.eup %4124  ;;  %v1254_v46 = vmul.f32 0.044715, %v5359_v43  ;;  %v1301_v55 = vadd.f32 %v1285_v35, %v5297_v12 }
 0x12e   : > { %v1252_v32 = vmul.f32 0.044715, %v5352_v56  ;;  %v1315_v38 = vmul.f32 0.7978846, %v1299_v0  ;;  %v1271_v20 = vmul.f32 %v1255_v5, %v5345_v41  ;;  %v5382_v2 = vsel %vm1169_vm1, %v5259_v62, %v1166_v54 }
 0x12f   : > { %v1405_v34 = vpack.c.bf16 %v1392_v21, %v1391_v6  ;;  %4126 = vtanh.f32 %v1314_v9  ;;  %v1233_v31 = vmul.f32 0.5, %v5220_v22  ;;  %v1175_v19 = vsub.f32 1.5, %v1174_v57 }
 0x130   : > { %v1268_v18 = vmul.f32 %v1252_v32, %v5352_v56  ;;  %v1719_v6 = vmul.f32 %v5370_v63, %v5334_v16  ;;  %v1270_v13 = vmul.f32 %v1254_v46, %v5359_v43  ;;  %v1183_v49 = vmul.f32 %v5356_v8, %v1182_v37 }
 0x131   : > { %1493 = vmatmul.bf16.gmra.mxu1 %v1405_v34  ;;  %v1361_v34 = vmul.f32 %v1345_v52, %v1233_v31  ;;  %4128 = vrsqrt.f32 %v5376_v42  ;;  %v1317_v35 = vmul.f32 0.7978846, %v1301_v55  ;;  %v1204_v0 = vmul.f32 %v5382_v2, %v5193_v39 }
 0x132   : > { %4130 = vtanh.f32 %v1315_v38  ;;  %v1284_v9 = vmul.f32 %v1268_v18, %v5352_v56  ;;  %v1176_v5 = vmul.f32 %v5314_v51, %v1175_v19  ;;  %v1234_v54 = vmul.f32 0.5, %v5273_v17 }
 0x133   : > { %v1287_v32 = vmul.f32 %v1271_v20, %v5345_v41  ;;  %v1720_v46 = vmul.f32 %v5370_v63, %v1719_v6  ;;  %v1286_v39 = vmul.f32 %v1270_v13, %v5359_v43  ;;  %v1377_v52 = vmul.f32 %v1361_v34, %v5182_v7 }
 0x134   : > { %v1184_v37 = vmul.f32 0.5, %v1183_v49  ;;  %v1300_v17 = vadd.f32 %v1284_v9, %v5352_v56  ;;  %v5415_v18 = vmul.f32 %v4987_v60, %v1204_v0  ;;  %v5418_v20 = vsel %vm1179_vm5, %v5314_v51, %v1176_v5 }
 0x135   : > { %v5361_v61 = vpop.f32.mrf.mxu2  ;;  %v4127_v22 = vpop.eup %4126  ;;  %v1303_v6 = vadd.f32 %v1287_v32, %v5345_v41  ;;  %v1721_v7 = vmul.f32 0.5, %v1720_v46  ;;  %v1302_v34 = vadd.f32 %v1286_v39, %v5359_v43  ;;  %v5434_v0 = vmax.f32 %v5242_v11, 1e-24 }
 0x136   : > { %v1346_v57 = vadd.f32 1.0, %v4127_v22  ;;  %v1316_v31 = vmul.f32 0.7978846, %v1300_v17  ;;  %v1393_v22 = vmul.f32 %v1377_v52, %v5089_v59  ;;  %v1235_v39 = vmul.f32 0.5, %v5291_v28 }
 0x137   : > { %v5412_v38 = vpop.eup %4128  ;;  %v1319_v32 = vmul.f32 0.7978846, %v1303_v6  ;;  %v1722_v46 = vsub.f32 1.5, %v1721_v7  ;;  %v1318_v52 = vmul.f32 0.7978846, %v1302_v34  ;;  %vm1724_vm9 = vweird.f32 %v5334_v16 }
 0x138   : > { %v1362_v55 = vmul.f32 %v1346_v57, %v1234_v54  ;;  %v4131_v19 = vpop.eup %4130  ;;  %v1729_v54 = vmul.f32 %v5412_v38, %v5376_v42  ;;  %vm1725_vm11 = vweird.f32 %v5370_v63  ;;  %v1256_v28 = vmul.f32 0.044715, %v5415_v18 }
 0x139   : > { %v1347_v5 = vadd.f32 1.0, %v4131_v19  ;;  %v1723_v48 = vmul.f32 %v5370_v63, %v1722_v46  ;;  %v5465_v6 = vmax.f32 %v5280_v45, 1e-24  ;;  %v1236_v7 = vmul.f32 0.5, %v5352_v56  ;;  %vm1726_vm12 = vmor %vm1724_vm9, %vm1725_vm11 }
 0x13a   : > { %v1378_v4 = vmul.f32 %v1362_v55, %v5239_v25  ;;  %v1205_v25 = vmul.f32 %v5418_v20, %v5247_v30  ;;  %v1730_v19 = vmul.f32 %v5412_v38, %v1729_v54  ;;  %v1272_v54 = vmul.f32 %v1256_v28, %v5415_v18 }
 0x13b   : > { %v5489_v46 = vsel %vm1726_vm12, %v5370_v63, %v1723_v48  ;;  %vm1734_vm15 = vweird.f32 %v5376_v42  ;;  %vm1735_vm0 = vweird.f32 %v5412_v38  ;;  %vm1744_vm7 = vweird.f32 %v5434_v0 }
 0x13c   : > { %v1394_v51 = vmul.f32 %v1378_v4, %v5112_v36  ;;  %v5459_v4 = vmul.f32 %v4987_v60, %v1205_v25  ;;  %vm1736_vm5 = vmor %vm1734_vm15, %vm1735_vm0  ;;  %vm1754_vm9 = vweird.f32 %v5465_v6 }
 0x13d   : > { %v5389_v21 = vpop.f32.mrf.mxu2 }
 0x13e   : > { %v5395_v62 = vmax.f32 %v5389_v21, 1e-24  ;;  %v1406_v59 = vpack.c.bf16 %v1394_v51, %v1393_v22 }
 0x140   : > { %4132 = vrsqrt.f32 %v5395_v62  ;;  %vm1784_vm13 = vweird.f32 %v5395_v62 }
 0x141   : > { %4134 = vtanh.f32 %v1317_v35  ;;  %v1185_v35 = vsub.f32 1.5, %v1184_v37  ;;  %1498 = vmatmul.bf16.gmra.mxu1 %v1406_v59  ;;  %v1257_v59 = vmul.f32 0.044715, %v5459_v4 }
 0x142   : > { %4136 = vtanh.f32 %v1316_v31  ;;  %v1363_v31 = vmul.f32 %v1347_v5, %v1235_v39 }
 0x143   : > { %v1186_v30 = vmul.f32 %v5356_v8, %v1185_v35  ;;  %v1237_v35 = vmul.f32 0.5, %v5297_v12 }
 0x145   : > { %v5423_v13 = vpop.f32.mrf.mxu2  ;;  %v5474_v25 = vsel %vm5450_vm8, %v5356_v8, %v1186_v30  ;;  %v1379_v8 = vmul.f32 %v1363_v31, %v5264_v1 }
 0x146   : > { %v5426_v49 = vpop.eup %4132  ;;  %v5441_v57 = vmax.f32 %v5423_v13, 1e-24 }
 0x147   : > { %v1779_v9 = vmul.f32 %v5426_v49, %v5395_v62  ;;  %v4135_v36 = vpop.eup %4134  ;;  %v1395_v28 = vmul.f32 %v1379_v8, %v5152_v50  ;;  %vm1785_vm14 = vweird.f32 %v5426_v49  ;;  %v3954_v50 = vld [vmem:[%s6865_s11] sm:$0xff]  ;;  %v5548_v62 = vmax.f32 %v5322_v10, 1e-24 }
 0x148   : > { %4138 = vrsqrt.f32 %v5441_v57  ;;  %v4137_v17 = vpop.eup %4136  ;;  %v1349_v51 = vadd.f32 1.0, %v4135_v36  ;;  %v1731_v36 = vmul.f32 0.5, %v1730_v19  ;;  %2129 = vmatpush.bf16.msrb.mxu1 %v3954_v50  ;;  %4001 = vmatpush.bf16.msra.mxu3 %v3954_v50  ;;  %vm1786_vm1 = vmor %vm1784_vm13, %vm1785_vm14  ;;  %vm1794_vm3 = vweird.f32 %v5441_v57 }
 0x149   : > { %v1780_v55 = vmul.f32 %v5426_v49, %v1779_v9  ;;  %4140 = vrsqrt.f32 %v5434_v0  ;;  %v1348_v34 = vadd.f32 1.0, %v4137_v17  ;;  %v1878_v17 = vmul.f32 %v5489_v46, %v5162_v27 }
 0x14a   : > { %4142 = vtanh.f32 %v1318_v52  ;;  %v1365_v52 = vmul.f32 %v1349_v51, %v1237_v35  ;;  %v1732_v31 = vsub.f32 1.5, %v1731_v36  ;;  %v5581_v50 = vmax.f32 %v5361_v61, 1e-24 }
 0x14b   : > { %v1781_v56 = vmul.f32 0.5, %v1780_v55  ;;  %v1364_v5 = vmul.f32 %v1348_v34, %v1236_v7  ;;  %4144 = vtanh.f32 %v1319_v32  ;;  %v1206_v32 = vmul.f32 %v5474_v25, %v5288_v15  ;;  %v5510_v15 = vld [vmem:[%s6862_s8] ss:$0 sm:$0xff] }
 0x14c   : > { %4146 = vrsqrt.f32 %v5465_v6  ;;  %v1288_v55 = vmul.f32 %v1272_v54, %v5415_v18  ;;  %v1238_v34 = vmul.f32 0.5, %v5359_v43  ;;  %v1733_v8 = vmul.f32 %v5412_v38, %v1732_v31 }
 0x14d   : > { %v5468_v22 = vpop.f32.mrf.mxu2  ;;  %v1380_v16 = vmul.f32 %v1364_v5, %v5326_v33  ;;  %v1782_v1 = vsub.f32 1.5, %v1781_v56  ;;  %v1273_v33 = vmul.f32 %v1257_v59, %v5459_v4  ;;  %v5525_v51 = vmul.f32 %v4987_v60, %v1206_v32 }
 0x14e   : > { %v5481_v9 = vmax.f32 %v5468_v22, 1e-24  ;;  %v5484_v12 = vpop.eup %4138  ;;  %v1304_v54 = vadd.f32 %v1288_v55, %v5415_v18  ;;  %v5540_v36 = vmul.f32 %v5510_v15, %v1878_v17 }
 0x14f   : > { %v1789_v30 = vmul.f32 %v5484_v12, %v5441_v57  ;;  %v5495_v39 = vpop.eup %4140  ;;  %v1396_v37 = vmul.f32 %v1380_v16, %v5195_v26  ;;  %v1783_v56 = vmul.f32 %v5426_v49, %v1782_v1  ;;  %vm1795_vm4 = vweird.f32 %v5484_v12 }
 0x150   : > { %4148 = vrsqrt.f32 %v5481_v9  ;;  %v4143_v19 = vpop.eup %4142  ;;  %v1739_v26 = vmul.f32 %v5495_v39, %v5434_v0  ;;  %v1289_v43 = vmul.f32 %v1273_v33, %v5459_v4  ;;  %v1381_v57 = vmul.f32 %v1365_v52, %v5252_v29  ;;  %vm1796_vm6 = vmor %vm1794_vm3, %vm1795_vm4 }
 0x151   : > { %v1790_v63 = vmul.f32 %v5484_v12, %v1789_v30  ;;  %v4145_v27 = vpop.eup %4144  ;;  %v1407_v7 = vpack.c.bf16 %v1396_v37, %v1395_v28  ;;  %v1350_v60 = vadd.f32 1.0, %v4143_v19  ;;  %v1239_v1 = vmul.f32 0.5, %v5345_v41 }
 0x152   : > { %v5522_v35 = vpop.eup %4146  ;;  %v1740_v16 = vmul.f32 %v5495_v39, %v1739_v26  ;;  %v5556_v37 = vsel %vm1786_vm1, %v5426_v49, %v1783_v56  ;;  %v1320_v42 = vmul.f32 0.7978846, %v1304_v54  ;;  %v1351_v55 = vadd.f32 1.0, %v4145_v27 }
 0x153   : > { %v1791_v48 = vmul.f32 0.5, %v1790_v63  ;;  %1503 = vmatmul.bf16.gmra.mxu1 %v1407_v7  ;;  %v1258_v63 = vmul.f32 0.044715, %v5525_v51  ;;  %v5560_v33 = vsel %vm1736_vm5, %v5412_v38, %v1733_v8  ;;  %v1749_v29 = vmul.f32 %v5522_v35, %v5465_v6 }
 0x154   : > { %v1366_v52 = vmul.f32 %v1350_v60, %v1238_v34  ;;  %v1305_v28 = vadd.f32 %v1289_v43, %v5459_v4  ;;  %v1930_v17 = vmul.f32 0.044715, %v5540_v36  ;;  %v1741_v41 = vmul.f32 0.5, %v1740_v16 }
 0x155   : > { %v1792_v5 = vsub.f32 1.5, %v1791_v48  ;;  %4150 = vrsqrt.f32 %v5548_v62  ;;  %v5567_v49 = vpop.f32.mrf.mxu2  ;;  %v1884_v31 = vmul.f32 %v5556_v37, %v5389_v21  ;;  %v1879_v48 = vmul.f32 %v5560_v33, %v5203_v23 }
 0x156   : > { %v5529_v59 = vpop.eup %4148  ;;  %v5576_v26 = vmax.f32 %v5567_v49, 1e-24  ;;  %4152 = vtanh.f32 %v1320_v42  ;;  %v1274_v27 = vmul.f32 %v1258_v63, %v5525_v51  ;;  %v1750_v7 = vmul.f32 %v5522_v35, %v1749_v29 }
 0x157   : > { %v1793_v30 = vmul.f32 %v5484_v12, %v1792_v5  ;;  %v1799_v32 = vmul.f32 %v5529_v59, %v5481_v9  ;;  %v1382_v21 = vmul.f32 %v1366_v52, %v5320_v58  ;;  %v1946_v34 = vmul.f32 %v1930_v17, %v5540_v36 }
 0x158   : > { %4154 = vrsqrt.f32 %v5576_v26  ;;  %v1397_v23 = vmul.f32 %v1381_v57, %v4976_v40  ;;  %v1742_v5 = vsub.f32 1.5, %v1741_v41  ;;  %v5592_v54 = vmul.f32 %v5510_v15, %v1884_v31 }
 0x159   : > { %v5572_v19 = vsel %vm1796_vm6, %v5484_v12, %v1793_v30  ;;  %v1800_v38 = vmul.f32 %v5529_v59, %v1799_v32  ;;  %v1321_v12 = vmul.f32 0.7978846, %v1305_v28  ;;  %v1367_v43 = vmul.f32 %v1351_v55, %v1239_v1 }
 0x15a   : > { %v1885_v56 = vmul.f32 %v5572_v19, %v5423_v13  ;;  %v5597_v58 = vmul.f32 %v5510_v15, %v1879_v48  ;;  %4156 = vrsqrt.f32 %v5581_v50  ;;  %v1290_v16 = vmul.f32 %v1274_v27, %v5525_v51 }
 0x15b   : > { %v1801_v8 = vmul.f32 0.5, %v1800_v38  ;;  %v5594_v60 = vpop.eup %4150  ;;  %vm1745_vm8 = vweird.f32 %v5495_v39  ;;  %v1751_v40 = vmul.f32 0.5, %v1750_v7  ;;  %v1398_v13 = vmul.f32 %v1382_v21, %v5006_v44 }
 0x15c   : > { %v4153_v57 = vpop.eup %4152  ;;  %4158 = vtanh.f32 %v1321_v12  ;;  %v1962_v30 = vmul.f32 %v1946_v34, %v5540_v36  ;;  %v5607_v32 = vmul.f32 %v5510_v15, %v1885_v56  ;;  %v1743_v42 = vmul.f32 %v5495_v39, %v1742_v5  ;;  %vm1746_vm11 = vmor %vm1744_vm7, %vm1745_vm8 }
 0x15d   : > { %v1759_v63 = vmul.f32 %v5594_v60, %v5548_v62  ;;  %v1936_v55 = vmul.f32 0.044715, %v5592_v54  ;;  %v1802_v29 = vsub.f32 1.5, %v1801_v8  ;;  %v1931_v44 = vmul.f32 0.044715, %v5597_v58 }
 0x15e   : > { %v4155_v1 = vpop.eup %4154  ;;  %vm1755_vm12 = vweird.f32 %v5522_v35  ;;  %v1306_v28 = vadd.f32 %v1290_v16, %v5525_v51  ;;  %v1752_v17 = vsub.f32 1.5, %v1751_v40  ;;  %v1408_v41 = vpack.c.bf16 %v1398_v13, %v1397_v23  ;;  %v5632_v23 = vpop.f32.mrf.mxu2 }
 0x15f   : > { %v1809_v52 = vmul.f32 %v4155_v1, %v5576_v26  ;;  %v1240_v31 = vmul.f32 0.5, %v5415_v18  ;;  %v1352_v38 = vadd.f32 1.0, %v4153_v57  ;;  %v1937_v27 = vmul.f32 0.044715, %v5607_v32  ;;  %vm1756_vm3 = vmor %vm1754_vm9, %vm1755_vm12 }
 0x160   : > { %v5620_v48 = vpop.eup %4156  ;;  %vm1804_vm13 = vweird.f32 %v5481_v9  ;;  %vm1805_vm14 = vweird.f32 %v5529_v59  ;;  %v5626_v7 = vsel %vm1746_vm11, %v5495_v39, %v1743_v42  ;;  %v1760_v21 = vmul.f32 %v5594_v60, %v1759_v63 }
 0x161   : > { %v1810_v0 = vmul.f32 %v4155_v1, %v1809_v52  ;;  %v1952_v12 = vmul.f32 %v1936_v55, %v5592_v54  ;;  %v1803_v34 = vmul.f32 %v5529_v59, %v1802_v29  ;;  %vm1814_vm15 = vweird.f32 %v5576_v26  ;;  %vm1806_vm1 = vmor %vm1804_vm13, %vm1805_vm14 }
 0x162   : > { %v4159_v18 = vpop.eup %4158  ;;  %vm1815_vm0 = vweird.f32 %v4155_v1  ;;  %v1322_v5 = vmul.f32 0.7978846, %v1306_v28  ;;  %v1753_v8 = vmul.f32 %v5522_v35, %v1752_v17  ;;  %v1769_v39 = vmul.f32 %v5620_v48, %v5581_v50 }
 0x163   : > { %1508 = vmatmul.bf16.gmra.mxu1 %v1408_v41  ;;  %v1811_v56 = vmul.f32 0.5, %v1810_v0  ;;  %v5642_v16 = vmax.f32 %v5632_v23, 1e-24  ;;  %v1368_v40 = vmul.f32 %v1352_v38, %v1240_v31  ;;  %v1947_v13 = vmul.f32 %v1931_v44, %v5597_v58  ;;  %vm1816_vm4 = vmor %vm1814_vm15, %vm1815_vm0 }
 0x164   : > { %v1953_v57 = vmul.f32 %v1937_v27, %v5607_v32  ;;  %v1383_v63 = vmul.f32 %v1367_v43, %v5308_v3  ;;  %v1880_v9 = vmul.f32 %v5626_v7, %v5242_v11  ;;  %v1761_v55 = vmul.f32 0.5, %v1760_v21 }
 0x165   : > { %v1812_v42 = vsub.f32 1.5, %v1811_v56  ;;  %4160 = vrsqrt.f32 %v5642_v16  ;;  %v1968_v29 = vmul.f32 %v1952_v12, %v5592_v54  ;;  %v5659_v6 = vsel %vm1806_vm1, %v5529_v59, %v1803_v34 }
 0x166   : > { %4162 = vtanh.f32 %v1322_v5  ;;  %v1978_v52 = vadd.f32 %v1962_v30, %v5540_v36  ;;  %v5663_v3 = vsel %vm1756_vm3, %v5522_v35, %v1753_v8  ;;  %v1770_v11 = vmul.f32 %v5620_v48, %v1769_v39 }
 0x167   : > { %v1813_v44 = vmul.f32 %v4155_v1, %v1812_v42  ;;  %v1384_v43 = vmul.f32 %v1368_v40, %v5382_v2  ;;  %v1963_v26 = vmul.f32 %v1947_v13, %v5597_v58  ;;  %v1969_v28 = vmul.f32 %v1953_v57, %v5607_v32 }
 0x168   : > { %v1399_v59 = vmul.f32 %v1383_v63, %v5037_v14  ;;  %v5673_v41 = vmul.f32 %v5510_v15, %v1880_v9  ;;  %v1886_v30 = vmul.f32 %v5659_v6, %v5468_v22  ;;  %v1241_v31 = vmul.f32 0.5, %v5459_v4 }
 0x169   : > { %v5669_v17 = vsel %vm1816_vm4, %v4155_v1, %v1813_v44  ;;  %v1881_v2 = vmul.f32 %v5663_v3, %v5280_v45  ;;  %v1762_v38 = vsub.f32 1.5, %v1761_v55  ;;  %v1984_v1 = vadd.f32 %v1968_v29, %v5592_v54  ;;  %v5702_v55 = vpop.f32.mrf.mxu2 }
 0x16a   : > { %v1887_v35 = vmul.f32 %v5669_v17, %v5567_v49  ;;  %v1353_v0 = vadd.f32 1.0, %v4159_v18  ;;  %v1994_v14 = vmul.f32 0.7978846, %v1978_v52  ;;  %v1771_v21 = vmul.f32 0.5, %v1770_v11 }
 0x16b   : > { %v4161_v27 = vpop.eup %4160  ;;  %v1400_v12 = vmul.f32 %v1384_v43, %v5067_v47  ;;  %v1979_v22 = vadd.f32 %v1963_v26, %v5597_v58  ;;  %vm1764_vm5 = vweird.f32 %v5548_v62  ;;  %v1985_v49 = vadd.f32 %v1969_v28, %v5607_v32 }
 0x16c   : > { %v4163_v34 = vpop.eup %4162  ;;  %v1819_v4 = vmul.f32 %v4161_v27, %v5642_v16  ;;  %v1932_v45 = vmul.f32 0.044715, %v5673_v41  ;;  %vm1765_vm6 = vweird.f32 %v5594_v60  ;;  %v5691_v56 = vmul.f32 %v5510_v15, %v1886_v30 }
 0x16d   : > { %v5694_v18 = vmul.f32 %v5510_v15, %v1887_v35  ;;  %v5697_v47 = vmul.f32 %v5510_v15, %v1881_v2  ;;  %v1763_v5 = vmul.f32 %v5594_v60, %v1762_v38  ;;  %v2000_v8 = vmul.f32 0.7978846, %v1984_v1  ;;  %vm1766_vm9 = vmor %vm1764_vm5, %vm1765_vm6 }
 0x16e   : > { %v1820_v39 = vmul.f32 %v4161_v27, %v1819_v4  ;;  %v1772_v40 = vsub.f32 1.5, %v1771_v21  ;;  %v1409_v13 = vpack.c.bf16 %v1400_v12, %v1399_v59  ;;  %v1242_v57 = vmul.f32 0.5, %v5525_v51 }
 0x16f   : > { %v1354_v42 = vadd.f32 1.0, %v4163_v34  ;;  %v2001_v63 = vmul.f32 0.7978846, %v1985_v49  ;;  %vm1824_vm7 = vweird.f32 %v5642_v16  ;;  %vm1825_vm8 = vweird.f32 %v4161_v27 }
 0x170   : > { %v1821_v9 = vmul.f32 0.5, %v1820_v39  ;;  %v1369_v29 = vmul.f32 %v1353_v0, %v1241_v31  ;;  %v1938_v44 = vmul.f32 0.044715, %v5691_v56  ;;  %v1939_v52 = vmul.f32 0.044715, %v5694_v18  ;;  %vm1826_vm13 = vmor %vm1824_vm7, %vm1825_vm8 }
 0x171   : > { %v5711_v51 = vmax.f32 %v5702_v55, 1e-24  ;;  %v1995_v11 = vmul.f32 0.7978846, %v1979_v22  ;;  %vm1774_vm11 = vweird.f32 %v5581_v50  ;;  %4164 = vtanh.f32 %v2000_v8 }
 0x172   : > { %v1822_v43 = vsub.f32 1.5, %v1821_v9  ;;  %v1933_v26 = vmul.f32 0.044715, %v5697_v47  ;;  %vm1775_vm12 = vweird.f32 %v5620_v48  ;;  %v1370_v62 = vmul.f32 %v1354_v42, %v1242_v57 }
 0x173   : > { %1513 = vmatmul.bf16.gmra.mxu1 %v1409_v13  ;;  %4166 = vrsqrt.f32 %v5711_v51  ;;  %v5720_v28 = vsel %vm1766_vm9, %v5594_v60, %v1763_v5  ;;  %v1773_v30 = vmul.f32 %v5620_v48, %v1772_v40  ;;  %v1954_v35 = vmul.f32 %v1938_v44, %v5691_v56  ;;  %vm1776_vm14 = vmor %vm1774_vm11, %vm1775_vm12 }
 0x174   : > { %4168 = vtanh.f32 %v2001_v63  ;;  %v1823_v59 = vmul.f32 %v4161_v27, %v1822_v43  ;;  %v1955_v31 = vmul.f32 %v1939_v52, %v5694_v18  ;;  %v1385_v2 = vmul.f32 %v1369_v29, %v5418_v20 }
 0x175   : > { %4170 = vtanh.f32 %v1994_v14  ;;  %v1948_v16 = vmul.f32 %v1932_v45, %v5673_v41  ;;  %v1949_v60 = vmul.f32 %v1933_v26, %v5697_v47  ;;  %v1882_v1 = vmul.f32 %v5720_v28, %v5322_v10 }
 0x176   : > { %4172 = vtanh.f32 %v1995_v11  ;;  %v5729_v38 = vsel %vm1826_vm13, %v4161_v27, %v1823_v59  ;;  %v1386_v14 = vmul.f32 %v1370_v62, %v5474_v25  ;;  %v1914_v12 = vmul.f32 0.5, %v5540_v36 }
 0x177   : > { %v1888_v0 = vmul.f32 %v5729_v38, %v5632_v23  ;;  %v4165_v21 = vpop.eup %4164  ;;  %v5739_v34 = vsel %vm1776_vm14, %v5620_v48, %v1773_v30  ;;  %v1970_v50 = vmul.f32 %v1954_v35, %v5691_v56  ;;  %v1971_v27 = vmul.f32 %v1955_v31, %v5694_v18 }
 0x178   : > { %v1401_v49 = vmul.f32 %v1385_v2, %v5092_v53  ;;  %v1915_v10 = vmul.f32 0.5, %v5597_v58  ;;  %v1964_v36 = vmul.f32 %v1948_v16, %v5673_v41  ;;  %v1965_v48 = vmul.f32 %v1949_v60, %v5697_v47 }
 0x179   : > { %v4167_v20 = vpop.eup %4166  ;;  %v5746_v23 = vmul.f32 %v5510_v15, %v1888_v0  ;;  %v5752_v45 = vmul.f32 %v5510_v15, %v1882_v1  ;;  %v1402_v5 = vmul.f32 %v1386_v14, %v5119_v24  ;;  %v1883_v53 = vmul.f32 %v5739_v34, %v5361_v61  ;;  %v5763_v24 = vpop.f32.mrf.mxu2 }
 0x17a   : > { %v4169_v22 = vpop.eup %4168  ;;  %v1829_v25 = vmul.f32 %v4167_v20, %v5711_v51  ;;  %v1920_v58 = vmul.f32 0.5, %v5592_v54  ;;  %v1921_v39 = vmul.f32 0.5, %v5607_v32  ;;  %v2032_v13 = vadd.f32 1.0, %v4165_v21 }
 0x17b   : > { %v4171_v4 = vpop.eup %4170  ;;  %v2033_v57 = vadd.f32 1.0, %v4169_v22  ;;  %v1986_v42 = vadd.f32 %v1970_v50, %v5691_v56  ;;  %v1987_v63 = vadd.f32 %v1971_v27, %v5694_v18  ;;  %v1940_v9 = vmul.f32 0.044715, %v5746_v23 }
 0x17c   : > { %v4173_v8 = vpop.eup %4172  ;;  %v1830_v40 = vmul.f32 %v4167_v20, %v1829_v25  ;;  %vm1834_vm15 = vweird.f32 %v5711_v51  ;;  %vm1835_vm0 = vweird.f32 %v4167_v20  ;;  %v2026_v61 = vadd.f32 1.0, %v4171_v4 }
 0x17d   : > { %v1980_v54 = vadd.f32 %v1964_v36, %v5673_v41  ;;  %v5767_v32 = vmax.f32 %v5763_v24, 1e-24  ;;  %v1410_v44 = vpack.c.bf16 %v1402_v5, %v1401_v49  ;;  %v2027_v52 = vadd.f32 1.0, %v4173_v8  ;;  %vm1836_vm1 = vmor %vm1834_vm15, %vm1835_vm0 }
 0x17e   : > { %v1831_v29 = vmul.f32 0.5, %v1830_v40  ;;  %v1981_v11 = vadd.f32 %v1965_v48, %v5697_v47  ;;  %v1934_v43 = vmul.f32 0.044715, %v5752_v45  ;;  %v5772_v62 = vmul.f32 %v5510_v15, %v1883_v53 }
 0x17f   : > { %v2048_v51 = vmul.f32 %v2032_v13, %v1920_v58  ;;  %v2002_v59 = vmul.f32 0.7978846, %v1986_v42  ;;  %4174 = vrsqrt.f32 %v5767_v32  ;;  %v2049_v30 = vmul.f32 %v2033_v57, %v1921_v39 }
 0x180   : > { %v1832_v26 = vsub.f32 1.5, %v1831_v29  ;;  %v2003_v35 = vmul.f32 0.7978846, %v1987_v63  ;;  %v1956_v31 = vmul.f32 %v1940_v9, %v5746_v23  ;;  %v2042_v16 = vmul.f32 %v2026_v61, %v1914_v12 }
 0x181   : > { %v2043_v60 = vmul.f32 %v2027_v52, %v1915_v10  ;;  %v1996_v1 = vmul.f32 0.7978846, %v1980_v54  ;;  %v1997_v0 = vmul.f32 0.7978846, %v1981_v11  ;;  %v1950_v21 = vmul.f32 %v1934_v43, %v5752_v45  ;;  %v5795_v8 = vpop.f32.mrf.mxu2 }
 0x182   : > { %v1833_v2 = vmul.f32 %v4167_v20, %v1832_v26  ;;  %v1935_v50 = vmul.f32 0.044715, %v5772_v62  ;;  %4176 = vtanh.f32 %v2002_v59  ;;  %v2064_v22 = vmul.f32 %v2048_v51, %v5556_v37 }
 0x183   : > { %1518 = vmatmul.bf16.gmra.mxu1 %v1410_v44  ;;  %v2065_v49 = vmul.f32 %v2049_v30, %v5572_v19  ;;  %4178 = vtanh.f32 %v2003_v35  ;;  %v1972_v12 = vmul.f32 %v1956_v31, %v5746_v23  ;;  %v1966_v36 = vmul.f32 %v1950_v21, %v5752_v45 }
 0x184   : > { %v5776_v14 = vsel %vm1836_vm1, %v4167_v20, %v1833_v2  ;;  %v2058_v20 = vmul.f32 %v2042_v16, %v5489_v46  ;;  %4180 = vtanh.f32 %v1996_v1  ;;  %v2059_v19 = vmul.f32 %v2043_v60, %v5560_v33 }
 0x185   : > { %v1889_v27 = vmul.f32 %v5776_v14, %v5702_v55  ;;  %v4175_v10 = vpop.eup %4174  ;;  %4182 = vtanh.f32 %v1997_v0  ;;  %v1951_v55 = vmul.f32 %v1935_v50, %v5772_v62  ;;  %v1988_v48 = vadd.f32 %v1972_v12, %v5746_v23 }
 0x186   : > { %v1839_v4 = vmul.f32 %v4175_v10, %v5767_v32  ;;  %v2077_v53 = vpack.c.bf16 %v2065_v49, %v2064_v22  ;;  %v5799_v39 = vmax.f32 %v5795_v8, 1e-24  ;;  %vm1844_vm3 = vweird.f32 %v5767_v32 }
 0x187   : > { %v5786_v25 = vmul.f32 %v5510_v15, %v1889_v27  ;;  %vm1845_vm4 = vweird.f32 %v4175_v10  ;;  %v1982_v33 = vadd.f32 %v1966_v36, %v5752_v45  ;;  %v1967_v57 = vmul.f32 %v1951_v55, %v5772_v62 }
 0x188   : > { %v1840_v5 = vmul.f32 %v4175_v10, %v1839_v4  ;;  %v4177_v58 = vpop.eup %4176  ;;  %3739 = vmatmul.msk.bf16.vlgmr.msra.gmra.mxu3 %vm925_vm10, %v2077_v53  ;;  %4184 = vrsqrt.f32 %v5799_v39  ;;  %v1922_v9 = vmul.f32 0.5, %v5691_v56  ;;  %v2004_v29 = vmul.f32 0.7978846, %v1988_v48  ;;  %vm1846_vm5 = vmor %vm1844_vm3, %vm1845_vm4 }
 0x189   : > { %v1941_v37 = vmul.f32 0.044715, %v5786_v25  ;;  %v4179_v40 = vpop.eup %4178  ;;  %v2074_v54 = vpack.c.bf16 %v2059_v19, %v2058_v20  ;;  %v2034_v52 = vadd.f32 1.0, %v4177_v58  ;;  %v1923_v11 = vmul.f32 0.5, %v5694_v18  ;;  %v5819_v60 = vpop.f32.mrf.mxu2 }
 0x18a   : > { %v1841_v13 = vmul.f32 0.5, %v1840_v5  ;;  %v4181_v63 = vpop.eup %4180  ;;  %v2035_v43 = vadd.f32 1.0, %v4179_v40  ;;  %v1916_v51 = vmul.f32 0.5, %v5673_v41  ;;  %v1917_v56 = vmul.f32 0.5, %v5697_v47 }
 0x18b   : > { %v1957_v46 = vmul.f32 %v1941_v37, %v5786_v25  ;;  %v4183_v44 = vpop.eup %4182  ;;  %v2028_v30 = vadd.f32 1.0, %v4181_v63  ;;  %v1983_v35 = vadd.f32 %v1967_v57, %v5772_v62  ;;  %v1998_v18 = vmul.f32 0.7978846, %v1982_v33  ;;  %v4270_v37 = vld [vmem:[%s4417_s18] sm:$0xff] }
 0x18c   : > { %v1842_v61 = vsub.f32 1.5, %v1841_v13  ;;  %v2029_v2 = vadd.f32 1.0, %v4183_v44  ;;  %4186 = vtanh.f32 %v2004_v29  ;;  %v2050_v1 = vmul.f32 %v2034_v52, %v1922_v9 }
 0x18d   : > { %v1973_v42 = vmul.f32 %v1957_v46, %v5786_v25  ;;  %v2051_v41 = vmul.f32 %v2035_v43, %v1923_v11  ;;  %v1999_v21 = vmul.f32 0.7978846, %v1983_v35  ;;  %v2044_v27 = vmul.f32 %v2028_v30, %v1916_v51  ;;  %v4271_v11 = vld [vmem:[%s4417_s18 + $0x8] sm:$0xff] }
 0x18e   : > { %v1843_v59 = vmul.f32 %v4175_v10, %v1842_v61  ;;  %v4185_v32 = vpop.eup %4184  ;;  %v2045_v22 = vmul.f32 %v2029_v2, %v1917_v56  ;;  %v2066_v12 = vmul.f32 %v2050_v1, %v5659_v6  ;;  %vm1854_vm6 = vweird.f32 %v5799_v39 }
 0x18f   : > { %v1989_v26 = vadd.f32 %v1973_v42, %v5786_v25  ;;  %v1849_v0 = vmul.f32 %v4185_v32, %v5799_v39  ;;  %vm1855_vm7 = vweird.f32 %v4185_v32  ;;  %v1716_v55 = vmax.f32 %v5819_v60, 1e-24 }
 0x190   : > { %v5817_v16 = vsel %vm1846_vm5, %v4175_v10, %v1843_v59  ;;  %v2067_v10 = vmul.f32 %v2051_v41, %v5669_v17  ;;  %v2060_v48 = vmul.f32 %v2044_v27, %v5626_v7  ;;  %v2061_v5 = vmul.f32 %v2045_v22, %v5663_v3  ;;  %vm1856_vm8 = vmor %vm1854_vm6, %vm1855_vm7 }
 0x191   : > { %v2005_v31 = vmul.f32 0.7978846, %v1989_v26  ;;  %v1890_v47 = vmul.f32 %v5817_v16, %v5763_v24  ;;  %v1850_v49 = vmul.f32 %v4185_v32, %v1849_v0  ;;  %v1484_v24 = vpop.f32.mrf.mxu1  ;;  %v5844_v58 = vpop.f32.mrf.mxu2  ;;  %v1924_v46 = vmul.f32 0.5, %v5746_v23 }
 0x192   : > { %v4187_v4 = vpop.eup %4186  ;;  %v1485_v6 = vadd.f32 %v4270_v37, %v1484_v24  ;;  %v5852_v13 = vmax.f32 %v5844_v58, 1e-24  ;;  %v2078_v7 = vpack.c.bf16 %v2067_v10, %v2066_v12  ;;  %v1925_v57 = vmul.f32 0.5, %v5786_v25  ;;  %v3814_v12 = vld [vmem:[%s6860_s6 + $0x80] sm:$0xf] }
 0x193   : > { %3736 = vmatmul.msk.bf16.vlgmr.msrb.gmra.mxu1 %vm925_vm10, %v2074_v54  ;;  %4188 = vtanh.f32 %v2005_v31  ;;  %v5825_v50 = vmul.f32 %v5510_v15, %v1890_v47  ;;  %v1851_v36 = vmul.f32 0.5, %v1850_v49  ;;  %v2036_v3 = vadd.f32 1.0, %v4187_v4  ;;  %v3973_v10 = vld [vmem:[%s6860_s6 + $0x88] sm:$0xf0] }
 0x194   : > { %4190 = vtanh.f32 %v1998_v18  ;;  %1524 = vst.msk [vmem:[%s5835_s22] sm:$0xff] %vm925_vm10, %v1485_v6  ;;  %v2075_v54 = vpack.c.bf16 %v2061_v5, %v2060_v48  ;;  %v1918_v30 = vmul.f32 0.5, %v5752_v45  ;;  %v1919_v35 = vmul.f32 0.5, %v5772_v62  ;;  %v3802_v6 = vld [vmem:[%s6860_s6 + $0x68] sm:$0xf] }
 0x195   : > { %v1942_v20 = vmul.f32 0.044715, %v5825_v50  ;;  %4192 = vtanh.f32 %v1999_v21  ;;  %v1852_v53 = vsub.f32 1.5, %v1851_v36  ;;  %v2052_v52 = vmul.f32 %v2036_v3, %v1924_v46 }
 0x196   : > { %4194 = vrsqrt.f32 %v1716_v55  ;;  %vm1864_vm9 = vweird.f32 %v1716_v55  ;;  %vm1874_vm13 = vweird.f32 %v5852_v13 }
 0x197   : > { %v1958_v17 = vmul.f32 %v1942_v20, %v5825_v50  ;;  %v1853_v63 = vmul.f32 %v4185_v32, %v1852_v53  ;;  %4196 = vrsqrt.f32 %v5852_v13  ;;  %v4272_v20 = vld [vmem:[%s4417_s18 + $0x10] sm:$0xff] }
 0x198   : > { %3740 = vmatmul.msk.bf16.gmra.mxu3 %vm925_vm10, %v2078_v7 }
 0x199   : > { %v4189_v19 = vpop.eup %4188  ;;  %v1974_v40 = vmul.f32 %v1958_v17, %v5825_v50  ;;  %v5858_v23 = vsel %vm1856_vm8, %v4185_v32, %v1853_v63  ;;  %v1486_v61 = vpop.f32.mrf.mxu1  ;;  %v2068_v32 = vmul.f32 %v2052_v52, %v5729_v38  ;;  %v3967_v52 = vld [vmem:[%s6860_s6 + $0x58] sm:$0xf0]  ;;  %v4275_v38 = vld [vmem:[%s4417_s18 + $0x28] sm:$0xff] }
 0x19a   : > { %v4191_v33 = vpop.eup %4190  ;;  %v2037_v42 = vadd.f32 1.0, %v4189_v19  ;;  %v1891_v29 = vmul.f32 %v5858_v23, %v5795_v8  ;;  %v1487_v43 = vadd.f32 %v4271_v11, %v1486_v61  ;;  %v3970_v19 = vld [vmem:[%s6860_s6 + $0x70] sm:$0xf0] }
 0x19b   : > { %v1990_v9 = vadd.f32 %v1974_v40, %v5825_v50  ;;  %v4193_v39 = vpop.eup %4192  ;;  %v2030_v56 = vadd.f32 1.0, %v4191_v33  ;;  %v3803_v7 = vor.u32 %v3970_v19, %v3802_v6  ;;  %v3964_v6 = vld [vmem:[%s6860_s6 + $0x40] sm:$0xf0] }
 0x19c   : > { %v4195_v44 = vpop.eup %4194  ;;  %v2053_v25 = vmul.f32 %v2037_v42, %v1925_v57  ;;  %v5864_v51 = vmul.f32 %v5510_v15, %v1891_v29  ;;  %1525 = vst.msk [vmem:[%s5835_s22 + $0x8] sm:$0xff] %vm925_vm10, %v1487_v43  ;;  %v2031_v31 = vadd.f32 1.0, %v4193_v39 }
 0x19d   : > { %v2006_v26 = vmul.f32 0.7978846, %v1990_v9  ;;  %v1859_v59 = vmul.f32 %v4195_v44, %v1716_v55  ;;  %v4197_v8 = vpop.eup %4196  ;;  %vm1865_vm11 = vweird.f32 %v4195_v44  ;;  %v2046_v0 = vmul.f32 %v2030_v56, %v1918_v30 }
 0x19e   : > { %v1943_v2 = vmul.f32 0.044715, %v5864_v51  ;;  %v2069_v1 = vmul.f32 %v2053_v25, %v5776_v14  ;;  %v1869_v41 = vmul.f32 %v4197_v8, %v5852_v13  ;;  %v2047_v62 = vmul.f32 %v2031_v31, %v1919_v35  ;;  %vm5877_vm12 = vmor %vm1864_vm9, %vm1865_vm11 }
 0x19f   : > { %v1860_v18 = vmul.f32 %v4195_v44, %v1859_v59  ;;  %4198 = vtanh.f32 %v2006_v26  ;;  %vm1875_vm14 = vweird.f32 %v4197_v8  ;;  %v3815_v55 = vor.u32 %v3973_v10, %v3814_v12  ;;  %v3808_v59 = vld [vmem:[%s6860_s6 + $0x84] sm:$0xf0] }
 0x1a0   : > { %v1959_v45 = vmul.f32 %v1943_v2, %v5864_v51  ;;  %v1870_v21 = vmul.f32 %v4197_v8, %v1869_v41  ;;  %v2079_v37 = vpack.c.bf16 %v2069_v1, %v2068_v32  ;;  %v2062_v17 = vmul.f32 %v2046_v0, %v5720_v28  ;;  %vm1876_vm15 = vmor %vm1874_vm13, %vm1875_vm14  ;;  %v4274_v41 = vld [vmem:[%s4417_s18 + $0x20] sm:$0xff] }
 0x1a1   : > { %v1861_v47 = vmul.f32 0.5, %v1860_v18  ;;  %v1489_v49 = vpop.f32.mrf.mxu1  ;;  %v2063_v53 = vmul.f32 %v2047_v62, %v5739_v34  ;;  %2439 = vmatpush.bf16.msra.mxu2 %v3815_v55  ;;  %v1926_v34 = vmul.f32 0.5, %v5825_v50 }
 0x1a2   : > { %v1975_v27 = vmul.f32 %v1959_v45, %v5864_v51  ;;  %v1871_v14 = vmul.f32 0.5, %v1870_v21  ;;  %v1490_v24 = vadd.f32 %v4272_v20, %v1489_v49  ;;  %v3972_v21 = vld [vmem:[%s6860_s6 + $0x80] sm:$0xf0] }
 0x1a3   : > { %3737 = vmatmul.msk.bf16.gmra.mxu1 %vm925_vm10, %v2075_v54  ;;  %v1862_v22 = vsub.f32 1.5, %v1861_v47  ;;  %v2076_v9 = vpack.c.bf16 %v2063_v53, %v2062_v17  ;;  %v1927_v54 = vmul.f32 0.5, %v5864_v51  ;;  %v3968_v20 = vld [vmem:[%s6860_s6 + $0x64] sm:$0xf] }
 0x1a4   : > { %v1991_v4 = vadd.f32 %v1975_v27, %v5864_v51  ;;  %v1872_v48 = vsub.f32 1.5, %v1871_v14  ;;  %1526 = vst.msk [vmem:[%s5835_s22 + $0x10] sm:$0xff] %vm925_vm10, %v1490_v24  ;;  %v3796_v24 = vld [vmem:[%s6860_s6 + $0x6c] sm:$0xf0] }
 0x1a5   : > { %v1863_v36 = vmul.f32 %v4195_v44, %v1862_v22  ;;  %v4199_v5 = vpop.eup %4198  ;;  %2440 = vmatpush.bf16.msra.mxu2 %v3803_v7  ;;  %v3799_v55 = vor.u32 %v3968_v20, %v3796_v24  ;;  %v4276_v7 = vld [vmem:[%s4417_s18 + $0x30] sm:$0xff]  ;;  %v3746_v20 = vld [vmem:[%s6860_s6] sm:$0xf]  ;;  %v3957_v24 = vld [vmem:[%s6860_s6 + $0x8] sm:$0xf0] }
 0x1a6   : > { %v2007_v46 = vmul.f32 0.7978846, %v1991_v4  ;;  %v1873_v33 = vmul.f32 %v4197_v8, %v1872_v48  ;;  %v2038_v3 = vadd.f32 1.0, %v4199_v5 }
 0x1a7   : > { %v5902_v40 = vsel %vm5877_vm12, %v4195_v44, %v1863_v36 }
 0x1a8   : > { %v1892_v28 = vmul.f32 %v5902_v40, %v5819_v60  ;;  %4200 = vtanh.f32 %v2007_v46  ;;  %3741 = vmatmul.msk.bf16.gmra.mxu3 %vm925_vm10, %v2079_v37  ;;  %v5912_v42 = vsel %vm1876_vm15, %v4197_v8, %v1873_v33  ;;  %v4273_v60 = vld [vmem:[%s4417_s18 + $0x18] sm:$0xff]  ;;  %v2054_v50 = vmul.f32 %v2038_v3, %v1926_v34  ;;  %v3794_v34 = vld [vmem:[%s6860_s6 + $0x60] sm:$0xf]  ;;  %v3969_v3 = vld [vmem:[%s6860_s6 + $0x68] sm:$0xf0] }
 0x1a9   : > { %v1893_v13 = vmul.f32 %v5912_v42, %v5844_v58  ;;  %v1491_v63 = vpop.f32.mrf.mxu1  ;;  %v3790_v58 = vld [vmem:[%s6860_s6 + $0x50] sm:$0xf]  ;;  %v3778_v37 = vld [vmem:[%s6860_s6 + $0x38] sm:$0xf] }
 0x1aa   : > { %v1912_v57 = vmul.f32 %v5510_v15, %v1892_v28  ;;  %v1492_v29 = vadd.f32 %v4273_v60, %v1491_v63  ;;  %v3791_v43 = vor.u32 %v3967_v52, %v3790_v58  ;;  %v2070_v8 = vmul.f32 %v2054_v50, %v5817_v16  ;;  %v3806_v16 = vld [vmem:[%s6860_s6 + $0x78] sm:$0xf]  ;;  %v3965_v63 = vld [vmem:[%s6860_s6 + $0x4c] sm:$0xf]  ;;  %v3782_v60 = vld [vmem:[%s6860_s6 + $0x48] sm:$0xf] }
 0x1ab   : > { %v1913_v61 = vmul.f32 %v5510_v15, %v1893_v13  ;;  %v3971_v15 = vld [vmem:[%s6860_s6 + $0x7c] sm:$0xf]  ;;  %v3779_v17 = vor.u32 %v3964_v6, %v3778_v37  ;;  %v3962_v58 = vld [vmem:[%s6860_s6 + $0x34] sm:$0xf]  ;;  %v3772_v52 = vld [vmem:[%s6860_s6 + $0x3c] sm:$0xf0] }
 0x1ac   : > { %v1944_v39 = vmul.f32 0.044715, %v1912_v57  ;;  %1527 = vst.msk [vmem:[%s5835_s22 + $0x18] sm:$0xff] %vm925_vm10, %v1492_v29  ;;  %2441 = vmatpush.bf16.msra.mxu2 %v3791_v43  ;;  %v3811_v56 = vor.u32 %v3971_v15, %v3808_v59  ;;  %v1928_v27 = vmul.f32 0.5, %v1912_v57  ;;  %v3966_v29 = vld [vmem:[%s6860_s6 + $0x50] sm:$0xf0] }
 0x1ad   : > { %v1945_v11 = vmul.f32 0.044715, %v1913_v61  ;;  %v1929_v10 = vmul.f32 0.5, %v1913_v61  ;;  %v3961_v43 = vld [vmem:[%s6860_s6 + $0x28] sm:$0xf0] }
 0x1ae   : > { %v1960_v44 = vmul.f32 %v1944_v39, %v1912_v57  ;;  %v4201_v25 = vpop.eup %4200  ;;  %2390 = vmatpush.bf16.msrb.mxu3 %v3811_v56  ;;  %v3963_v56 = vld [vmem:[%s6860_s6 + $0x38] sm:$0xf0] }
 0x1af   : > { %v2039_v26 = vadd.f32 1.0, %v4201_v25  ;;  %v1961_v30 = vmul.f32 %v1945_v11, %v1913_v61  ;;  %v3775_v25 = vor.u32 %v3962_v58, %v3772_v52  ;;  %v3766_v11 = vld [vmem:[%s6860_s6 + $0x20] sm:$0xf]  ;;  %v4291_v52 = vld [vmem:[%s4924_s21 + $0x28] sm:$0xff] }
 0x1b0   : > { %v1976_v51 = vmul.f32 %v1960_v44, %v1912_v57  ;;  %2442 = vmatpush.bf16.msra.mxu2 %v3779_v17  ;;  %v3767_v15 = vor.u32 %v3961_v43, %v3766_v11 }
 0x1b1   : > { %v2055_v35 = vmul.f32 %v2039_v26, %v1927_v54  ;;  %v1977_v2 = vmul.f32 %v1961_v30, %v1913_v61  ;;  %v1494_v18 = vpop.f32.mrf.mxu1  ;;  %v4278_v54 = vld [vmem:[%s4417_s18 + $0x40] sm:$0xff]  ;;  %v3770_v30 = vld [vmem:[%s6860_s6 + $0x30] sm:$0xf] }
 0x1b2   : > { %v1992_v31 = vadd.f32 %v1976_v51, %v1912_v57  ;;  %v1495_v45 = vadd.f32 %v4274_v41, %v1494_v18  ;;  %2391 = vmatpush.bf16.msrb.mxu3 %v3799_v55  ;;  %v4279_v51 = vld [vmem:[%s4417_s18 + $0x48] sm:$0xff]  ;;  %v3959_v18 = vld [vmem:[%s6860_s6 + $0x1c] sm:$0xf] }
 0x1b3   : > { %3738 = vmatmul.msk.bf16.gmra.mxu1 %vm925_vm10, %v2076_v9  ;;  %v2071_v32 = vmul.f32 %v2055_v35, %v5858_v23  ;;  %v1993_v47 = vadd.f32 %v1977_v2, %v1913_v61  ;;  %v3807_v23 = vor.u32 %v3972_v21, %v3806_v16  ;;  %v3784_v9 = vld [vmem:[%s6860_s6 + $0x54] sm:$0xf0]  ;;  %v3783_v61 = vor.u32 %v3966_v29, %v3782_v60  ;;  %v3960_v16 = vld [vmem:[%s6860_s6 + $0x20] sm:$0xf0]  ;;  %v4283_v55 = vld [vmem:[%s4417_s18 + $0x68] sm:$0xff] }
 0x1b4   : > { %v2008_v1 = vmul.f32 0.7978846, %v1992_v31  ;;  %1528 = vst.msk [vmem:[%s5835_s22 + $0x20] sm:$0xff] %vm925_vm10, %v1495_v45  ;;  %v3787_v39 = vor.u32 %v3965_v63, %v3784_v9  ;;  %2443 = vmatpush.bf16.msra.mxu2 %v3767_v15  ;;  %v4280_v31 = vld [vmem:[%s4417_s18 + $0x50] sm:$0xff]  ;;  %v4281_v45 = vld [vmem:[%s4417_s18 + $0x58] sm:$0xff] }
 0x1b5   : > { %v2080_v0 = vpack.c.bf16 %v2071_v32, %v2070_v8  ;;  %v2009_v62 = vmul.f32 0.7978846, %v1993_v47  ;;  %2341 = vmatpush.bf16.msrb.mxu0 %v3807_v23  ;;  %v3771_v8 = vor.u32 %v3963_v56, %v3770_v30  ;;  %v3760_v32 = vld [vmem:[%s6860_s6 + $0x24] sm:$0xf0]  ;;  %v3958_v23 = vld [vmem:[%s6860_s6 + $0x10] sm:$0xf0] }
 0x1b6   : > { %4202 = vtanh.f32 %v2008_v1  ;;  %2392 = vmatpush.bf16.msrb.mxu3 %v3787_v39  ;;  %v3763_v1 = vor.u32 %v3959_v18, %v3760_v32  ;;  %v4289_v9 = vld [vmem:[%s4924_s21 + $0x18] sm:$0xff]  ;;  %v4294_v32 = vld [vmem:[%s4924_s21 + $0x40] sm:$0xff] }
 0x1b7   : > { %4204 = vtanh.f32 %v2009_v62  ;;  %v3754_v62 = vld [vmem:[%s6860_s6 + $0x8] sm:$0xf]  ;;  %v3997_v15 = vld [vmem:[%s6861_s7 + $0xb8] sm:$0xff] }
 0x1b8   : > { %3742 = vmatmul.msk.bf16.gmra.mxu3 %vm925_vm10, %v2080_v0  ;;  %v3758_v0 = vld [vmem:[%s6860_s6 + $0x18] sm:$0xf] }
 0x1b9   : > { %v1496_v22 = vpop.f32.mrf.mxu1  ;;  %v3759_v21 = vor.u32 %v3960_v16, %v3758_v0  ;;  %v4293_v30 = vld [vmem:[%s4924_s21 + $0x38] sm:$0xff]  ;;  %v3995_v16 = vld [vmem:[%s6861_s7 + $0xa8] sm:$0xff] }
 0x1ba   : > { %v1497_v14 = vadd.f32 %v4275_v38, %v1496_v22  ;;  %2393 = vmatpush.bf16.msrb.mxu3 %v3775_v25 }
 0x1bc   : > { %v4203_v49 = vpop.eup %4202  ;;  %1529 = vst.msk [vmem:[%s5835_s22 + $0x28] sm:$0xff] %vm925_vm10, %v1497_v14  ;;  %v3956_v14 = vld [vmem:[%s6860_s6 + $0x4] sm:$0xf] }
 0x1bd   : > { %v2040_v12 = vadd.f32 1.0, %v4203_v49  ;;  %v4205_v4 = vpop.eup %4204  ;;  %v4282_v49 = vld [vmem:[%s4417_s18 + $0x60] sm:$0xff] }
 0x1be   : > { %v2041_v19 = vadd.f32 1.0, %v4205_v4  ;;  %2394 = vmatpush.bf16.msrb.mxu3 %v3763_v1  ;;  %v3747_v4 = vor.u32 %v3957_v24, %v3746_v20  ;;  %v4299_v24 = vld [vmem:[%s4924_s21 + $0x68] sm:$0xff] }
 0x1bf   : > { %v2056_v36 = vmul.f32 %v2040_v12, %v1928_v27  ;;  %v3755_v27 = vor.u32 %v3958_v23, %v3754_v62  ;;  %v3748_v12 = vld [vmem:[%s6860_s6 + $0xc] sm:$0xf0] }
 0x1c0   : > { %v2057_v5 = vmul.f32 %v2041_v19, %v1929_v10  ;;  %v3751_v10 = vor.u32 %v3956_v14, %v3748_v12  ;;  %v4284_v19 = vld [vmem:[%s4417_s18 + $0x70] sm:$0xff]  ;;  %v3994_v14 = vld [vmem:[%s6861_s7 + $0xa0] sm:$0xff] }
 0x1c1   : > { %v2072_v48 = vmul.f32 %v2056_v36, %v5902_v40  ;;  %v1499_v53 = vpop.f32.mrf.mxu1  ;;  %v3795_v40 = vor.u32 %v3969_v3, %v3794_v34  ;;  %2444 = vmatpush.bf16.msra.mxu2 %v3755_v27  ;;  %v4287_v34 = vld [vmem:[%s4924_s21 + $0x8] sm:$0xff]  ;;  %v4296_v23 = vld [vmem:[%s4924_s21 + $0x50] sm:$0xff] }
 0x1c2   : > { %v2073_v46 = vmul.f32 %v2057_v5, %v5912_v42  ;;  %v1500_v28 = vadd.f32 %v4276_v7, %v1499_v53  ;;  %v4277_v42 = vld [vmem:[%s4417_s18 + $0x38] sm:$0xff]  ;;  %2395 = vmatpush.bf16.msrb.mxu3 %v3751_v10  ;;  %v4298_v10 = vld [vmem:[%s4924_s21 + $0x60] sm:$0xff] }
 0x1c3   : > { %2342 = vmatpush.bf16.msrb.mxu0 %v3795_v40  ;;  %v4285_v5 = vld [vmem:[%s4417_s18 + $0x78] sm:$0xff] }
 0x1c4   : > { %1530 = vst.msk [vmem:[%s5835_s22 + $0x30] sm:$0xff] %vm925_vm10, %v1500_v28  ;;  %v2081_v33 = vpack.c.bf16 %v2073_v46, %v2072_v48  ;;  %v4286_v28 = vld [vmem:[%s4924_s21] sm:$0xff] }
 0x1c6   : > { %3468 = vmatpush.bf16.msra.mxu3 %v3997_v15 }
 0x1c7   : > { %2343 = vmatpush.bf16.msrb.mxu0 %v3783_v61 }
 0x1c8   : > { %3743 = vmatmul.msk.bf16.gmra.mxu3 %vm925_vm10, %v2081_v33 }
 0x1c9   : > { %v1501_v57 = vpop.f32.mrf.mxu1 }
 0x1ca   : > { %v1502_v13 = vadd.f32 %v4277_v42, %v1501_v57 }
 0x1cb   : > { %2344 = vmatpush.bf16.msrb.mxu0 %v3771_v8 }
 0x1cc   : > { %1531 = vst.msk [vmem:[%s5835_s22 + $0x38] sm:$0xff] %vm925_vm10, %v1502_v13  ;;  %v4288_v13 = vld [vmem:[%s4924_s21 + $0x10] sm:$0xff] }
 0x1cf   : > { %2345 = vmatpush.bf16.msrb.mxu0 %v3759_v21  ;;  %v3987_v21 = vld [vmem:[%s6861_s7 + $0x68] sm:$0xff] }
 0x1d1   : > { %v1504_v50 = vpop.f32.mrf.mxu1 }
 0x1d2   : > { %v1505_v44 = vadd.f32 %v4278_v54, %v1504_v50 }
 0x1d3   : > { %2346 = vmatpush.bf16.msrb.mxu0 %v3747_v4 }
 0x1d4   : > { %1532 = vst.msk [vmem:[%s5835_s22 + $0x40] sm:$0xff] %vm925_vm10, %v1505_v44  ;;  %v4290_v44 = vld [vmem:[%s4924_s21 + $0x20] sm:$0xff] }
 0x1d9   : > { %v1506_v26 = vpop.f32.mrf.mxu1 }
 0x1da   : > { %v1507_v59 = vadd.f32 %v4279_v51, %v1506_v26  ;;  %v3989_v26 = vld [vmem:[%s6861_s7 + $0x78] sm:$0xff]  ;;  %v4292_v51 = vld [vmem:[%s4924_s21 + $0x30] sm:$0xff] }
 0x1db   : > { %3419 = vmatpush.bf16.msra.mxu0 %v3989_v26 }
 0x1dc   : > { %1533 = vst.msk [vmem:[%s5835_s22 + $0x48] sm:$0xff] %vm925_vm10, %v1507_v59 }
 0x1e1   : > { %v1509_v35 = vpop.f32.mrf.mxu1 }
 0x1e2   : > { %v1510_v2 = vadd.f32 %v4280_v31, %v1509_v35  ;;  %v3996_v31 = vld [vmem:[%s6861_s7 + $0xb0] sm:$0xff] }
 0x1e3   : > { %3469 = vmatpush.bf16.msra.mxu3 %v3996_v31 }
 0x1e4   : > { %1534 = vst.msk [vmem:[%s5835_s22 + $0x50] sm:$0xff] %vm925_vm10, %v1510_v2  ;;  %v3988_v2 = vld [vmem:[%s6861_s7 + $0x70] sm:$0xff] }
 0x1e5   : > { %3420 = vmatpush.bf16.msra.mxu0 %v3988_v2 }
 0x1e7   : > { %3470 = vmatpush.bf16.msra.mxu3 %v3995_v16 }
 0x1e9   : > { %v1511_v41 = vpop.f32.mrf.mxu1  ;;  %3421 = vmatpush.bf16.msra.mxu0 %v3987_v21  ;;  %v3993_v21 = vld [vmem:[%s6861_s7 + $0x98] sm:$0xff] }
 0x1ea   : > { %v1512_v47 = vadd.f32 %v4281_v45, %v1511_v41  ;;  %v4295_v41 = vld [vmem:[%s4924_s21 + $0x48] sm:$0xff] }
 0x1eb   : > { %3471 = vmatpush.bf16.msra.mxu3 %v3994_v14 }
 0x1ec   : > { %1535 = vst.msk [vmem:[%s5835_s22 + $0x58] sm:$0xff] %vm925_vm10, %v1512_v47 }
 0x1ef   : > { %3472 = vmatpush.bf16.msra.mxu3 %v3993_v21 }
 0x1f1   : > { %v1514_v22 = vpop.f32.mrf.mxu1 }
 0x1f2   : > { %v1515_v38 = vadd.f32 %v4282_v49, %v1514_v22  ;;  %v4297_v22 = vld [vmem:[%s4924_s21 + $0x58] sm:$0xff] }
 0x1f4   : > { %1536 = vst.msk [vmem:[%s5835_s22 + $0x60] sm:$0xff] %vm925_vm10, %v1515_v38 }
 0x1f9   : > { %v1516_v36 = vpop.f32.mrf.mxu1 }
 0x1fa   : > { %v1517_v37 = vadd.f32 %v4283_v55, %v1516_v36 }
 0x1fc   : > { %1537 = vst.msk [vmem:[%s5835_s22 + $0x68] sm:$0xff] %vm925_vm10, %v1517_v37  ;;  %v3986_v37 = vld [vmem:[%s6861_s7 + $0x60] sm:$0xff] }
 0x1fd   : > { %3422 = vmatpush.bf16.msra.mxu0 %v3986_v37 }
 0x201   : > { %v1519_v6 = vpop.f32.mrf.mxu1 }
 0x202   : > { %v1520_v17 = vadd.f32 %v4284_v19, %v1519_v6  ;;  %v4300_v19 = vld [vmem:[%s4924_s21 + $0x70] sm:$0xff] }
 0x204   : > { %1538 = vst.msk [vmem:[%s5835_s22 + $0x70] sm:$0xff] %vm925_vm10, %v1520_v17 }
 0x209   : > { %v1521_v48 = vpop.f32.mrf.mxu1 }
 0x20a   : > { %v1522_v53 = vadd.f32 %v4285_v5, %v1521_v48  ;;  %v4301_v48 = vld [vmem:[%s4924_s21 + $0x78] sm:$0xff] }
 0x20b   : > { %v2146_v60 = vpop.f32.mrf.mxu3 }
 0x20c   : > { %1539 = vst.msk [vmem:[%s5835_s22 + $0x78] sm:$0xff] %vm925_vm10, %v1522_v53  ;;  %v2177_v59 = vmul.f32 %v4292_v51, %v2146_v60 }
 0x211   : > { %v2131_v46 = vpop.f32.mrf.mxu1 }
 0x212   : > { %v2171_v33 = vmul.f32 %v4286_v28, %v2131_v46 }
 0x213   : > { %v2148_v50 = vpop.f32.mrf.mxu3 }
 0x214   : > { %v2178_v56 = vmul.f32 %v4293_v30, %v2148_v50 }
 0x216   : > { %v2190_v35 = vpack.c.bf16 %v2178_v56, %v2177_v59 }
 0x219   : > { %v2133_v7 = vpop.f32.mrf.mxu1 }
 0x21a   : > { %v2172_v3 = vmul.f32 %v4287_v34, %v2133_v7 }
 0x21b   : > { %v2151_v43 = vpop.f32.mrf.mxu3 }
 0x21c   : > { %v2187_v40 = vpack.c.bf16 %v2172_v3, %v2171_v33  ;;  %v2179_v1 = vmul.f32 %v4294_v32, %v2151_v43 }
 0x21e   : > { %3816 = vmatmul.msk.bf16.vlgmr.msrb.gmra.mxu0 %vm1628_vm2, %v2187_v40  ;;  %3824 = vmatmul.msk.bf16.vlgmr.msrb.gmra.mxu3 %vm1628_vm2, %v2187_v40 }
 0x21f   : > { %3832 = vmatmul.msk.bf16.vlgmr.msra.gmra.mxu2 %vm1628_vm2, %v2187_v40 }
 0x221   : > { %v2136_v57 = vpop.f32.mrf.mxu1 }
 0x222   : > { %v2173_v63 = vmul.f32 %v4288_v13, %v2136_v57 }
 0x223   : > { %v2153_v8 = vpop.f32.mrf.mxu3 }
 0x224   : > { %v2180_v45 = vmul.f32 %v4295_v41, %v2153_v8  ;;  %v6172_v41 = vld [vmem:[%s6863_s9] ss:$0 sm:$0xff] }
 0x226   : > { %v2191_v47 = vpack.c.bf16 %v2180_v45, %v2179_v1 }
 0x229   : > { %v2138_v42 = vpop.f32.mrf.mxu1 }
 0x22a   : > { %v2174_v39 = vmul.f32 %v4289_v9, %v2138_v42 }
 0x22b   : > { %v2156_v18 = vpop.f32.mrf.mxu3 }
 0x22c   : > { %v2188_v29 = vpack.c.bf16 %v2174_v39, %v2173_v63  ;;  %v2181_v27 = vmul.f32 %v4296_v23, %v2156_v18 }
 0x22e   : > { %3817 = vmatmul.msk.bf16.gmra.mxu0 %vm1628_vm2, %v2188_v29  ;;  %3825 = vmatmul.msk.bf16.gmra.mxu3 %vm1628_vm2, %v2188_v29 }
 0x22f   : > { %3833 = vmatmul.msk.bf16.gmra.mxu2 %vm1628_vm2, %v2188_v29 }
 0x231   : > { %v2141_v61 = vpop.f32.mrf.mxu1 }
 0x232   : > { %v2175_v58 = vmul.f32 %v4290_v44, %v2141_v61 }
 0x233   : > { %v2158_v0 = vpop.f32.mrf.mxu3 }
 0x234   : > { %v2182_v49 = vmul.f32 %v4297_v22, %v2158_v0 }
 0x236   : > { %v2192_v38 = vpack.c.bf16 %v2182_v49, %v2181_v27 }
 0x239   : > { %v2143_v54 = vpop.f32.mrf.mxu1 }
 0x23a   : > { %v2176_v25 = vmul.f32 %v4291_v52, %v2143_v54 }
 0x23b   : > { %v2161_v62 = vpop.f32.mrf.mxu3 }
 0x23c   : > { %v2189_v11 = vpack.c.bf16 %v2176_v25, %v2175_v58  ;;  %v2183_v20 = vmul.f32 %v4298_v10, %v2161_v62 }
 0x23e   : > { %3818 = vmatmul.msk.bf16.gmra.mxu0 %vm1628_vm2, %v2189_v11  ;;  %3826 = vmatmul.msk.bf16.gmra.mxu3 %vm1628_vm2, %v2189_v11 }
 0x23f   : > { %3834 = vmatmul.msk.bf16.gmra.mxu2 %vm1628_vm2, %v2189_v11 }
 0x243   : > { %v2163_v12 = vpop.f32.mrf.mxu3 }
 0x244   : > { %v2184_v4 = vmul.f32 %v4299_v24, %v2163_v12 }
 0x246   : > { %v2193_v55 = vpack.c.bf16 %v2184_v4, %v2183_v20 }
 0x24b   : > { %v2166_v36 = vpop.f32.mrf.mxu3 }
 0x24c   : > { %v2185_v17 = vmul.f32 %v4300_v19, %v2166_v36 }
 0x24e   : > { %3819 = vmatmul.msk.bf16.gmra.mxu0 %vm1628_vm2, %v2190_v35  ;;  %3827 = vmatmul.msk.bf16.gmra.mxu3 %vm1628_vm2, %v2190_v35 }
 0x24f   : > { %3835 = vmatmul.msk.bf16.gmra.mxu2 %vm1628_vm2, %v2190_v35 }
 0x253   : > { %v2168_v6 = vpop.f32.mrf.mxu3 }
 0x254   : > { %v2186_v5 = vmul.f32 %v4301_v48, %v2168_v6 }
 0x256   : > { %v2194_v53 = vpack.c.bf16 %v2186_v5, %v2185_v17 }
 0x25e   : > { %3820 = vmatmul.msk.bf16.gmra.mxu0 %vm1628_vm2, %v2191_v47  ;;  %3828 = vmatmul.msk.bf16.gmra.mxu3 %vm1628_vm2, %v2191_v47 }
 0x25f   : > { %3836 = vmatmul.msk.bf16.gmra.mxu2 %vm1628_vm2, %v2191_v47 }
 0x26e   : > { %3821 = vmatmul.msk.bf16.gmra.mxu0 %vm1628_vm2, %v2192_v38  ;;  %3829 = vmatmul.msk.bf16.gmra.mxu3 %vm1628_vm2, %v2192_v38 }
 0x26f   : > { %3837 = vmatmul.msk.bf16.gmra.mxu2 %vm1628_vm2, %v2192_v38 }
 0x27e   : > { %3822 = vmatmul.msk.bf16.gmra.mxu0 %vm1628_vm2, %v2193_v55  ;;  %3830 = vmatmul.msk.bf16.gmra.mxu3 %vm1628_vm2, %v2193_v55 }
 0x27f   : > { %3838 = vmatmul.msk.bf16.gmra.mxu2 %vm1628_vm2, %v2193_v55 }
 0x28e   : > { %3823 = vmatmul.msk.bf16.gmra.mxu0 %vm1628_vm2, %v2194_v53  ;;  %3831 = vmatmul.msk.bf16.gmra.mxu3 %vm1628_vm2, %v2194_v53 }
 0x28f   : > { %3839 = vmatmul.msk.bf16.gmra.mxu2 %vm1628_vm2, %v2194_v53 }
 0x29b   : > { %v6124_v46 = vpop.f32.mrf.mxu0 }
 0x29c   : > { %v2486_v28 = vmul.f32 %v6124_v46, %v6124_v46 }
 0x2a1   : > { %v6126_v7 = vpop.f32.mrf.mxu3 }
 0x2a2   : > { %v2502_v33 = vmul.f32 %v6126_v7, %v6126_v7  ;;  %v6132_v34 = vpop.f32.mrf.mxu2 }
 0x2a3   : > { %v6134_v3 = vpop.f32.mrf.mxu0  ;;  %v2534_v57 = vmul.f32 %v6132_v34, %v6132_v34 }
 0x2a4   : > { %v2518_v40 = vadd.f32 %v2502_v33, %v2486_v28  ;;  %v2487_v9 = vmul.f32 %v6134_v3, %v6134_v3 }
 0x2a6   : > { %v2550_v42 = vadd.f32 %v2534_v57, %v2518_v40 }
 0x2a8   : > { %v2566_v13 = vmax.f32 %v2550_v42, 1e-24 }
 0x2a9   : > { %v6138_v63 = vpop.f32.mrf.mxu3 }
 0x2aa   : > { %4206 = vrsqrt.f32 %v2566_v13  ;;  %v2503_v39 = vmul.f32 %v6138_v63, %v6138_v63  ;;  %v6144_v60 = vpop.f32.mrf.mxu2  ;;  %vm2588_vm0 = vweird.f32 %v2566_v13 }
 0x2ab   : > { %v6146_v29 = vpop.f32.mrf.mxu0  ;;  %v2535_v50 = vmul.f32 %v6144_v60, %v6144_v60 }
 0x2ac   : > { %v2519_v61 = vadd.f32 %v2503_v39, %v2487_v9  ;;  %v2488_v11 = vmul.f32 %v6146_v29, %v6146_v29 }
 0x2ae   : > { %v2551_v54 = vadd.f32 %v2535_v50, %v2519_v61  ;;  %v3981_v50 = vld [vmem:[%s6861_s7 + $0x38] sm:$0xff] }
 0x2af   : > { %3370 = vmatpush.bf16.msra.mxu1 %v3981_v50 }
 0x2b0   : > { %v4207_v44 = vpop.eup %4206  ;;  %v2567_v58 = vmax.f32 %v2551_v54, 1e-24 }
 0x2b1   : > { %v2583_v52 = vmul.f32 %v4207_v44, %v2566_v13  ;;  %v6150_v25 = vpop.f32.mrf.mxu3  ;;  %vm2589_vm10 = vweird.f32 %v4207_v44  ;;  %v3985_v13 = vld [vmem:[%s6861_s7 + $0x58] sm:$0xff] }
 0x2b2   : > { %4208 = vrsqrt.f32 %v2567_v58  ;;  %v2504_v43 = vmul.f32 %v6150_v25, %v6150_v25  ;;  %v6156_v15 = vpop.f32.mrf.mxu2  ;;  %vm2590_vm1 = vmor %vm2588_vm0, %vm2589_vm10  ;;  %vm2598_vm4 = vweird.f32 %v2567_v58  ;;  %3423 = vmatpush.bf16.msra.mxu0 %v3985_v13 }
 0x2b3   : > { %v2584_v26 = vmul.f32 %v4207_v44, %v2583_v52  ;;  %v6158_v51 = vpop.f32.mrf.mxu0  ;;  %v2536_v30 = vmul.f32 %v6156_v15, %v6156_v15 }
 0x2b4   : > { %v2520_v59 = vadd.f32 %v2504_v43, %v2488_v11  ;;  %v2489_v45 = vmul.f32 %v6158_v51, %v6158_v51 }
 0x2b5   : > { %v2585_v56 = vmul.f32 0.5, %v2584_v26 }
 0x2b6   : > { %v6162_v8 = vadd.f32 %v2536_v30, %v2520_v59 }
 0x2b7   : > { %v2586_v35 = vsub.f32 1.5, %v2585_v56 }
 0x2b8   : > { %v4209_v31 = vpop.eup %4208  ;;  %v6165_v2 = vmax.f32 %v6162_v8, 1e-24 }
 0x2b9   : > { %v2587_v18 = vmul.f32 %v4207_v44, %v2586_v35  ;;  %v2593_v32 = vmul.f32 %v4209_v31, %v2567_v58  ;;  %v6167_v1 = vpop.f32.mrf.mxu3  ;;  %vm2599_vm3 = vweird.f32 %v4209_v31  ;;  %v3980_v35 = vld [vmem:[%s6861_s7 + $0x30] sm:$0xff] }
 0x2ba   : > { %4210 = vrsqrt.f32 %v6165_v2  ;;  %v2505_v47 = vmul.f32 %v6167_v1, %v6167_v1  ;;  %v6179_v0 = vpop.f32.mrf.mxu2  ;;  %vm2600_vm5 = vmor %vm2598_vm4, %vm2599_vm3  ;;  %vm2608_vm7 = vweird.f32 %v6165_v2  ;;  %3371 = vmatpush.bf16.msra.mxu1 %v3980_v35 }
 0x2bb   : > { %v6181_v16 = vsel %vm2590_vm1, %v4207_v44, %v2587_v18  ;;  %v2594_v62 = vmul.f32 %v4209_v31, %v2593_v32  ;;  %v6186_v23 = vpop.f32.mrf.mxu0  ;;  %v2537_v49 = vmul.f32 %v6179_v0, %v6179_v0 }
 0x2bc   : > { %v2742_v27 = vmul.f32 %v6181_v16, %v2550_v42  ;;  %v2521_v22 = vadd.f32 %v2505_v47, %v2489_v45  ;;  %v2490_v19 = vmul.f32 %v6186_v23, %v6186_v23  ;;  %v3992_v45 = vld [vmem:[%s6861_s7 + $0x90] sm:$0xff] }
 0x2bd   : > { %v2595_v38 = vmul.f32 0.5, %v2594_v62  ;;  %3473 = vmatpush.bf16.msra.mxu3 %v3992_v45 }
 0x2be   : > { %v6192_v14 = vmul.f32 %v6172_v41, %v2742_v27  ;;  %v6194_v12 = vadd.f32 %v2537_v49, %v2521_v22 }
 0x2bf   : > { %v2596_v10 = vsub.f32 1.5, %v2595_v38 }
 0x2c0   : > { %v4211_v20 = vpop.eup %4210  ;;  %v2794_v24 = vmul.f32 0.044715, %v6192_v14  ;;  %v6198_v4 = vmax.f32 %v6194_v12, 1e-24 }
 0x2c1   : > { %v2597_v36 = vmul.f32 %v4209_v31, %v2596_v10  ;;  %v2603_v55 = vmul.f32 %v4211_v20, %v6165_v2  ;;  %v6201_v37 = vpop.f32.mrf.mxu3  ;;  %vm2609_vm6 = vweird.f32 %v4211_v20 }
 0x2c2   : > { %v2810_v6 = vmul.f32 %v2794_v24, %v6192_v14  ;;  %4212 = vrsqrt.f32 %v6198_v4  ;;  %v2506_v17 = vmul.f32 %v6201_v37, %v6201_v37  ;;  %v6209_v48 = vpop.f32.mrf.mxu2  ;;  %vm2610_vm8 = vmor %vm2608_vm7, %vm2609_vm6  ;;  %v3979_v24 = vld [vmem:[%s6861_s7 + $0x28] sm:$0xff]  ;;  %vm2618_vm11 = vweird.f32 %v6198_v4 }
 0x2c3   : > { %v6211_v5 = vsel %vm2600_vm5, %v4209_v31, %v2597_v36  ;;  %v2604_v53 = vmul.f32 %v4211_v20, %v2603_v55  ;;  %v6213_v28 = vpop.f32.mrf.mxu0  ;;  %v2538_v42 = vmul.f32 %v6209_v48, %v6209_v48  ;;  %3372 = vmatpush.bf16.msra.mxu1 %v3979_v24 }
 0x2c4   : > { %v2826_v33 = vmul.f32 %v2810_v6, %v6192_v14  ;;  %v2743_v40 = vmul.f32 %v6211_v5, %v2551_v54  ;;  %v2522_v57 = vadd.f32 %v2506_v17, %v2490_v19  ;;  %v2491_v31 = vmul.f32 %v6213_v28, %v6213_v28 }
 0x2c5   : > { %v2605_v9 = vmul.f32 0.5, %v2604_v53  ;;  %v2778_v6 = vmul.f32 0.5, %v6192_v14 }
 0x2c6   : > { %v2842_v39 = vadd.f32 %v2826_v33, %v6192_v14  ;;  %v6224_v61 = vmul.f32 %v6172_v41, %v2743_v40  ;;  %v6229_v44 = vadd.f32 %v2538_v42, %v2522_v57  ;;  %v3978_v14 = vld [vmem:[%s6861_s7 + $0x20] sm:$0xff] }
 0x2c7   : > { %v2606_v54 = vsub.f32 1.5, %v2605_v9  ;;  %3373 = vmatpush.bf16.msra.mxu1 %v3978_v14 }
 0x2c8   : > { %v4213_v58 = vpop.eup %4212  ;;  %v2858_v52 = vmul.f32 0.7978846, %v2842_v39  ;;  %v2795_v11 = vmul.f32 0.044715, %v6224_v61  ;;  %v6235_v59 = vmax.f32 %v6229_v44, 1e-24 }
 0x2c9   : > { %v2607_v43 = vmul.f32 %v4211_v20, %v2606_v54  ;;  %v2613_v26 = vmul.f32 %v4213_v58, %v6198_v4  ;;  %v6237_v30 = vpop.f32.mrf.mxu3  ;;  %vm2619_vm9 = vweird.f32 %v4213_v58  ;;  %v3984_v4 = vld [vmem:[%s6861_s7 + $0x50] sm:$0xff] }
 0x2ca   : > { %4214 = vtanh.f32 %v2858_v52  ;;  %v2811_v56 = vmul.f32 %v2795_v11, %v6224_v61  ;;  %v2507_v2 = vmul.f32 %v6237_v30, %v6237_v30  ;;  %v6247_v18 = vpop.f32.mrf.mxu2  ;;  %vm2620_vm12 = vmor %vm2618_vm11, %vm2619_vm9  ;;  %3424 = vmatpush.bf16.msra.mxu0 %v3984_v4  ;;  %vm2628_vm13 = vweird.f32 %v6235_v59 }
 0x2cb   : > { %v6249_v32 = vsel %vm2610_vm8, %v4211_v20, %v2607_v43  ;;  %v2614_v47 = vmul.f32 %v4213_v58, %v2613_v26  ;;  %4216 = vrsqrt.f32 %v6235_v59  ;;  %v6255_v21 = vpop.f32.mrf.mxu0  ;;  %v2539_v49 = vmul.f32 %v6247_v18, %v6247_v18 }
 0x2cc   : > { %v2827_v62 = vmul.f32 %v2811_v56, %v6224_v61  ;;  %v2744_v27 = vmul.f32 %v6249_v32, %v6162_v8  ;;  %v2523_v22 = vadd.f32 %v2507_v2, %v2491_v31  ;;  %v2492_v52 = vmul.f32 %v6255_v21, %v6255_v21 }
 0x2cd   : > { %v2615_v38 = vmul.f32 0.5, %v2614_v47 }
 0x2ce   : > { %v2843_v10 = vadd.f32 %v2827_v62, %v6224_v61  ;;  %v2764_v20 = vmul.f32 %v6172_v41, %v2744_v27  ;;  %v6267_v36 = vadd.f32 %v2539_v49, %v2523_v22  ;;  %v3977_v62 = vld [vmem:[%s6861_s7 + $0x18] sm:$0xff] }
 0x2cf   : > { %v2616_v55 = vsub.f32 1.5, %v2615_v38  ;;  %3374 = vmatpush.bf16.msra.mxu1 %v3977_v62 }
 0x2d0   : > { %v4215_v8 = vpop.eup %4214  ;;  %v2859_v19 = vmul.f32 0.7978846, %v2843_v10  ;;  %v2796_v17 = vmul.f32 0.044715, %v2764_v20  ;;  %v6272_v57 = vmax.f32 %v6267_v36, 1e-24 }
 0x2d1   : > { %v4217_v53 = vpop.eup %4216  ;;  %v2890_v33 = vadd.f32 1.0, %v4215_v8  ;;  %v2617_v40 = vmul.f32 %v4213_v58, %v2616_v55  ;;  %v6274_v42 = vpop.f32.mrf.mxu3  ;;  %v2780_v8 = vmul.f32 0.5, %v2764_v20 }
 0x2d2   : > { %4218 = vtanh.f32 %v2859_v19  ;;  %v2812_v13 = vmul.f32 %v2796_v17, %v2764_v20  ;;  %v2623_v9 = vmul.f32 %v4217_v53, %v6235_v59  ;;  %v6280_v39 = vpop.f32.mrf.mxu2  ;;  %vm2629_vm14 = vweird.f32 %v4217_v53 }
 0x2d3   : > { %v2906_v50 = vmul.f32 %v2890_v33, %v2778_v6  ;;  %v6282_v54 = vsel %vm2620_vm12, %v4213_v58, %v2617_v40  ;;  %4220 = vrsqrt.f32 %v6272_v57  ;;  %v6290_v11 = vpop.f32.mrf.mxu0  ;;  %v2508_v58 = vmul.f32 %v6274_v42, %v6274_v42  ;;  %v3976_v40 = vld [vmem:[%s6861_s7 + $0x10] sm:$0xff]  ;;  %vm2630_vm15 = vmor %vm2628_vm13, %vm2629_vm14 }
 0x2d4   : > { %v2828_v43 = vmul.f32 %v2812_v13, %v2764_v20  ;;  %v2745_v26 = vmul.f32 %v6282_v54, %v6194_v12  ;;  %v2624_v56 = vmul.f32 %v4217_v53, %v2623_v9  ;;  %v2779_v12 = vmul.f32 0.5, %v6224_v61  ;;  %3375 = vmatpush.bf16.msra.mxu1 %v3976_v40  ;;  %v3982_v40 = vld [vmem:[%s6861_s7 + $0x40] sm:$0xff] }
 0x2d5   : > { %v2922_v35 = vmul.f32 %v2906_v50, %v6181_v16  ;;  %v2524_v47 = vadd.f32 %v2508_v58, %v2492_v52  ;;  %v2540_v27 = vmul.f32 %v6280_v39, %v6280_v39  ;;  %vm2638_vm10 = vweird.f32 %v6272_v57 }
 0x2d6   : > { %v2844_v31 = vadd.f32 %v2828_v43, %v2764_v20  ;;  %v6298_v2 = vmul.f32 %v6172_v41, %v2745_v26  ;;  %v2625_v45 = vmul.f32 0.5, %v2624_v56  ;;  %v2493_v9 = vmul.f32 %v6290_v11, %v6290_v11  ;;  %v3991_v56 = vld [vmem:[%s6861_s7 + $0x88] sm:$0xff] }
 0x2d7   : > { %v3002_v24 = vmul.f32 %v2922_v35, %v6132_v34  ;;  %v6311_v6 = vadd.f32 %v2540_v27, %v2524_v47  ;;  %v6324_v34 = vmul.f32 %v2922_v35, %v6126_v7  ;;  %3474 = vmatpush.bf16.msra.mxu3 %v3991_v56 }
 0x2d8   : > { %v4219_v22 = vpop.eup %4218  ;;  %v2860_v16 = vmul.f32 0.7978846, %v2844_v31  ;;  %v2797_v49 = vmul.f32 0.044715, %v6298_v2  ;;  %v2626_v38 = vsub.f32 1.5, %v2625_v45  ;;  %v3983_v45 = vld [vmem:[%s6861_s7 + $0x48] sm:$0xff] }
 0x2d9   : > { %v6308_v10 = vpop.eup %4220  ;;  %v2891_v55 = vadd.f32 1.0, %v4219_v22  ;;  %v6313_v61 = vpop.f32.mrf.mxu3  ;;  %v6339_v7 = vmax.f32 %v6311_v6, 1e-24  ;;  %v3018_v43 = vpack.c.bf16 %v3002_v24, %v3002_v24  ;;  %3425 = vmatpush.bf16.msra.mxu0 %v3983_v45 }
 0x2da   : > { %4222 = vtanh.f32 %v2860_v16  ;;  %v2813_v19 = vmul.f32 %v2797_v49, %v6298_v2  ;;  %v2627_v17 = vmul.f32 %v4217_v53, %v2626_v38  ;;  %v2633_v33 = vmul.f32 %v6308_v10, %v6272_v57  ;;  %v6321_v13 = vpop.f32.mrf.mxu2 }
 0x2db   : > { %v2907_v20 = vmul.f32 %v2891_v55, %v2779_v12  ;;  %v6332_v14 = vpop.f32.mrf.mxu0  ;;  %4224 = vrsqrt.f32 %v6339_v7  ;;  %vm2639_vm0 = vweird.f32 %v6308_v10  ;;  %v2541_v38 = vmul.f32 %v6321_v13, %v6321_v13 }
 0x2dc   : > { %v2829_v50 = vmul.f32 %v2813_v19, %v6298_v2  ;;  %v6335_v4 = vsel %vm2630_vm15, %v4217_v53, %v2627_v17  ;;  %v2634_v52 = vmul.f32 %v6308_v10, %v2633_v33  ;;  %v2509_v53 = vmul.f32 %v6313_v61, %v6313_v61  ;;  %v3990_v17 = vld [vmem:[%s6861_s7 + $0x80] sm:$0xff]  ;;  %vm2640_vm1 = vmor %vm2638_vm10, %vm2639_vm0 }
 0x2dd   : > { %v2923_v59 = vmul.f32 %v2907_v20, %v6211_v5  ;;  %v2746_v26 = vmul.f32 %v6335_v4, %v6229_v44  ;;  %v3975_v5 = vld [vmem:[%s6861_s7 + $0x8] sm:$0xff]  ;;  %v6358_v44 = vmul.f32 %v2922_v35, %v6124_v46  ;;  %v2986_v46 = vpack.c.bf16 %v6324_v34, %v6324_v34  ;;  %v3974_v20 = vld [vmem:[%s6861_s7] sm:$0xff]  ;;  %3475 = vmatpush.bf16.msra.mxu3 %v3990_v17 }
 0x2de   : > { %v2845_v58 = vadd.f32 %v2829_v50, %v6298_v2  ;;  %v2635_v31 = vmul.f32 0.5, %v2634_v52  ;;  %v2525_v27 = vadd.f32 %v2509_v53, %v2493_v9  ;;  %3376 = vmatpush.bf16.msra.mxu1 %v3975_v5  ;;  %3426 = vmatpush.bf16.msra.mxu0 %v3982_v40  ;;  %v2494_v5 = vmul.f32 %v6332_v14, %v6332_v14 }
 0x2df   : > { %v2971_v47 = vmul.f32 %v2923_v59, %v6138_v63  ;;  %v3003_v62 = vmul.f32 %v2923_v59, %v6144_v60  ;;  %v6363_v12 = vmul.f32 %v6172_v41, %v2746_v26  ;;  %v3146_v63 = vunpack.c.l.b16 %v3018_v43 }
 0x2e0   : > { %v4223_v22 = vpop.eup %4222  ;;  %v2861_v16 = vmul.f32 0.7978846, %v2845_v58  ;;  %v2636_v49 = vsub.f32 1.5, %v2635_v31  ;;  %v6377_v33 = vadd.f32 %v2541_v38, %v2525_v27  ;;  %vm2648_vm4 = vweird.f32 %v6339_v7 }
 0x2e1   : > { %v3019_v60 = vpack.c.bf16 %v3003_v62, %v3003_v62  ;;  %v2892_v35 = vadd.f32 1.0, %v4223_v22  ;;  %v6370_v24 = vpop.f32.mrf.mxu3  ;;  %v2798_v55 = vmul.f32 0.044715, %v6363_v12  ;;  %v2987_v9 = vpack.c.bf16 %v2971_v47, %v2971_v47  ;;  %v4225_v26 = vpop.eup %4224 }
 0x2e2   : > { %4226 = vtanh.f32 %v2861_v16  ;;  %v2637_v19 = vmul.f32 %v6308_v10, %v2636_v49  ;;  %v6382_v34 = vpop.f32.mrf.mxu2  ;;  %v2510_v43 = vmul.f32 %v6370_v24, %v6370_v24  ;;  %v6398_v58 = vmax.f32 %v6377_v33, 1e-24  ;;  %3377 = vmatpush.bf16.msra.mxu1 %v3974_v20 }
 0x2e3   : > { %v3147_v50 = vunpack.c.l.b16 %v3019_v60  ;;  %v2908_v52 = vmul.f32 %v2892_v35, %v2780_v8  ;;  %v2814_v56 = vmul.f32 %v2798_v55, %v6363_v12  ;;  %v2939_v8 = vmul.f32 %v2923_v59, %v6134_v3  ;;  %v6406_v47 = vpop.f32.mrf.mxu0 }
 0x2e4   : > { %v6395_v53 = vsel %vm2640_vm1, %v6308_v10, %v2637_v19  ;;  %v2643_v45 = vmul.f32 %v4225_v26, %v6339_v7  ;;  %v2781_v62 = vmul.f32 0.5, %v6298_v2  ;;  %4228 = vrsqrt.f32 %v6398_v58 }
 0x2e5   : > { %v3162_v31 = vpack.c.b16 %v3147_v50, %v3146_v63  ;;  %v2747_v57 = vmul.f32 %v6395_v53, %v6267_v36  ;;  %v6409_v10 = vmul.f32 %v2908_v52, %v6249_v32  ;;  %v2830_v27 = vmul.f32 %v2814_v56, %v6363_v12 }
 0x2e6   : > { %v3099_v3 = vunpack.c.l.b16 %v2987_v9  ;;  %v2644_v59 = vmul.f32 %v4225_v26, %v2643_v45  ;;  %v2526_v22 = vadd.f32 %v2510_v43, %v2494_v5  ;;  %v2542_v32 = vmul.f32 %v6382_v34, %v6382_v34 }
 0x2e7   : > { %v6415_v36 = vmul.f32 %v6172_v41, %v2747_v57  ;;  %3476 = vmatmul.bf16.vlgmr.msra.gmra.mxu3 %v3162_v31  ;;  %v2846_v49 = vadd.f32 %v2830_v27, %v6363_v12  ;;  %v2954_v2 = vpack.c.bf16 %v6358_v44, %v6358_v44  ;;  %v2955_v38 = vpack.c.bf16 %v2939_v8, %v2939_v8 }
 0x2e8   : > { %v4227_v16 = vpop.eup %4226  ;;  %v3098_v63 = vunpack.c.l.b16 %v2986_v46  ;;  %vm2649_vm3 = vweird.f32 %v4225_v26  ;;  %v3004_v19 = vmul.f32 %v6409_v10, %v6156_v15  ;;  %v2645_v40 = vmul.f32 0.5, %v2644_v59 }
 0x2e9   : > { %v2893_v60 = vadd.f32 1.0, %v4227_v16  ;;  %v2799_v35 = vmul.f32 0.044715, %v6415_v36  ;;  %v6423_v55 = vpop.f32.mrf.mxu3  ;;  %v2862_v17 = vmul.f32 0.7978846, %v2846_v49  ;;  %v6427_v20 = vadd.f32 %v2542_v32, %v2526_v22  ;;  %vm2650_vm5 = vmor %vm2648_vm4, %vm2649_vm3 }
 0x2ea   : > { %v6429_v9 = vpop.f32.mrf.mxu2  ;;  %v3050_v52 = vunpack.c.l.b16 %v2954_v2  ;;  %v3051_v46 = vunpack.c.l.b16 %v2955_v38  ;;  %v4229_v43 = vpop.eup %4228  ;;  %v2646_v56 = vsub.f32 1.5, %v2645_v40  ;;  %v3114_v31 = vpack.c.b16 %v3099_v3, %v3098_v63 }
 0x2eb   : > { %v2909_v50 = vmul.f32 %v2893_v60, %v2781_v62  ;;  %v2815_v44 = vmul.f32 %v2799_v35, %v6415_v36  ;;  %4230 = vtanh.f32 %v2862_v17  ;;  %v6433_v8 = vmax.f32 %v6427_v20, 1e-24  ;;  %v6447_v22 = vpop.f32.mrf.mxu0 }
 0x2ec   : > { %v2653_v45 = vmul.f32 %v4229_v43, %v6398_v58  ;;  %v2647_v5 = vmul.f32 %v4225_v26, %v2646_v56  ;;  %v3066_v62 = vpack.c.b16 %v3051_v46, %v3050_v52  ;;  %3427 = vmatmul.bf16.vlgmr.msra.gmra.mxu0 %v3114_v31  ;;  %v2782_v27 = vmul.f32 0.5, %v6363_v12 }
 0x2ed   : > { %v6436_v15 = vmul.f32 %v2909_v50, %v6282_v54  ;;  %v2831_v57 = vmul.f32 %v2815_v44, %v6415_v36  ;;  %4232 = vrsqrt.f32 %v6433_v8  ;;  %v2511_v54 = vmul.f32 %v6423_v55, %v6423_v55 }
 0x2ee   : > { %v2654_v3 = vmul.f32 %v4229_v43, %v2653_v45  ;;  %v3020_v16 = vpack.c.bf16 %v3004_v19, %v3004_v19  ;;  %v6449_v49 = vsel %vm2650_vm5, %v4225_v26, %v2647_v5  ;;  %vm2658_vm6 = vweird.f32 %v6398_v58  ;;  %3378 = vmatmul.bf16.vlgmr.msra.gmra.mxu1 %v3066_v62 }
 0x2ef   : > { %v2847_v59 = vadd.f32 %v2831_v57, %v6415_v36  ;;  %v2495_v7 = vmul.f32 %v6406_v47, %v6406_v47  ;;  %v3005_v12 = vmul.f32 %v6436_v15, %v6179_v0  ;;  %v2748_v2 = vmul.f32 %v6449_v49, %v6311_v6 }
 0x2f0   : > { %v2655_v38 = vmul.f32 0.5, %v2654_v3  ;;  %v2543_v26 = vmul.f32 %v6429_v9, %v6429_v9  ;;  %v2496_v19 = vmul.f32 %v6447_v22, %v6447_v22  ;;  %vm2659_vm7 = vweird.f32 %v4229_v43 }
 0x2f1   : > { %v2863_v32 = vmul.f32 0.7978846, %v2847_v59  ;;  %v6458_v63 = vpop.f32.mrf.mxu3  ;;  %v4231_v60 = vpop.eup %4230  ;;  %v2527_v35 = vadd.f32 %v2511_v54, %v2495_v7  ;;  %v2768_v0 = vmul.f32 %v6172_v41, %v2748_v2  ;;  %v2940_v6 = vmul.f32 %v6409_v10, %v6146_v29  ;;  %vm2660_vm8 = vmor %vm2658_vm6, %vm2659_vm7 }
 0x2f2   : > { %v2512_v17 = vmul.f32 %v6458_v63, %v6458_v63  ;;  %v6466_v40 = vpop.f32.mrf.mxu2  ;;  %v2656_v44 = vsub.f32 1.5, %v2655_v38  ;;  %v3021_v31 = vpack.c.bf16 %v3005_v12, %v3005_v12  ;;  %v2894_v57 = vadd.f32 1.0, %v4231_v60 }
 0x2f3   : > { %4234 = vtanh.f32 %v2863_v32  ;;  %v4233_v50 = vpop.eup %4232  ;;  %v6471_v52 = vadd.f32 %v2543_v26, %v2527_v35  ;;  %v2544_v56 = vmul.f32 %v6466_v40, %v6466_v40  ;;  %v2800_v45 = vmul.f32 0.044715, %v2768_v0 }
 0x2f4   : > { %v2528_v46 = vadd.f32 %v2512_v17, %v2496_v19  ;;  %v2663_v5 = vmul.f32 %v4233_v50, %v6433_v8  ;;  %v2657_v62 = vmul.f32 %v4229_v43, %v2656_v44  ;;  %v2941_v29 = vmul.f32 %v6436_v15, %v6158_v51 }
 0x2f5   : > { %v6477_v59 = vmax.f32 %v6471_v52, 1e-24  ;;  %v6483_v54 = vunpack.c.l.b16 %v3020_v16  ;;  %v2783_v7 = vmul.f32 0.5, %v6415_v36  ;;  %v2816_v32 = vmul.f32 %v2800_v45, %v2768_v0 }
 0x2f6   : > { %v6479_v3 = vadd.f32 %v2544_v56, %v2528_v46  ;;  %v2664_v12 = vmul.f32 %v4233_v50, %v2663_v5  ;;  %v6489_v2 = vsel %vm2660_vm8, %v4229_v43, %v2657_v62  ;;  %v2956_v60 = vpack.c.bf16 %v2940_v6, %v2940_v6  ;;  %v6502_v6 = vpop.f32.mrf.mxu0 }
 0x2f7   : > { %4236 = vrsqrt.f32 %v6477_v59  ;;  %v2910_v51 = vmul.f32 %v2894_v57, %v2782_v27  ;;  %v2832_v16 = vmul.f32 %v2816_v32, %v2768_v0  ;;  %v2749_v36 = vmul.f32 %v6489_v2, %v6377_v33 }
 0x2f8   : > { %v6493_v38 = vmax.f32 %v6479_v3, 1e-24  ;;  %v2665_v26 = vmul.f32 0.5, %v2664_v12  ;;  %v3149_v19 = vunpack.c.l.b16 %v3021_v31  ;;  %vm2668_vm9 = vweird.f32 %v6433_v8 }
 0x2f9   : > { %v4235_v35 = vpop.eup %4234  ;;  %v2957_v58 = vpack.c.bf16 %v2941_v29, %v2941_v29  ;;  %v2848_v43 = vadd.f32 %v2832_v16, %v2768_v0  ;;  %v6500_v17 = vmul.f32 %v6172_v41, %v2749_v36  ;;  %vm2669_vm11 = vweird.f32 %v4233_v50  ;;  %v6504_v27 = vpop.f32.mrf.mxu3 }
 0x2fa   : > { %4238 = vrsqrt.f32 %v6493_v38  ;;  %v2666_v44 = vsub.f32 1.5, %v2665_v26  ;;  %v2895_v46 = vadd.f32 1.0, %v4235_v35  ;;  %v3052_v56 = vunpack.c.l.b16 %v2956_v60  ;;  %v6518_v35 = vpop.f32.mrf.mxu2  ;;  %vm2670_vm12 = vmor %vm2668_vm9, %vm2669_vm11 }
 0x2fb   : > { %v3053_v33 = vunpack.c.l.b16 %v2957_v58  ;;  %v2972_v31 = vmul.f32 %v6409_v10, %v6150_v25  ;;  %v6509_v57 = vmul.f32 %v2910_v51, %v6335_v4  ;;  %v6511_v45 = vmul.f32 0.5, %v2768_v0 }
 0x2fc   : > { %v2864_v5 = vmul.f32 0.7978846, %v2848_v43  ;;  %v2801_v62 = vmul.f32 0.044715, %v6500_v17  ;;  %v2667_v32 = vmul.f32 %v4233_v50, %v2666_v44  ;;  %v2497_v12 = vmul.f32 %v6502_v6, %v6502_v6 }
 0x2fd   : > { %v4237_v29 = vpop.eup %4236  ;;  %v3067_v16 = vpack.c.b16 %v3053_v33, %v3052_v56  ;;  %v2973_v60 = vmul.f32 %v6436_v15, %v6167_v1  ;;  %vm2678_vm13 = vweird.f32 %v6477_v59  ;;  %v2911_v0 = vmul.f32 %v2895_v46, %v2783_v7 }
 0x2fe   : > { %4240 = vtanh.f32 %v2864_v5  ;;  %v2817_v25 = vmul.f32 %v2801_v62, %v6500_v17  ;;  %v2673_v4 = vmul.f32 %v4237_v29, %v6477_v59  ;;  %v6526_v51 = vsel %vm2670_vm12, %v4233_v50, %v2667_v32 }
 0x2ff   : > { %3383 = vmatmul.bf16.gmra.mxu1 %v3067_v16  ;;  %v2988_v36 = vpack.c.bf16 %v2972_v31, %v2972_v31  ;;  %v2989_v1 = vpack.c.bf16 %v2973_v60, %v2973_v60  ;;  %v2750_v26 = vmul.f32 %v6526_v51, %v6427_v20  ;;  %v3006_v43 = vmul.f32 %v6509_v57, %v6209_v48 }
 0x300   : > { %v4239_v10 = vpop.eup %4238  ;;  %v2833_v15 = vmul.f32 %v2817_v25, %v6500_v17  ;;  %v2674_v58 = vmul.f32 %v4237_v29, %v2673_v4  ;;  %vm2688_vm14 = vweird.f32 %v6493_v38  ;;  %v6540_v31 = vmul.f32 %v2911_v0, %v6395_v53  ;;  %v6546_v25 = vpop.f32.mrf.mxu0 }
 0x301   : > { %v2683_v8 = vmul.f32 %v4239_v10, %v6493_v38  ;;  %v3100_v44 = vunpack.c.l.b16 %v2988_v36  ;;  %v3101_v7 = vunpack.c.l.b16 %v2989_v1  ;;  %v6537_v46 = vmul.f32 %v6172_v41, %v2750_v26  ;;  %v6548_v4 = vpop.f32.mrf.mxu3 }
 0x302   : > { %v2849_v50 = vadd.f32 %v2833_v15, %v6500_v17  ;;  %v2675_v56 = vmul.f32 0.5, %v2674_v58  ;;  %v3163_v5 = vpack.c.b16 %v3149_v19, %v6483_v54  ;;  %v2513_v48 = vmul.f32 %v6504_v27, %v6504_v27 }
 0x303   : > { %v2684_v33 = vmul.f32 %v4239_v10, %v2683_v8  ;;  %v3115_v20 = vpack.c.b16 %v3101_v7, %v3100_v44  ;;  %v2802_v16 = vmul.f32 0.044715, %v6537_v46  ;;  %vm2679_vm15 = vweird.f32 %v4237_v29  ;;  %v6559_v44 = vpop.f32.mrf.mxu2 }
 0x304   : > { %v4241_v62 = vpop.eup %4240  ;;  %v2865_v32 = vmul.f32 0.7978846, %v2849_v50  ;;  %v2676_v60 = vsub.f32 1.5, %v2675_v56  ;;  %3481 = vmatmul.bf16.gmra.mxu3 %v3163_v5  ;;  %v2529_v53 = vadd.f32 %v2513_v48, %v2497_v12  ;;  %v2545_v54 = vmul.f32 %v6518_v35, %v6518_v35  ;;  %vm2680_vm10 = vmor %vm2678_vm13, %vm2679_vm15 }
 0x305   : > { %v2896_v36 = vadd.f32 1.0, %v4241_v62  ;;  %v2685_v1 = vmul.f32 0.5, %v2684_v33  ;;  %3432 = vmatmul.bf16.gmra.mxu0 %v3115_v20  ;;  %v3022_v19 = vpack.c.bf16 %v3006_v43, %v3006_v43  ;;  %v2818_v0 = vmul.f32 %v2802_v16, %v6537_v46 }
 0x306   : > { %4242 = vtanh.f32 %v2865_v32  ;;  %v2677_v15 = vmul.f32 %v4237_v29, %v2676_v60  ;;  %vm2689_vm0 = vweird.f32 %v4239_v10  ;;  %v6555_v58 = vadd.f32 %v2545_v54, %v2529_v53 }
 0x307   : > { %v2686_v26 = vsub.f32 1.5, %v2685_v1  ;;  %v2514_v8 = vmul.f32 %v6548_v4, %v6548_v4  ;;  %v3007_v12 = vmul.f32 %v6540_v31, %v6247_v18  ;;  %v2834_v43 = vmul.f32 %v2818_v0, %v6537_v46  ;;  %vm2690_vm1 = vmor %vm2688_vm14, %vm2689_vm0 }
 0x308   : > { %v6564_v7 = vsel %vm2680_vm10, %v4237_v29, %v2677_v15  ;;  %v2498_v59 = vmul.f32 %v6546_v25, %v6546_v25  ;;  %v2912_v50 = vmul.f32 %v2896_v36, %v6511_v45  ;;  %v6572_v20 = vmax.f32 %v6555_v58, 1e-24  ;;  %v6597_v0 = vpop.f32.mrf.mxu0 }
 0x309   : > { %v2751_v56 = vmul.f32 %v6564_v7, %v6471_v52  ;;  %v2687_v33 = vmul.f32 %v4239_v10, %v2686_v26  ;;  %v2850_v5 = vadd.f32 %v2834_v43, %v6537_v46  ;;  %v2546_v29 = vmul.f32 %v6559_v44, %v6559_v44  ;;  %v6599_v15 = vpop.f32.mrf.mxu3 }
 0x30a   : > { %v2530_v18 = vadd.f32 %v2514_v8, %v2498_v59  ;;  %v2942_v48 = vmul.f32 %v6509_v57, %v6186_v23  ;;  %4244 = vrsqrt.f32 %v6572_v20  ;;  %v2943_v52 = vmul.f32 %v6540_v31, %v6213_v28 }
 0x30b   : > { %v2771_v45 = vmul.f32 %v6172_v41, %v2751_v56  ;;  %v6582_v62 = vsel %vm2690_vm1, %v4239_v10, %v2687_v33  ;;  %v3023_v16 = vpack.c.bf16 %v3007_v12, %v3007_v12  ;;  %v2866_v38 = vmul.f32 0.7978846, %v2850_v5 }
 0x30c   : > { %v4243_v32 = vpop.eup %4242  ;;  %v2752_v60 = vmul.f32 %v6582_v62, %v6479_v3  ;;  %v6589_v36 = vadd.f32 %v2546_v29, %v2530_v18  ;;  %v3150_v1 = vunpack.c.l.b16 %v3022_v19  ;;  %v2958_v28 = vpack.c.bf16 %v2942_v48, %v2942_v48 }
 0x30d   : > { %v2897_v53 = vadd.f32 1.0, %v4243_v32  ;;  %v2803_v23 = vmul.f32 0.044715, %v2771_v45  ;;  %4246 = vtanh.f32 %v2866_v38  ;;  %v6602_v26 = vmul.f32 %v2912_v50, %v6449_v49  ;;  %v6610_v49 = vpop.f32.mrf.mxu2 }
 0x30e   : > { %v6592_v10 = vmul.f32 %v6172_v41, %v2752_v60  ;;  %v6595_v54 = vmax.f32 %v6589_v36, 1e-24  ;;  %v2785_v3 = vmul.f32 0.5, %v6500_v17  ;;  %v2959_v8 = vpack.c.bf16 %v2943_v52, %v2943_v52 }
 0x30f   : > { %v2819_v19 = vmul.f32 %v2803_v23, %v2771_v45  ;;  %v3151_v12 = vunpack.c.l.b16 %v3023_v16  ;;  %v2786_v43 = vmul.f32 0.5, %v6537_v46  ;;  %v2499_v5 = vmul.f32 %v6597_v0, %v6597_v0 }
 0x310   : > { %v2804_v59 = vmul.f32 0.044715, %v6592_v10  ;;  %4248 = vrsqrt.f32 %v6595_v54  ;;  %v4245_v56 = vpop.eup %4244  ;;  %v3054_v18 = vunpack.c.l.b16 %v2958_v28  ;;  %v3055_v29 = vunpack.c.l.b16 %v2959_v8 }
 0x311   : > { %v2835_v33 = vmul.f32 %v2819_v19, %v2771_v45  ;;  %v2913_v50 = vmul.f32 %v2897_v53, %v2785_v3  ;;  %v2693_v48 = vmul.f32 %v4245_v56, %v6572_v20  ;;  %v2974_v46 = vmul.f32 %v6509_v57, %v6201_v37 }
 0x312   : > { %v2820_v17 = vmul.f32 %v2804_v59, %v6592_v10  ;;  %v6618_v52 = vmul.f32 %v6602_v26, %v6280_v39  ;;  %v3068_v16 = vpack.c.b16 %v3055_v29, %v3054_v18  ;;  %v2975_v38 = vmul.f32 %v6540_v31, %v6237_v30 }
 0x313   : > { %v2851_v32 = vadd.f32 %v2835_v33, %v2771_v45  ;;  %v4247_v60 = vpop.eup %4246  ;;  %v2694_v53 = vmul.f32 %v4245_v56, %v2693_v48  ;;  %v2990_v28 = vpack.c.bf16 %v2974_v46, %v2974_v46  ;;  %v3164_v3 = vpack.c.b16 %v3151_v12, %v3150_v1  ;;  %v6631_v48 = vpop.f32.mrf.mxu3 }
 0x314   : > { %v2836_v23 = vmul.f32 %v2820_v17, %v6592_v10  ;;  %v2898_v19 = vadd.f32 1.0, %v4247_v60  ;;  %vm2698_vm3 = vweird.f32 %v6572_v20  ;;  %3388 = vmatmul.bf16.gmra.mxu1 %v3068_v16  ;;  %v2991_v37 = vpack.c.bf16 %v2975_v38, %v2975_v38  ;;  %v6635_v16 = vpop.f32.mrf.mxu0 }
 0x315   : > { %v2867_v8 = vmul.f32 0.7978846, %v2851_v32  ;;  %v6625_v39 = vmul.f32 %v2913_v50, %v6489_v2  ;;  %v2695_v33 = vmul.f32 0.5, %v2694_v53  ;;  %3486 = vmatmul.bf16.gmra.mxu3 %v3164_v3  ;;  %v2515_v30 = vmul.f32 %v6599_v15, %v6599_v15  ;;  %v6647_v53 = vpop.f32.mrf.mxu2 }
 0x316   : > { %v4249_v57 = vpop.eup %4248  ;;  %v2852_v59 = vadd.f32 %v2836_v23, %v6592_v10  ;;  %v2787_v31 = vmul.f32 0.5, %v2771_v45  ;;  %vm2699_vm4 = vweird.f32 %v4245_v56  ;;  %v2914_v12 = vmul.f32 %v2898_v19, %v2786_v43 }
 0x317   : > { %4250 = vtanh.f32 %v2867_v8  ;;  %v2703_v1 = vmul.f32 %v4249_v57, %v6595_v54  ;;  %v2696_v18 = vsub.f32 1.5, %v2695_v33  ;;  %v3102_v29 = vunpack.c.l.b16 %v2990_v28  ;;  %vm2700_vm6 = vmor %vm2698_vm3, %vm2699_vm4 }
 0x318   : > { %v3103_v17 = vunpack.c.l.b16 %v2991_v37  ;;  %v2868_v2 = vmul.f32 0.7978846, %v2852_v59  ;;  %v2531_v46 = vadd.f32 %v2515_v30, %v2499_v5  ;;  %v2547_v32 = vmul.f32 %v6610_v49, %v6610_v49 }
 0x319   : > { %v2704_v50 = vmul.f32 %v4249_v57, %v2703_v1  ;;  %v3009_v45 = vmul.f32 %v6625_v39, %v6321_v13  ;;  %v2697_v38 = vmul.f32 %v4245_v56, %v2696_v18  ;;  %vm2708_vm5 = vweird.f32 %v6595_v54 }
 0x31a   : > { %v3116_v43 = vpack.c.b16 %v3103_v17, %v3102_v29  ;;  %vm2709_vm7 = vweird.f32 %v4249_v57  ;;  %v6643_v23 = vadd.f32 %v2547_v32, %v2531_v46  ;;  %v2516_v5 = vmul.f32 %v6631_v48, %v6631_v48 }
 0x31b   : > { %v2705_v60 = vmul.f32 0.5, %v2704_v50  ;;  %v6650_v28 = vmul.f32 %v2914_v12, %v6526_v51  ;;  %v6652_v13 = vsel %vm2700_vm6, %v4245_v56, %v2697_v38  ;;  %v2500_v3 = vmul.f32 %v6635_v16, %v6635_v16  ;;  %vm2710_vm8 = vmor %vm2708_vm5, %vm2709_vm7 }
 0x31c   : > { %3437 = vmatmul.bf16.gmra.mxu0 %v3116_v43  ;;  %v2944_v20 = vmul.f32 %v6602_v26, %v6255_v21  ;;  %4252 = vtanh.f32 %v2868_v2  ;;  %v2753_v8 = vmul.f32 %v6652_v13, %v6555_v58  ;;  %v6661_v59 = vmax.f32 %v6643_v23, 1e-24  ;;  %v6687_v38 = vpop.f32.mrf.mxu0 }
 0x31d   : > { %v4251_v19 = vpop.eup %4250  ;;  %v2706_v37 = vsub.f32 1.5, %v2705_v60  ;;  %v2532_v33 = vadd.f32 %v2516_v5, %v2500_v3  ;;  %v2548_v56 = vmul.f32 %v6647_v53, %v6647_v53  ;;  %v2945_v30 = vmul.f32 %v6625_v39, %v6290_v11 }
 0x31e   : > { %v2899_v51 = vadd.f32 1.0, %v4251_v19  ;;  %v2773_v1 = vmul.f32 %v6172_v41, %v2753_v8  ;;  %4254 = vrsqrt.f32 %v6661_v59  ;;  %v2960_v12 = vpack.c.bf16 %v2944_v20, %v2944_v20 }
 0x31f   : > { %v2707_v21 = vmul.f32 %v4249_v57, %v2706_v37  ;;  %v3024_v58 = vpack.c.bf16 %v6618_v52, %v6618_v52  ;;  %v3025_v18 = vpack.c.bf16 %v3009_v45, %v3009_v45  ;;  %v6674_v29 = vadd.f32 %v2548_v56, %v2532_v33  ;;  %v6706_v56 = vpop.f32.mrf.mxu3 }
 0x320   : > { %v2961_v17 = vpack.c.bf16 %v2945_v30, %v2945_v30  ;;  %v2915_v2 = vmul.f32 %v2899_v51, %v2787_v31  ;;  %v2805_v50 = vmul.f32 0.044715, %v2773_v1  ;;  %v6680_v46 = vmul.f32 %v6650_v28, %v6382_v34 }
 0x321   : > { %v6676_v11 = vsel %vm2710_vm8, %v4249_v57, %v2707_v21  ;;  %v6685_v52 = vmax.f32 %v6674_v29, 1e-24  ;;  %v3056_v43 = vunpack.c.l.b16 %v2960_v12  ;;  %v2976_v57 = vmul.f32 %v6602_v26, %v6274_v42 }
 0x322   : > { %v2754_v32 = vmul.f32 %v6676_v11, %v6589_v36  ;;  %v4253_v45 = vpop.eup %4252  ;;  %v2821_v54 = vmul.f32 %v2805_v50, %v2773_v1  ;;  %v3057_v60 = vunpack.c.l.b16 %v2961_v17  ;;  %v3152_v31 = vunpack.c.l.b16 %v3024_v58 }
 0x323   : > { %v3153_v5 = vunpack.c.l.b16 %v3025_v18  ;;  %4256 = vrsqrt.f32 %v6685_v52  ;;  %v2931_v3 = vmul.f32 %v2915_v2, %v6564_v7  ;;  %v2977_v8 = vmul.f32 %v6625_v39, %v6313_v61 }
 0x324   : > { %v6692_v34 = vmul.f32 %v6172_v41, %v2754_v32  ;;  %v4255_v36 = vpop.eup %4254  ;;  %v2837_v20 = vmul.f32 %v2821_v54, %v2773_v1  ;;  %v3069_v19 = vpack.c.b16 %v3057_v60, %v3056_v43  ;;  %v2788_v37 = vmul.f32 0.5, %v6592_v10  ;;  %v6713_v43 = vpop.f32.mrf.mxu2 }
 0x325   : > { %v2713_v42 = vmul.f32 %v4255_v36, %v6661_v59  ;;  %v2501_v41 = vmul.f32 %v6687_v38, %v6687_v38  ;;  %v3026_v26 = vpack.c.bf16 %v6680_v46, %v6680_v46  ;;  %vm2718_vm9 = vweird.f32 %v6661_v59 }
 0x326   : > { %v2806_v51 = vmul.f32 0.044715, %v6692_v34  ;;  %v2853_v33 = vadd.f32 %v2837_v20, %v2773_v1  ;;  %3393 = vmatmul.bf16.gmra.mxu1 %v3069_v19  ;;  %v2992_v7 = vpack.c.bf16 %v2976_v57, %v2976_v57  ;;  %v2900_v61 = vadd.f32 1.0, %v4253_v45 }
 0x327   : > { %v2714_v39 = vmul.f32 %v4255_v36, %v2713_v42  ;;  %v2993_v30 = vpack.c.bf16 %v2977_v8, %v2977_v8  ;;  %v3011_v21 = vmul.f32 %v2931_v3, %v6429_v9  ;;  %v3165_v18 = vpack.c.b16 %v3153_v5, %v3152_v31 }
 0x328   : > { %v2822_v10 = vmul.f32 %v2806_v51, %v6692_v34  ;;  %v2869_v12 = vmul.f32 0.7978846, %v2853_v33  ;;  %v3104_v58 = vunpack.c.l.b16 %v2992_v7  ;;  %v2517_v54 = vmul.f32 %v6706_v56, %v6706_v56 }
 0x329   : > { %v4257_v17 = vpop.eup %4256  ;;  %v2715_v50 = vmul.f32 0.5, %v2714_v39  ;;  %v3105_v32 = vunpack.c.l.b16 %v2993_v30  ;;  %v2789_v45 = vmul.f32 0.5, %v2773_v1  ;;  %vm2719_vm11 = vweird.f32 %v4255_v36  ;;  %3491 = vmatmul.bf16.gmra.mxu3 %v3165_v18 }
 0x32a   : > { %v2838_v2 = vmul.f32 %v2822_v10, %v6692_v34  ;;  %4258 = vtanh.f32 %v2869_v12  ;;  %v2723_v60 = vmul.f32 %v4257_v17, %v6685_v52  ;;  %v2533_v5 = vadd.f32 %v2517_v54, %v2501_v41  ;;  %vm2720_vm12 = vmor %vm2718_vm9, %vm2719_vm11 }
 0x32b   : > { %v2716_v57 = vsub.f32 1.5, %v2715_v50  ;;  %v3117_v31 = vpack.c.b16 %v3105_v32, %v3104_v58  ;;  %v2549_v19 = vmul.f32 %v6713_v43, %v6713_v43  ;;  %v2946_v8 = vmul.f32 %v6650_v28, %v6332_v14 }
 0x32c   : > { %v2854_v9 = vadd.f32 %v2838_v2, %v6692_v34  ;;  %v2724_v20 = vmul.f32 %v4257_v17, %v2723_v60  ;;  %v2947_v51 = vmul.f32 %v2931_v3, %v6406_v47  ;;  %v3027_v1 = vpack.c.bf16 %v3011_v21, %v3011_v21  ;;  %v6741_v2 = vld [vmem:[%s6863_s9] ss:$0 sm:$0xff] }
 0x32d   : > { %v2916_v42 = vmul.f32 %v2900_v61, %v2788_v37  ;;  %v2717_v33 = vmul.f32 %v4255_v36, %v2716_v57  ;;  %3442 = vmatmul.bf16.gmra.mxu0 %v3117_v31  ;;  %v2979_v7 = vmul.f32 %v2931_v3, %v6423_v55  ;;  %v6726_v10 = vadd.f32 %v2549_v19, %v2533_v5 }
 0x32e   : > { %v2725_v41 = vmul.f32 0.5, %v2724_v20  ;;  %v2962_v39 = vpack.c.bf16 %v2946_v8, %v2946_v8  ;;  %v2963_v30 = vpack.c.bf16 %v2947_v51, %v2947_v51  ;;  %v2870_v12 = vmul.f32 0.7978846, %v2854_v9 }
 0x32f   : > { %v6728_v58 = vsel %vm2720_vm12, %v4255_v36, %v2717_v33  ;;  %vm2728_vm13 = vweird.f32 %v6685_v52  ;;  %v2978_v14 = vmul.f32 %v6650_v28, %v6370_v24  ;;  %vm2729_vm14 = vweird.f32 %v4257_v17 }
 0x330   : > { %v4259_v47 = vpop.eup %4258  ;;  %v2755_v55 = vmul.f32 %v6728_v58, %v6643_v23  ;;  %v2726_v3 = vsub.f32 1.5, %v2725_v41  ;;  %v6736_v59 = vmax.f32 %v6726_v10, 1e-24  ;;  %v3058_v61 = vunpack.c.l.b16 %v2962_v39  ;;  %vm2730_vm15 = vmor %vm2728_vm13, %vm2729_vm14 }
 0x331   : > { %v2901_v37 = vadd.f32 1.0, %v4259_v47  ;;  %v3059_v21 = vunpack.c.l.b16 %v2963_v30  ;;  %v2995_v18 = vpack.c.bf16 %v2979_v7, %v2979_v7  ;;  %v3155_v36 = vunpack.c.l.b16 %v3027_v1 }
 0x332   : > { %v6744_v24 = vmul.f32 %v6741_v2, %v2755_v55  ;;  %v2727_v28 = vmul.f32 %v4257_v17, %v2726_v3  ;;  %4260 = vrsqrt.f32 %v6736_v59  ;;  %v2994_v32 = vpack.c.bf16 %v2978_v14, %v2978_v14 }
 0x333   : > { %v2917_v23 = vmul.f32 %v2901_v37, %v2789_v45  ;;  %4262 = vtanh.f32 %v2870_v12  ;;  %v3070_v50 = vpack.c.b16 %v3059_v21, %v3058_v61  ;;  %v3154_v54 = vunpack.c.l.b16 %v3026_v26 }
 0x334   : > { %v2932_v60 = vmul.f32 %v2916_v42, %v6582_v62  ;;  %v2807_v9 = vmul.f32 0.044715, %v6744_v24  ;;  %v6754_v57 = vsel %vm2730_vm15, %v4257_v17, %v2727_v28  ;;  %v3107_v5 = vunpack.c.l.b16 %v2995_v18 }
 0x335   : > { %v2933_v31 = vmul.f32 %v2917_v23, %v6652_v13  ;;  %v2756_v45 = vmul.f32 %v6754_v57, %v6674_v29  ;;  %v3166_v20 = vpack.c.b16 %v3155_v36, %v3154_v54  ;;  %v3106_v46 = vunpack.c.l.b16 %v2994_v32 }
 0x336   : > { %v2823_v52 = vmul.f32 %v2807_v9, %v6744_v24  ;;  %3398 = vmatmul.bf16.gmra.mxu1 %v3070_v50  ;;  %v2948_v8 = vmul.f32 %v2932_v60, %v6447_v22  ;;  %v3012_v39 = vmul.f32 %v2932_v60, %v6466_v40  ;;  %v2980_v40 = vmul.f32 %v2932_v60, %v6458_v63 }
 0x337   : > { %v6761_v19 = vmul.f32 %v6741_v2, %v2756_v45  ;;  %v2949_v62 = vmul.f32 %v2933_v31, %v6502_v6  ;;  %v3118_v1 = vpack.c.b16 %v3107_v5, %v3106_v46  ;;  %v3013_v42 = vmul.f32 %v2933_v31, %v6518_v35 }
 0x338   : > { %v4261_v26 = vpop.eup %4260  ;;  %v2839_v17 = vmul.f32 %v2823_v52, %v6744_v24  ;;  %v2964_v22 = vpack.c.bf16 %v2948_v8, %v2948_v8  ;;  %v2981_v55 = vmul.f32 %v2933_v31, %v6504_v27  ;;  %v2790_v35 = vmul.f32 0.5, %v6692_v34 }
 0x339   : > { %v4263_v13 = vpop.eup %4262  ;;  %v2808_v51 = vmul.f32 0.044715, %v6761_v19  ;;  %v2733_v29 = vmul.f32 %v4261_v26, %v6736_v59  ;;  %3496 = vmatmul.bf16.gmra.mxu3 %v3166_v20  ;;  %v2965_v7 = vpack.c.bf16 %v2949_v62, %v2949_v62  ;;  %v3029_v3 = vpack.c.bf16 %v3013_v42, %v3013_v42 }
 0x33a   : > { %v2855_v33 = vadd.f32 %v2839_v17, %v6744_v24  ;;  %v2902_v30 = vadd.f32 1.0, %v4263_v13  ;;  %vm2739_vm10 = vweird.f32 %v4261_v26  ;;  %v3028_v18 = vpack.c.bf16 %v3012_v39, %v3012_v39 }
 0x33b   : > { %v2824_v41 = vmul.f32 %v2808_v51, %v6761_v19  ;;  %v2734_v6 = vmul.f32 %v4261_v26, %v2733_v29  ;;  %v3061_v37 = vunpack.c.l.b16 %v2965_v7  ;;  %v3060_v28 = vunpack.c.l.b16 %v2964_v22 }
 0x33c   : > { %v2871_v12 = vmul.f32 0.7978846, %v2855_v33  ;;  %v2918_v36 = vmul.f32 %v2902_v30, %v2790_v35  ;;  %vm2738_vm0 = vweird.f32 %v6736_v59  ;;  %v2997_v50 = vpack.c.bf16 %v2981_v55, %v2981_v55 }
 0x33d   : > { %v2840_v14 = vmul.f32 %v2824_v41, %v6761_v19  ;;  %v2735_v47 = vmul.f32 0.5, %v2734_v6  ;;  %3447 = vmatmul.bf16.gmra.mxu0 %v3118_v1  ;;  %v3157_v32 = vunpack.c.l.b16 %v3029_v3  ;;  %vm2740_vm1 = vmor %vm2738_vm0, %vm2739_vm10  ;;  %v3071_v54 = vpack.c.b16 %v3061_v37, %v3060_v28 }
 0x33e   : > { %4264 = vtanh.f32 %v2871_v12  ;;  %v2996_v9 = vpack.c.bf16 %v2980_v40, %v2980_v40  ;;  %v3156_v45 = vunpack.c.l.b16 %v3028_v18  ;;  %v2934_v5 = vmul.f32 %v2918_v36, %v6676_v11 }
 0x33f   : > { %v2856_v61 = vadd.f32 %v2840_v14, %v6761_v19  ;;  %v2736_v21 = vsub.f32 1.5, %v2735_v47  ;;  %v2791_v63 = vmul.f32 0.5, %v6744_v24  ;;  %v3109_v20 = vunpack.c.l.b16 %v2997_v50 }
 0x340   : > { %v3167_v46 = vpack.c.b16 %v3157_v32, %v3156_v45  ;;  %v3108_v17 = vunpack.c.l.b16 %v2996_v9  ;;  %v3014_v1 = vmul.f32 %v2934_v5, %v6559_v44  ;;  %v2982_v39 = vmul.f32 %v2934_v5, %v6548_v4 }
 0x341   : > { %v2737_v23 = vmul.f32 %v4261_v26, %v2736_v21  ;;  %v2872_v27 = vmul.f32 0.7978846, %v2856_v61 }
 0x342   : > { %v3119_v51 = vpack.c.b16 %v3109_v20, %v3108_v17  ;;  %v3030_v30 = vpack.c.bf16 %v3014_v1, %v3014_v1  ;;  %v2998_v55 = vpack.c.bf16 %v2982_v39, %v2982_v39  ;;  %v4306_v39 = vld [vmem:[%s4924_s21 + $0x18] sm:$0xff] }
 0x343   : > { %v2741_v34 = vsel %vm2740_vm1, %v4261_v26, %v2737_v23  ;;  %4266 = vtanh.f32 %v2872_v27  ;;  %v2950_v26 = vmul.f32 %v2934_v5, %v6546_v25 }
 0x344   : > { %v4265_v31 = vpop.eup %4264  ;;  %v2757_v52 = vmul.f32 %v2741_v34, %v6726_v10  ;;  %v3158_v3 = vunpack.c.l.b16 %v3030_v30  ;;  %v3110_v61 = vunpack.c.l.b16 %v2998_v55 }
 0x345   : > { %v2903_v60 = vadd.f32 1.0, %v4265_v31  ;;  %v2966_v42 = vpack.c.bf16 %v2950_v26, %v2950_v26 }
 0x346   : > { %v2777_v59 = vmul.f32 %v6741_v2, %v2757_v52  ;;  %3403 = vmatmul.bf16.gmra.mxu1 %v3071_v54 }
 0x347   : > { %v2919_v62 = vmul.f32 %v2903_v60, %v2791_v63 }
 0x348   : > { %v2809_v8 = vmul.f32 0.044715, %v2777_v59  ;;  %v2793_v4 = vmul.f32 0.5, %v2777_v59 }
 0x349   : > { %v2935_v13 = vmul.f32 %v2919_v62, %v6728_v58  ;;  %3501 = vmatmul.bf16.gmra.mxu3 %v3167_v46  ;;  %v4267_v29 = vpop.eup %4266  ;;  %v4303_v62 = vld [vmem:[%s4924_s21] sm:$0xff] }
 0x34a   : > { %v2825_v11 = vmul.f32 %v2809_v8, %v2777_v59  ;;  %v2904_v6 = vadd.f32 1.0, %v4267_v29 }
 0x34b   : > { %v3015_v10 = vmul.f32 %v2935_v13, %v6610_v49  ;;  %v2951_v24 = vmul.f32 %v2935_v13, %v6597_v0  ;;  %v2983_v7 = vmul.f32 %v2935_v13, %v6599_v15  ;;  %v3062_v49 = vunpack.c.l.b16 %v2966_v42  ;;  %v4305_v42 = vld [vmem:[%s4924_s21 + $0x10] sm:$0xff] }
 0x34c   : > { %v2841_v2 = vmul.f32 %v2825_v11, %v2777_v59  ;;  %v2792_v0 = vmul.f32 0.5, %v6761_v19 }
 0x34d   : > { %3452 = vmatmul.bf16.gmra.mxu0 %v3119_v51  ;;  %v2967_v33 = vpack.c.bf16 %v2951_v24, %v2951_v24  ;;  %v3031_v41 = vpack.c.bf16 %v3015_v10, %v3015_v10  ;;  %v2999_v22 = vpack.c.bf16 %v2983_v7, %v2983_v7  ;;  %v4304_v51 = vld [vmem:[%s4924_s21 + $0x8] sm:$0xff] }
 0x34e   : > { %v2857_v25 = vadd.f32 %v2841_v2, %v2777_v59  ;;  %v2920_v47 = vmul.f32 %v2904_v6, %v2792_v0 }
 0x34f   : > { %v3063_v58 = vunpack.c.l.b16 %v2967_v33  ;;  %v3159_v14 = vunpack.c.l.b16 %v3031_v41  ;;  %v3111_v35 = vunpack.c.l.b16 %v2999_v22 }
 0x350   : > { %v2873_v12 = vmul.f32 0.7978846, %v2857_v25  ;;  %v2936_v37 = vmul.f32 %v2920_v47, %v6754_v57 }
 0x351   : > { %v3072_v44 = vpack.c.b16 %v3063_v58, %v3062_v49  ;;  %v3168_v15 = vpack.c.b16 %v3159_v14, %v3158_v3  ;;  %v3120_v18 = vpack.c.b16 %v3111_v35, %v3110_v61  ;;  %v4308_v61 = vld [vmem:[%s4924_s21 + $0x28] sm:$0xff] }
 0x352   : > { %4268 = vtanh.f32 %v2873_v12  ;;  %v2952_v19 = vmul.f32 %v2936_v37, %v6635_v16  ;;  %v3016_v28 = vmul.f32 %v2936_v37, %v6647_v53  ;;  %v2984_v50 = vmul.f32 %v2936_v37, %v6631_v48 }
 0x354   : > { %v2968_v57 = vpack.c.bf16 %v2952_v19, %v2952_v19  ;;  %v3032_v9 = vpack.c.bf16 %v3016_v28, %v3016_v28  ;;  %v3000_v53 = vpack.c.bf16 %v2984_v50, %v2984_v50  ;;  %v4309_v28 = vld [vmem:[%s4924_s21 + $0x30] sm:$0xff] }
 0x356   : > { %3408 = vmatmul.bf16.gmra.mxu1 %v3072_v44  ;;  %v3064_v16 = vunpack.c.l.b16 %v2968_v57  ;;  %v4307_v44 = vld [vmem:[%s4924_s21 + $0x20] sm:$0xff] }
 0x358   : > { %v4269_v21 = vpop.eup %4268 }
 0x359   : > { %v2905_v40 = vadd.f32 1.0, %v4269_v21  ;;  %3506 = vmatmul.bf16.gmra.mxu3 %v3168_v15 }
 0x35b   : > { %v2921_v36 = vmul.f32 %v2905_v40, %v2793_v4 }
 0x35d   : > { %v2937_v23 = vmul.f32 %v2921_v36, %v2741_v34  ;;  %3457 = vmatmul.bf16.gmra.mxu0 %v3120_v18  ;;  %v3160_v34 = vunpack.c.l.b16 %v3032_v9  ;;  %v4310_v9 = vld [vmem:[%s4924_s21 + $0x38] sm:$0xff] }
 0x35f   : > { %v3017_v32 = vmul.f32 %v2937_v23, %v6713_v43  ;;  %v2953_v27 = vmul.f32 %v2937_v23, %v6687_v38  ;;  %v2985_v54 = vmul.f32 %v2937_v23, %v6706_v56  ;;  %v3112_v38 = vunpack.c.l.b16 %v3000_v53  ;;  %v4311_v53 = vld [vmem:[%s4924_s21 + $0x40] sm:$0xff] }
 0x361   : > { %v3033_v31 = vpack.c.bf16 %v3017_v32, %v3017_v32  ;;  %v2969_v45 = vpack.c.bf16 %v2953_v27, %v2953_v27  ;;  %v3001_v5 = vpack.c.bf16 %v2985_v54, %v2985_v54 }
 0x363   : > { %v3161_v52 = vunpack.c.l.b16 %v3033_v31  ;;  %v3065_v63 = vunpack.c.l.b16 %v2969_v45  ;;  %v3113_v48 = vunpack.c.l.b16 %v3001_v5 }
 0x365   : > { %v3073_v60 = vpack.c.b16 %v3065_v63, %v3064_v16  ;;  %v3169_v20 = vpack.c.b16 %v3161_v52, %v3160_v34  ;;  %v3121_v43 = vpack.c.b16 %v3113_v48, %v3112_v38 }
 0x367   : > { %3413 = vmatmul.bf16.gmra.mxu1 %v3073_v60 }
 0x369   : > { %3511 = vmatmul.bf16.gmra.mxu3 %v3169_v20  ;;  %v3428_v46 = vpop.f32.mrf.mxu0 }
 0x36a   : > { %v3477_v56 = vpop.f32.mrf.mxu3 }
 0x36b   : > { %v3379_v59 = vpop.f32.mrf.mxu1 }
 0x36c   : > { %v3380_v17 = vadd.f32 %v4303_v62, %v3379_v59 }
 0x36d   : > { %3462 = vmatmul.bf16.gmra.mxu0 %v3121_v43 }
 0x36e   : > { %v3429_v8 = vadd.f32 %v3428_v46, %v3380_v17 }
 0x370   : > { %v3478_v26 = vadd.f32 %v3477_v56, %v3429_v8  ;;  %v4312_v56 = vld [vmem:[%s4924_s21 + $0x48] sm:$0xff] }
 0x371   : > { %v3430_v10 = vpop.f32.mrf.mxu0 }
 0x372   : > { %3517 = vst.msk [vmem:[%s6802_s19] sm:$0xff] %vm1628_vm2, %v3478_v26  ;;  %v3479_v24 = vpop.f32.mrf.mxu3 }
 0x373   : > { %v3381_v13 = vpop.f32.mrf.mxu1 }
 0x374   : > { %v3382_v11 = vadd.f32 %v4304_v51, %v3381_v13  ;;  %v4313_v13 = vld [vmem:[%s4924_s21 + $0x50] sm:$0xff] }
 0x376   : > { %v3431_v29 = vadd.f32 %v3430_v10, %v3382_v11 }
 0x378   : > { %v3480_v1 = vadd.f32 %v3479_v24, %v3431_v29 }
 0x37a   : > { %3518 = vst.msk [vmem:[%s6802_s19 + $0x8] sm:$0xff] %vm1628_vm2, %v3480_v1 }
 0x37c   : > { %v3384_v2 = vpop.f32.mrf.mxu1 }
 0x37d   : > { %v3385_v33 = vadd.f32 %v4305_v42, %v3384_v2  ;;  %v4314_v2 = vld [vmem:[%s4924_s21 + $0x58] sm:$0xff] }
 0x382   : > { %v3433_v7 = vpop.f32.mrf.mxu0 }
 0x383   : > { %v3434_v41 = vadd.f32 %v3433_v7, %v3385_v33 }
 0x384   : > { %v3386_v6 = vpop.f32.mrf.mxu1 }
 0x385   : > { %v3387_v30 = vadd.f32 %v4306_v39, %v3386_v6 }
 0x387   : > { %v3482_v25 = vpop.f32.mrf.mxu3 }
 0x388   : > { %v3483_v58 = vadd.f32 %v3482_v25, %v3434_v41 }
 0x38a   : > { %3519 = vst.msk [vmem:[%s6802_s19 + $0x10] sm:$0xff] %vm1628_vm2, %v3483_v58  ;;  %v3435_v12 = vpop.f32.mrf.mxu0  ;;  %v4315_v58 = vld [vmem:[%s4924_s21 + $0x60] sm:$0xff] }
 0x38b   : > { %v3436_v49 = vadd.f32 %v3435_v12, %v3387_v30 }
 0x38f   : > { %v3484_v0 = vpop.f32.mrf.mxu3 }
 0x390   : > { %v3485_v22 = vadd.f32 %v3484_v0, %v3436_v49 }
 0x391   : > { %v3389_v14 = vpop.f32.mrf.mxu1 }
 0x392   : > { %3520 = vst.msk [vmem:[%s6802_s19 + $0x18] sm:$0xff] %vm1628_vm2, %v3485_v22  ;;  %v3390_v47 = vadd.f32 %v4307_v44, %v3389_v14  ;;  %v4316_v14 = vld [vmem:[%s4924_s21 + $0x68] sm:$0xff] }
 0x398   : > { %v3487_v3 = vpop.f32.mrf.mxu3 }
 0x399   : > { %v3438_v55 = vpop.f32.mrf.mxu0  ;;  %v3391_v15 = vpop.f32.mrf.mxu1 }
 0x39a   : > { %v3439_v35 = vadd.f32 %v3438_v55, %v3390_v47  ;;  %v3392_v21 = vadd.f32 %v4308_v61, %v3391_v15 }
 0x39c   : > { %v3488_v37 = vadd.f32 %v3487_v3, %v3439_v35 }
 0x39e   : > { %3521 = vst.msk [vmem:[%s6802_s19 + $0x20] sm:$0xff] %vm1628_vm2, %v3488_v37  ;;  %v4317_v37 = vld [vmem:[%s4924_s21 + $0x70] sm:$0xff] }
 0x3a0   : > { %v3489_v40 = vpop.f32.mrf.mxu3 }
 0x3a1   : > { %v3440_v4 = vpop.f32.mrf.mxu0 }
 0x3a2   : > { %v3441_v18 = vadd.f32 %v3440_v4, %v3392_v21 }
 0x3a3   : > { %v3394_v19 = vpop.f32.mrf.mxu1 }
 0x3a4   : > { %v3490_v36 = vadd.f32 %v3489_v40, %v3441_v18  ;;  %v3395_v23 = vadd.f32 %v4309_v28, %v3394_v19  ;;  %v4318_v19 = vld [vmem:[%s4924_s21 + $0x78] sm:$0xff] }
 0x3a6   : > { %3522 = vst.msk [vmem:[%s6802_s19 + $0x28] sm:$0xff] %vm1628_vm2, %v3490_v36 }
 0x3aa   : > { %v3443_v50 = vpop.f32.mrf.mxu0 }
 0x3ab   : > { %v3396_v32 = vpop.f32.mrf.mxu1  ;;  %v3444_v27 = vadd.f32 %v3443_v50, %v3395_v23 }
 0x3ac   : > { %v3492_v57 = vpop.f32.mrf.mxu3  ;;  %v3397_v31 = vadd.f32 %v4310_v9, %v3396_v32 }
 0x3ad   : > { %v3493_v54 = vadd.f32 %v3492_v57, %v3444_v27 }
 0x3af   : > { %3523 = vst.msk [vmem:[%s6802_s19 + $0x30] sm:$0xff] %vm1628_vm2, %v3493_v54 }
 0x3b2   : > { %v3445_v45 = vpop.f32.mrf.mxu0 }
 0x3b3   : > { %v3399_v5 = vpop.f32.mrf.mxu1  ;;  %v3446_v52 = vadd.f32 %v3445_v45, %v3397_v31 }
 0x3b4   : > { %v3494_v16 = vpop.f32.mrf.mxu3  ;;  %v3400_v34 = vadd.f32 %v4311_v53, %v3399_v5 }
 0x3b5   : > { %v3495_v63 = vadd.f32 %v3494_v16, %v3446_v52 }
 0x3b7   : > { %3524 = vst.msk [vmem:[%s6802_s19 + $0x38] sm:$0xff] %vm1628_vm2, %v3495_v63 }
 0x3ba   : > { %v3448_v60 = vpop.f32.mrf.mxu0 }
 0x3bb   : > { %v3401_v48 = vpop.f32.mrf.mxu1  ;;  %v3449_v20 = vadd.f32 %v3448_v60, %v3400_v34 }
 0x3bc   : > { %v3497_v38 = vpop.f32.mrf.mxu3  ;;  %v3402_v59 = vadd.f32 %v4312_v56, %v3401_v48 }
 0x3bd   : > { %v3498_v43 = vadd.f32 %v3497_v38, %v3449_v20 }
 0x3bf   : > { %3525 = vst.msk [vmem:[%s6802_s19 + $0x40] sm:$0xff] %vm1628_vm2, %v3498_v43 }
 0x3c2   : > { %v3450_v46 = vpop.f32.mrf.mxu0 }
 0x3c3   : > { %v3404_v62 = vpop.f32.mrf.mxu1  ;;  %v3451_v17 = vadd.f32 %v3450_v46, %v3402_v59 }
 0x3c4   : > { %v3499_v8 = vpop.f32.mrf.mxu3  ;;  %v3405_v51 = vadd.f32 %v4313_v13, %v3404_v62 }
 0x3c5   : > { %v3500_v26 = vadd.f32 %v3499_v8, %v3451_v17 }
 0x3c7   : > { %3526 = vst.msk [vmem:[%s6802_s19 + $0x48] sm:$0xff] %vm1628_vm2, %v3500_v26 }
 0x3ca   : > { %v3453_v11 = vpop.f32.mrf.mxu0 }
 0x3cb   : > { %v3406_v10 = vpop.f32.mrf.mxu1  ;;  %v3454_v24 = vadd.f32 %v3453_v11, %v3405_v51 }
 0x3cc   : > { %v3502_v29 = vpop.f32.mrf.mxu3  ;;  %v3407_v42 = vadd.f32 %v4314_v2, %v3406_v10 }
 0x3cd   : > { %v3503_v1 = vadd.f32 %v3502_v29, %v3454_v24 }
 0x3cf   : > { %3527 = vst.msk [vmem:[%s6802_s19 + $0x50] sm:$0xff] %vm1628_vm2, %v3503_v1 }
 0x3d2   : > { %v3455_v33 = vpop.f32.mrf.mxu0 }
 0x3d3   : > { %v3409_v7 = vpop.f32.mrf.mxu1  ;;  %v3456_v41 = vadd.f32 %v3455_v33, %v3407_v42 }
 0x3d4   : > { %v3504_v25 = vpop.f32.mrf.mxu3  ;;  %v3410_v39 = vadd.f32 %v4315_v58, %v3409_v7 }
 0x3d5   : > { %v3505_v6 = vadd.f32 %v3504_v25, %v3456_v41 }
 0x3d7   : > { %3528 = vst.msk [vmem:[%s6802_s19 + $0x58] sm:$0xff] %vm1628_vm2, %v3505_v6 }
 0x3da   : > { %v3458_v30 = vpop.f32.mrf.mxu0 }
 0x3db   : > { %v3411_v12 = vpop.f32.mrf.mxu1  ;;  %v3459_v49 = vadd.f32 %v3458_v30, %v3410_v39 }
 0x3dc   : > { %v3507_v0 = vpop.f32.mrf.mxu3  ;;  %v3412_v44 = vadd.f32 %v4316_v14, %v3411_v12 }
 0x3dd   : > { %v3508_v22 = vadd.f32 %v3507_v0, %v3459_v49 }
 0x3df   : > { %3529 = vst.msk [vmem:[%s6802_s19 + $0x60] sm:$0xff] %vm1628_vm2, %v3508_v22 }
 0x3e2   : > { %v3460_v47 = vpop.f32.mrf.mxu0 }
 0x3e3   : > { %v3461_v55 = vadd.f32 %v3460_v47, %v3412_v44 }
 0x3e4   : > { %v3414_v3 = vpop.f32.mrf.mxu1  ;;  %v3509_v35 = vpop.f32.mrf.mxu3 }
 0x3e5   : > { %v3510_v15 = vadd.f32 %v3509_v35, %v3461_v55  ;;  %v3415_v61 = vadd.f32 %v4317_v37, %v3414_v3 }
 0x3e7   : > { %3530 = vst.msk [vmem:[%s6802_s19 + $0x68] sm:$0xff] %vm1628_vm2, %v3510_v15 }
 0x3ea   : > { %v3463_v21 = vpop.f32.mrf.mxu0 }
 0x3eb   : > { %v3464_v4 = vadd.f32 %v3463_v21, %v3415_v61 }
 0x3ec   : > { %v3512_v40 = vpop.f32.mrf.mxu3  ;;  %v3416_v18 = vpop.f32.mrf.mxu1 }
 0x3ed   : > { %v3513_v36 = vadd.f32 %v3512_v40, %v3464_v4  ;;  %v3417_v28 = vadd.f32 %v4318_v19, %v3416_v18 }
 0x3ef   : > { %3531 = vst.msk [vmem:[%s6802_s19 + $0x70] sm:$0xff] %vm1628_vm2, %v3513_v36 }
 0x3f2   : > { %v3465_v23 = vpop.f32.mrf.mxu0 }
 0x3f3   : > { %v3466_v50 = vadd.f32 %v3465_v23, %v3417_v28 }
 0x3f4   : > { %v3514_v32 = vpop.f32.mrf.mxu3 }
 0x3f5   : > { %v3515_v27 = vadd.f32 %v3514_v32, %v3466_v50 }
 0x3f7   : > { %3532 = vst.msk [vmem:[%s6802_s19 + $0x78] sm:$0xff] %vm1628_vm2, %v3515_v27 }
 0x3f8 PF: > { %s24_s25 = sadd.s32 1, %s4325_s25  }
 0x3f9   : > { %p21_p4 = scmp.ge.s32.totalorder %s24_s25, 10  }
 0x3fb   :  { %23 = sbr.rel (!%p21_p4) target bundleno = 1 (0x1), region = 113 }

</bundles_post_ra>
